<compile_context>
chip_gen: v7x
topology: tpu7x:2x2x1
jax: 0.10.0
libtpu: 0.0.40
codegen_flags: <defaults>
</compile_context>

<pallas_src>
import functools

import jax
import jax.numpy as jnp
from jax.experimental import pallas as pl
from jax.experimental.pallas import tpu as pltpu


# ---------------------------------------------------------------------------
# Fused ResNetLayer kernel: grid = (batch, block), activation carried in VMEM
# ---------------------------------------------------------------------------

def _fused_layer_kernel(xflat_ref, w1_ref, s1_ref, b1_ref,
                        w2_ref, s2_ref, b2_ref,
                        out_ref, xpad_ref, ypad_ref, *, H, W):
    """One image per grid-i, one ResNetBasicBlock per grid-b.

    xflat_ref : (1, H*W + 2W + 2, C)   f32   flat-padded input scanlines
    w1_ref    : (9, C, HID)            bf16  conv1 taps (k = dy*3 + dx)
    s1/b1_ref : (1, HID)               f32   folded norm affine after conv1
    w2_ref    : (9, HID, C)            bf16  conv2 taps
    s2/b2_ref : (1, C)                 f32   folded norm affine after conv2
    out_ref   : (1, H*W, C)            f32
    xpad_ref  : (H*W + 2W + 2, C)      f32   VMEM: running activation (padded)
    ypad_ref  : (H*W + 2W + 2, HID)    f32   VMEM: conv1 output (padded)
    """
    hw = H * W
    lo = W + 1          # first real-image row inside the flat-padded buffer
    b = pl.program_id(1)

    # First block of this image: load the flat-padded activation (zero halo
    # included) into the resident scratch and clear conv1's staging buffer.
    @pl.when(b == 0)
    def _():
        xpad_ref[...] = xflat_ref[0]
        ypad_ref[...] = jnp.zeros_like(ypad_ref)

    # Column masks: in the flat scanline layout a +/-1 horizontal tap wraps
    # across scanline boundaries; those rows must contribute zero.
    col = jax.lax.broadcasted_iota(jnp.int32, (hw, 1), 0) % W
    mask_l = col >= 1          # dx == 0 tap valid only for w >= 1
    mask_r = col <= W - 2      # dx == 2 tap valid only for w <= W - 2

    def conv3x3(src_ref, w_ref):
        cout = w_ref.shape[-1]
        acc = jnp.zeros((hw, cout), jnp.float32)
        for dy in range(3):
            for dx in range(3):
                s = dy * W + dx
                tap = src_ref[s:s + hw, :].astype(jnp.bfloat16)
                part = jnp.dot(tap, w_ref[dy * 3 + dx],
                               preferred_element_type=jnp.float32)
                if dx == 0:
                    part = jnp.where(mask_l, part, 0.0)
                elif dx == 2:
                    part = jnp.where(mask_r, part, 0.0)
                acc = acc + part
        return acc

    # ---- conv1 + norm affine + ReLU, staged in VMEM (never touches HBM) ----
    acc1 = conv3x3(xpad_ref, w1_ref)
    y = jnp.maximum(acc1 * s1_ref[...] + b1_ref[...], 0.0)
    ypad_ref[lo:lo + hw, :] = y            # halo rows stay zero

    # ---- conv2 + norm affine + residual + ReLU -----------------------------
    acc2 = conv3x3(ypad_ref, w2_ref)
    res = xpad_ref[lo:lo + hw, :]          # identity residual path (f32)
    newx = jnp.maximum(acc2 * s2_ref[...] + b2_ref[...] + res, 0.0)
    xpad_ref[lo:lo + hw, :] = newx         # becomes the next block's input

    @pl.when(b == pl.num_programs(1) - 1)
    def _():
        out_ref[0] = newx.astype(out_ref.dtype)


def resnet_layer_fused(x_nchw, packed):
    """x_nchw: (N, C, H, W) f32 -> (N, C, H, W) f32 (whole layer, one call)."""
    n, c, h, w = x_nchw.shape
    nblk, _, _, hid = packed["w1"].shape
    hw = h * w
    rows = hw + 2 * w + 2

    # NCHW -> flat NHWC scanlines, W+1 zero rows on each side: every (dy, dx)
    # tap becomes a valid static length-H*W row slice of this buffer.
    x = jnp.transpose(x_nchw, (0, 2, 3, 1)).reshape(n, hw, c)
    xflat = jnp.pad(x, ((0, 0), (w + 1, w + 1), (0, 0)))

    kernel = functools.partial(_fused_layer_kernel, H=h, W=w)

    flops = 2 * n * nblk * hw * 9 * (c * hid + hid * c)
    bytes_accessed = (xflat.size * 4
                      + (packed["w1"].size + packed["w2"].size) * 2
                      + (packed["s1"].size + packed["b1"].size
                         + packed["s2"].size + packed["b2"].size) * 4
                      + n * hw * c * 4)

    out = pl.pallas_call(
        kernel,
        out_shape=jax.ShapeDtypeStruct((n, hw, c), jnp.float32),
        grid_spec=pltpu.PrefetchScalarGridSpec(
            num_scalar_prefetch=0,
            grid=(n, nblk),
            in_specs=[
                pl.BlockSpec((1, rows, c), lambda i, b: (i, 0, 0)),
                pl.BlockSpec((None, 9, c, hid), lambda i, b: (b, 0, 0, 0)),
                pl.BlockSpec((None, 1, hid), lambda i, b: (b, 0, 0)),
                pl.BlockSpec((None, 1, hid), lambda i, b: (b, 0, 0)),
                pl.BlockSpec((None, 9, hid, c), lambda i, b: (b, 0, 0, 0)),
                pl.BlockSpec((None, 1, c), lambda i, b: (b, 0, 0)),
                pl.BlockSpec((None, 1, c), lambda i, b: (b, 0, 0)),
            ],
            out_specs=pl.BlockSpec((1, hw, c), lambda i, b: (i, 0, 0)),
            scratch_shapes=[pltpu.VMEM((rows, c), jnp.float32),
                            pltpu.VMEM((rows, hid), jnp.float32)],
        ),
        compiler_params=pltpu.CompilerParams(
            dimension_semantics=("parallel", "arbitrary")),
        cost_estimate=pl.CostEstimate(
            flops=flops, transcendentals=0, bytes_accessed=bytes_accessed),
    )(xflat, packed["w1"], packed["s1"], packed["b1"],
      packed["w2"], packed["s2"], packed["b2"])

    return jnp.transpose(out.reshape(n, h, w, c), (0, 3, 1, 2))


# ---------------------------------------------------------------------------
# Parameter construction & packing (transposes / bf16 casts hoisted here)
# ---------------------------------------------------------------------------

def conv_weight_to_taps(w_oihw):
    """PyTorch conv weight (Cout, Cin, 3, 3) -> tap-major (9, Cin, Cout) bf16."""
    cout, cin, kh, kw = w_oihw.shape
    taps = jnp.transpose(w_oihw, (2, 3, 1, 0)).reshape(kh * kw, cin, cout)
    return taps.astype(jnp.bfloat16)


def pack_layer_params(params):
    """Stack per-block params into the block-major arrays the kernel expects."""
    return {
        "w1": jnp.stack([conv_weight_to_taps(bp["w1"]) for bp in params]),
        "s1": jnp.stack([bp["s1"] for bp in params]),
        "b1": jnp.stack([bp["b1"] for bp in params]),
        "w2": jnp.stack([conv_weight_to_taps(bp["w2"]) for bp in params]),
        "s2": jnp.stack([bp["s2"] for bp in params]),
        "b2": jnp.stack([bp["b2"] for bp in params]),
    }


def init_conv(key, cout, cin, k=3):
    fan_in = cin * k * k
    return jax.random.normal(key, (cout, cin, k, k), jnp.float32) / jnp.sqrt(fan_in)


def identity_affine(c):
    return jnp.ones((1, c), jnp.float32), jnp.zeros((1, c), jnp.float32)


def batchnorm_eval_affine(key, c, eps=1e-5):
    k1, k2, k3, k4 = jax.random.split(key, 4)
    gamma = 1.0 + 0.2 * jax.random.normal(k1, (c,), jnp.float32)
    beta = 0.1 * jax.random.normal(k2, (c,), jnp.float32)
    mean = 0.1 * jax.random.normal(k3, (c,), jnp.float32)
    var = 1.0 + 0.2 * jax.random.uniform(k4, (c,), jnp.float32)
    scale = gamma / jnp.sqrt(var + eps)
    bias = beta - mean * scale
    return scale.reshape(1, c), bias.reshape(1, c)


def init_resnet_layer(key, in_planes, hid_planes, out_planes, num_blocks):
    # downsample_by=None (ResNetLayer default) -> identity residual path,
    # which requires in_planes == out_planes (as in the PyTorch module).
    assert in_planes == out_planes
    params = []
    for i in range(num_blocks):
        key, k1, k2, k3 = jax.random.split(key, 4)
        cin = in_planes if i == 0 else out_planes
        w1 = init_conv(k1, hid_planes, cin)         # (hid, cin, 3, 3)
        w2 = init_conv(k2, out_planes, hid_planes)  # (out, hid, 3, 3)
        if i == 0:
            # First block inherits ResNetLayer's default norm = Identity.
            s1, b1 = identity_affine(hid_planes)
            s2, b2 = identity_affine(out_planes)
        else:
            # Remaining blocks use ResNetBasicBlock's default BatchNorm2d
            # (eval mode, folded into per-channel scale/bias).
            ka, kb = jax.random.split(k3)
            s1, b1 = batchnorm_eval_affine(ka, hid_planes)
            s2, b2 = batchnorm_eval_affine(kb, out_planes)
        params.append({"w1": w1, "s1": s1, "b1": b1,
                       "w2": w2, "s2": s2, "b2": b2})
    return params


# ---------------------------------------------------------------------------
# Pure-JAX reference for validation
# ---------------------------------------------------------------------------

def _ref_conv3x3(x_nhwc, w_oihw):
    return jax.lax.conv_general_dilated(
        x_nhwc, jnp.transpose(w_oihw, (2, 3, 1, 0)),
        window_strides=(1, 1), padding=((1, 1), (1, 1)),
        dimension_numbers=("NHWC", "HWIO", "NHWC"),
        precision=jax.lax.Precision.HIGHEST)


def ref_resnet_layer(x_nchw, params):
    x = jnp.transpose(x_nchw, (0, 2, 3, 1))
    for bp in params:
        y = _ref_conv3x3(x, bp["w1"]) * bp["s1"].reshape(1, 1, 1, -1) \
            + bp["b1"].reshape(1, 1, 1, -1)
        y = jnp.maximum(y, 0.0)
        z = _ref_conv3x3(y, bp["w2"]) * bp["s2"].reshape(1, 1, 1, -1) \
            + bp["b2"].reshape(1, 1, 1, -1)
        x = jnp.maximum(z + x, 0.0)
    return jnp.transpose(x, (0, 3, 1, 2))


if __name__ == "__main__":
    key = jax.random.PRNGKey(0)
    kx, kp = jax.random.split(key)

    N, C, H, W = 2, 32, 16, 16        # NCHW, matching the PyTorch module
    HID, NUM_BLOCKS = 32, 2

    x = jax.random.normal(kx, (N, C, H, W), jnp.float32)
    params = init_resnet_layer(kp, C, HID, C, NUM_BLOCKS)
    packed = pack_layer_params(params)   # hoisted transposes / bf16 casts

    out = jax.jit(resnet_layer_fused)(x, packed)
    out = jax.block_until_ready(out)
    assert out.shape == (N, C, H, W)

    ref = ref_resnet_layer(x, params)
    if not bool(jnp.allclose(out, ref, rtol=2e-2, atol=2e-2)):
        raise AssertionError(
            "mismatch vs reference, max abs err = "
            f"{float(jnp.max(jnp.abs(out - ref)))}")

    print("KERNEL_OK")
</pallas_src>

<mosaic_0001>
module attributes {stable_mosaic.version = 11 : i64} {
  func.func @_fused_layer_kernel(%arg0: i32, %arg1: i32, %arg2: memref<1x290x32xf32, #tpu.memory_space<vmem>>, %arg3: memref<1x9x32x32xbf16, #tpu.memory_space<vmem>>, %arg4: memref<1x1x32xf32, #tpu.memory_space<vmem>>, %arg5: memref<1x1x32xf32, #tpu.memory_space<vmem>>, %arg6: memref<1x9x32x32xbf16, #tpu.memory_space<vmem>>, %arg7: memref<1x1x32xf32, #tpu.memory_space<vmem>>, %arg8: memref<1x1x32xf32, #tpu.memory_space<vmem>>, %arg9: memref<1x256x32xf32, #tpu.memory_space<vmem>>, %arg10: memref<290x32xf32, #tpu.memory_space<vmem>>, %arg11: memref<290x32xf32, #tpu.memory_space<vmem>>) attributes {dimension_semantics = [#tpu.dimension_semantics<parallel>, #tpu.dimension_semantics<arbitrary>], iteration_bounds = array<i64: 2, 2>, scalar_prefetch = 0 : i64, scratch_operands = 2 : i64, tpu.core_type = #tpu.core_type<tc>, window_params = [{transform_indices = @transform_0, window_bounds = array<i64: 1, 290, 32>}, {transform_indices = @transform_1, window_bounds = array<i64: 1, 9, 32, 32>}, {transform_indices = @transform_2, window_bounds = array<i64: 1, 1, 32>}, {transform_indices = @transform_3, window_bounds = array<i64: 1, 1, 32>}, {transform_indices = @transform_4, window_bounds = array<i64: 1, 9, 32, 32>}, {transform_indices = @transform_5, window_bounds = array<i64: 1, 1, 32>}, {transform_indices = @transform_6, window_bounds = array<i64: 1, 1, 32>}, {transform_indices = @transform_7, window_bounds = array<i64: 1, 256, 32>}]} {
    %c0_i32 = arith.constant 0 : i32
    %0 = arith.cmpi eq, %arg1, %c0_i32 : i32
    %1 = arith.extui %0 : i1 to i32
    %c0_i32_0 = arith.constant 0 : i32
    %2 = arith.cmpi ne, %1, %c0_i32_0 : i32
    scf.if %2 {
      %c0_152 = arith.constant 0 : index
      %c0_153 = arith.constant 0 : index
      %c0_154 = arith.constant 0 : index
      %209 = vector.load %arg2[%c0_152, %c0_153, %c0_154] : memref<1x290x32xf32, #tpu.memory_space<vmem>>, vector<1x290x32xf32>
      %210 = vector.shape_cast %209 : vector<1x290x32xf32> to vector<290x32xf32>
      %c0_155 = arith.constant 0 : index
      %c0_156 = arith.constant 0 : index
      %211 = vector.load %arg10[%c0_155, %c0_156] : memref<290x32xf32, #tpu.memory_space<vmem>>, vector<290x32xf32>
      tpu.vector_store %arg10[%c0_155, %c0_156], %210 {strides = array<i32>} : memref<290x32xf32, #tpu.memory_space<vmem>>, vector<290x32xf32>,
      %cst_157 = arith.constant 0.000000e+00 : f32
      %212 = vector.broadcast %cst_157 : f32 to vector<290x32xf32>
      %c0_158 = arith.constant 0 : index
      %c0_159 = arith.constant 0 : index
      %213 = vector.load %arg11[%c0_158, %c0_159] : memref<290x32xf32, #tpu.memory_space<vmem>>, vector<290x32xf32>
      tpu.vector_store %arg11[%c0_158, %c0_159], %212 {strides = array<i32>} : memref<290x32xf32, #tpu.memory_space<vmem>>, vector<290x32xf32>,
    } else {
    }
    %3 = tpu.iota {dimensions = array<i32: 0>} : vector<256x1xi32>
    %c16_i32 = arith.constant 16 : i32
    %c0_i32_1 = arith.constant 0 : i32
    %4 = arith.cmpi eq, %c16_i32, %c0_i32_1 : i32
    %c1_i32 = arith.constant 1 : i32
    %5 = arith.select %4, %c1_i32, %c16_i32 : i32
    %6 = vector.broadcast %5 : i32 to vector<256x1xi32>
    %7 = arith.remsi %3, %6 : vector<256x1xi32>
    %c0_i32_2 = arith.constant 0 : i32
    %8 = vector.broadcast %c0_i32_2 : i32 to vector<256x1xi32>
    %9 = arith.cmpi ne, %7, %8 : vector<256x1xi32>
    %c0_i32_3 = arith.constant 0 : i32
    %10 = vector.broadcast %c0_i32_3 : i32 to vector<256x1xi32>
    %11 = arith.cmpi slt, %7, %10 : vector<256x1xi32>
    %c0_i32_4 = arith.constant 0 : i32
    %12 = arith.cmpi slt, %5, %c0_i32_4 : i32
    %13 = vector.broadcast %12 : i1 to vector<256x1xi1>
    %14 = vector.broadcast %13 : vector<256x1xi1> to vector<256x1xi1>
    %15 = arith.xori %11, %14 : vector<256x1xi1>
    %16 = arith.andi %15, %9 : vector<256x1xi1>
    %17 = vector.broadcast %5 : i32 to vector<256x1xi32>
    %18 = arith.addi %7, %17 : vector<256x1xi32>
    %19 = arith.select %16, %18, %7 : vector<256x1xi1>, vector<256x1xi32>
    %c1_i32_5 = arith.constant 1 : i32
    %20 = vector.broadcast %c1_i32_5 : i32 to vector<256x1xi32>
    %21 = arith.cmpi sge, %19, %20 : vector<256x1xi32>
    %c14_i32 = arith.constant 14 : i32
    %22 = vector.broadcast %c14_i32 : i32 to vector<256x1xi32>
    %23 = arith.cmpi sle, %19, %22 : vector<256x1xi32>
    %cst = arith.constant 0.000000e+00 : f32
    %24 = vector.broadcast %cst : f32 to vector<256x32xf32>
    %c0 = arith.constant 0 : index
    %c0_6 = arith.constant 0 : index
    %25 = vector.load %arg10[%c0, %c0_6] : memref<290x32xf32, #tpu.memory_space<vmem>>, vector<256x32xf32>
    %26 = arith.truncf %25 : vector<256x32xf32> to vector<256x32xbf16>
    %c0_7 = arith.constant 0 : index
    %c0_8 = arith.constant 0 : index
    %c0_9 = arith.constant 0 : index
    %c0_10 = arith.constant 0 : index
    %27 = vector.load %arg3[%c0_7, %c0_8, %c0_9, %c0_10] : memref<1x9x32x32xbf16, #tpu.memory_space<vmem>>, vector<1x1x32x32xbf16>
    %28 = vector.shape_cast %27 : vector<1x1x32x32xbf16> to vector<32x32xbf16>
    %cst_11 = arith.constant dense<0.000000e+00> : vector<256x32xf32>
    %29 = tpu.matmul %26, %28, %cst_11 {dimension_numbers = #tpu.dot_dimension_numbers<[1], [0], [0], [1], [0, 0, 1, 1], [], []>} : vector<256x32xbf16>, vector<32x32xbf16>, vector<256x32xf32> -> vector<256x32xf32>
    %cst_12 = arith.constant 0.000000e+00 : f32
    %30 = vector.shape_cast %21 : vector<256x1xi1> to vector<256x1xi1>
    %31 = vector.broadcast %30 : vector<256x1xi1> to vector<256x32xi1>
    %32 = vector.broadcast %cst_12 : f32 to vector<256x32xf32>
    %33 = arith.select %31, %29, %32 : vector<256x32xi1>, vector<256x32xf32>
    %34 = arith.addf %24, %33 : vector<256x32xf32>
    %c1 = arith.constant 1 : index
    %c0_13 = arith.constant 0 : index
    %35 = vector.load %arg10[%c1, %c0_13] : memref<290x32xf32, #tpu.memory_space<vmem>>, vector<256x32xf32>
    %36 = arith.truncf %35 : vector<256x32xf32> to vector<256x32xbf16>
    %c0_14 = arith.constant 0 : index
    %c1_15 = arith.constant 1 : index
    %c0_16 = arith.constant 0 : index
    %c0_17 = arith.constant 0 : index
    %37 = vector.load %arg3[%c0_14, %c1_15, %c0_16, %c0_17] : memref<1x9x32x32xbf16, #tpu.memory_space<vmem>>, vector<1x1x32x32xbf16>
    %38 = vector.shape_cast %37 : vector<1x1x32x32xbf16> to vector<32x32xbf16>
    %cst_18 = arith.constant dense<0.000000e+00> : vector<256x32xf32>
    %39 = tpu.matmul %36, %38, %cst_18 {dimension_numbers = #tpu.dot_dimension_numbers<[1], [0], [0], [1], [0, 0, 1, 1], [], []>} : vector<256x32xbf16>, vector<32x32xbf16>, vector<256x32xf32> -> vector<256x32xf32>
    %40 = arith.addf %34, %39 : vector<256x32xf32>
    %c2 = arith.constant 2 : index
    %c0_19 = arith.constant 0 : index
    %41 = vector.load %arg10[%c2, %c0_19] : memref<290x32xf32, #tpu.memory_space<vmem>>, vector<256x32xf32>
    %42 = arith.truncf %41 : vector<256x32xf32> to vector<256x32xbf16>
    %c0_20 = arith.constant 0 : index
    %c2_21 = arith.constant 2 : index
    %c0_22 = arith.constant 0 : index
    %c0_23 = arith.constant 0 : index
    %43 = vector.load %arg3[%c0_20, %c2_21, %c0_22, %c0_23] : memref<1x9x32x32xbf16, #tpu.memory_space<vmem>>, vector<1x1x32x32xbf16>
    %44 = vector.shape_cast %43 : vector<1x1x32x32xbf16> to vector<32x32xbf16>
    %cst_24 = arith.constant dense<0.000000e+00> : vector<256x32xf32>
    %45 = tpu.matmul %42, %44, %cst_24 {dimension_numbers = #tpu.dot_dimension_numbers<[1], [0], [0], [1], [0, 0, 1, 1], [], []>} : vector<256x32xbf16>, vector<32x32xbf16>, vector<256x32xf32> -> vector<256x32xf32>
    %cst_25 = arith.constant 0.000000e+00 : f32
    %46 = vector.shape_cast %23 : vector<256x1xi1> to vector<256x1xi1>
    %47 = vector.broadcast %46 : vector<256x1xi1> to vector<256x32xi1>
    %48 = vector.broadcast %cst_25 : f32 to vector<256x32xf32>
    %49 = arith.select %47, %45, %48 : vector<256x32xi1>, vector<256x32xf32>
    %50 = arith.addf %40, %49 : vector<256x32xf32>
    %c16 = arith.constant 16 : index
    %c0_26 = arith.constant 0 : index
    %51 = vector.load %arg10[%c16, %c0_26] : memref<290x32xf32, #tpu.memory_space<vmem>>, vector<256x32xf32>
    %52 = arith.truncf %51 : vector<256x32xf32> to vector<256x32xbf16>
    %c0_27 = arith.constant 0 : index
    %c3 = arith.constant 3 : index
    %c0_28 = arith.constant 0 : index
    %c0_29 = arith.constant 0 : index
    %53 = vector.load %arg3[%c0_27, %c3, %c0_28, %c0_29] : memref<1x9x32x32xbf16, #tpu.memory_space<vmem>>, vector<1x1x32x32xbf16>
    %54 = vector.shape_cast %53 : vector<1x1x32x32xbf16> to vector<32x32xbf16>
    %cst_30 = arith.constant dense<0.000000e+00> : vector<256x32xf32>
    %55 = tpu.matmul %52, %54, %cst_30 {dimension_numbers = #tpu.dot_dimension_numbers<[1], [0], [0], [1], [0, 0, 1, 1], [], []>} : vector<256x32xbf16>, vector<32x32xbf16>, vector<256x32xf32> -> vector<256x32xf32>
    %cst_31 = arith.constant 0.000000e+00 : f32
    %56 = vector.shape_cast %21 : vector<256x1xi1> to vector<256x1xi1>
    %57 = vector.broadcast %56 : vector<256x1xi1> to vector<256x32xi1>
    %58 = vector.broadcast %cst_31 : f32 to vector<256x32xf32>
    %59 = arith.select %57, %55, %58 : vector<256x32xi1>, vector<256x32xf32>
    %60 = arith.addf %50, %59 : vector<256x32xf32>
    %c17 = arith.constant 17 : index
    %c0_32 = arith.constant 0 : index
    %61 = vector.load %arg10[%c17, %c0_32] : memref<290x32xf32, #tpu.memory_space<vmem>>, vector<256x32xf32>
    %62 = arith.truncf %61 : vector<256x32xf32> to vector<256x32xbf16>
    %c0_33 = arith.constant 0 : index
    %c4 = arith.constant 4 : index
    %c0_34 = arith.constant 0 : index
    %c0_35 = arith.constant 0 : index
    %63 = vector.load %arg3[%c0_33, %c4, %c0_34, %c0_35] : memref<1x9x32x32xbf16, #tpu.memory_space<vmem>>, vector<1x1x32x32xbf16>
    %64 = vector.shape_cast %63 : vector<1x1x32x32xbf16> to vector<32x32xbf16>
    %cst_36 = arith.constant dense<0.000000e+00> : vector<256x32xf32>
    %65 = tpu.matmul %62, %64, %cst_36 {dimension_numbers = #tpu.dot_dimension_numbers<[1], [0], [0], [1], [0, 0, 1, 1], [], []>} : vector<256x32xbf16>, vector<32x32xbf16>, vector<256x32xf32> -> vector<256x32xf32>
    %66 = arith.addf %60, %65 : vector<256x32xf32>
    %c18 = arith.constant 18 : index
    %c0_37 = arith.constant 0 : index
    %67 = vector.load %arg10[%c18, %c0_37] : memref<290x32xf32, #tpu.memory_space<vmem>>, vector<256x32xf32>
    %68 = arith.truncf %67 : vector<256x32xf32> to vector<256x32xbf16>
    %c0_38 = arith.constant 0 : index
    %c5 = arith.constant 5 : index
    %c0_39 = arith.constant 0 : index
    %c0_40 = arith.constant 0 : index
    %69 = vector.load %arg3[%c0_38, %c5, %c0_39, %c0_40] : memref<1x9x32x32xbf16, #tpu.memory_space<vmem>>, vector<1x1x32x32xbf16>
    %70 = vector.shape_cast %69 : vector<1x1x32x32xbf16> to vector<32x32xbf16>
    %cst_41 = arith.constant dense<0.000000e+00> : vector<256x32xf32>
    %71 = tpu.matmul %68, %70, %cst_41 {dimension_numbers = #tpu.dot_dimension_numbers<[1], [0], [0], [1], [0, 0, 1, 1], [], []>} : vector<256x32xbf16>, vector<32x32xbf16>, vector<256x32xf32> -> vector<256x32xf32>
    %cst_42 = arith.constant 0.000000e+00 : f32
    %72 = vector.shape_cast %23 : vector<256x1xi1> to vector<256x1xi1>
    %73 = vector.broadcast %72 : vector<256x1xi1> to vector<256x32xi1>
    %74 = vector.broadcast %cst_42 : f32 to vector<256x32xf32>
    %75 = arith.select %73, %71, %74 : vector<256x32xi1>, vector<256x32xf32>
    %76 = arith.addf %66, %75 : vector<256x32xf32>
    %c32 = arith.constant 32 : index
    %c0_43 = arith.constant 0 : index
    %77 = vector.load %arg10[%c32, %c0_43] : memref<290x32xf32, #tpu.memory_space<vmem>>, vector<256x32xf32>
    %78 = arith.truncf %77 : vector<256x32xf32> to vector<256x32xbf16>
    %c0_44 = arith.constant 0 : index
    %c6 = arith.constant 6 : index
    %c0_45 = arith.constant 0 : index
    %c0_46 = arith.constant 0 : index
    %79 = vector.load %arg3[%c0_44, %c6, %c0_45, %c0_46] : memref<1x9x32x32xbf16, #tpu.memory_space<vmem>>, vector<1x1x32x32xbf16>
    %80 = vector.shape_cast %79 : vector<1x1x32x32xbf16> to vector<32x32xbf16>
    %cst_47 = arith.constant dense<0.000000e+00> : vector<256x32xf32>
    %81 = tpu.matmul %78, %80, %cst_47 {dimension_numbers = #tpu.dot_dimension_numbers<[1], [0], [0], [1], [0, 0, 1, 1], [], []>} : vector<256x32xbf16>, vector<32x32xbf16>, vector<256x32xf32> -> vector<256x32xf32>
    %cst_48 = arith.constant 0.000000e+00 : f32
    %82 = vector.shape_cast %21 : vector<256x1xi1> to vector<256x1xi1>
    %83 = vector.broadcast %82 : vector<256x1xi1> to vector<256x32xi1>
    %84 = vector.broadcast %cst_48 : f32 to vector<256x32xf32>
    %85 = arith.select %83, %81, %84 : vector<256x32xi1>, vector<256x32xf32>
    %86 = arith.addf %76, %85 : vector<256x32xf32>
    %c33 = arith.constant 33 : index
    %c0_49 = arith.constant 0 : index
    %87 = vector.load %arg10[%c33, %c0_49] : memref<290x32xf32, #tpu.memory_space<vmem>>, vector<256x32xf32>
    %88 = arith.truncf %87 : vector<256x32xf32> to vector<256x32xbf16>
    %c0_50 = arith.constant 0 : index
    %c7 = arith.constant 7 : index
    %c0_51 = arith.constant 0 : index
    %c0_52 = arith.constant 0 : index
    %89 = vector.load %arg3[%c0_50, %c7, %c0_51, %c0_52] : memref<1x9x32x32xbf16, #tpu.memory_space<vmem>>, vector<1x1x32x32xbf16>
    %90 = vector.shape_cast %89 : vector<1x1x32x32xbf16> to vector<32x32xbf16>
    %cst_53 = arith.constant dense<0.000000e+00> : vector<256x32xf32>
    %91 = tpu.matmul %88, %90, %cst_53 {dimension_numbers = #tpu.dot_dimension_numbers<[1], [0], [0], [1], [0, 0, 1, 1], [], []>} : vector<256x32xbf16>, vector<32x32xbf16>, vector<256x32xf32> -> vector<256x32xf32>
    %92 = arith.addf %86, %91 : vector<256x32xf32>
    %c34 = arith.constant 34 : index
    %c0_54 = arith.constant 0 : index
    %93 = vector.load %arg10[%c34, %c0_54] : memref<290x32xf32, #tpu.memory_space<vmem>>, vector<256x32xf32>
    %94 = arith.truncf %93 : vector<256x32xf32> to vector<256x32xbf16>
    %c0_55 = arith.constant 0 : index
    %c8 = arith.constant 8 : index
    %c0_56 = arith.constant 0 : index
    %c0_57 = arith.constant 0 : index
    %95 = vector.load %arg3[%c0_55, %c8, %c0_56, %c0_57] : memref<1x9x32x32xbf16, #tpu.memory_space<vmem>>, vector<1x1x32x32xbf16>
    %96 = vector.shape_cast %95 : vector<1x1x32x32xbf16> to vector<32x32xbf16>
    %cst_58 = arith.constant dense<0.000000e+00> : vector<256x32xf32>
    %97 = tpu.matmul %94, %96, %cst_58 {dimension_numbers = #tpu.dot_dimension_numbers<[1], [0], [0], [1], [0, 0, 1, 1], [], []>} : vector<256x32xbf16>, vector<32x32xbf16>, vector<256x32xf32> -> vector<256x32xf32>
    %cst_59 = arith.constant 0.000000e+00 : f32
    %98 = vector.shape_cast %23 : vector<256x1xi1> to vector<256x1xi1>
    %99 = vector.broadcast %98 : vector<256x1xi1> to vector<256x32xi1>
    %100 = vector.broadcast %cst_59 : f32 to vector<256x32xf32>
    %101 = arith.select %99, %97, %100 : vector<256x32xi1>, vector<256x32xf32>
    %102 = arith.addf %92, %101 : vector<256x32xf32>
    %c0_60 = arith.constant 0 : index
    %c0_61 = arith.constant 0 : index
    %c0_62 = arith.constant 0 : index
    %103 = vector.load %arg4[%c0_60, %c0_61, %c0_62] : memref<1x1x32xf32, #tpu.memory_space<vmem>>, vector<1x1x32xf32>
    %104 = vector.shape_cast %103 : vector<1x1x32xf32> to vector<1x32xf32>
    %105 = vector.broadcast %104 : vector<1x32xf32> to vector<256x32xf32>
    %106 = arith.mulf %102, %105 : vector<256x32xf32>
    %c0_63 = arith.constant 0 : index
    %c0_64 = arith.constant 0 : index
    %c0_65 = arith.constant 0 : index
    %107 = vector.load %arg5[%c0_63, %c0_64, %c0_65] : memref<1x1x32xf32, #tpu.memory_space<vmem>>, vector<1x1x32xf32>
    %108 = vector.shape_cast %107 : vector<1x1x32xf32> to vector<1x32xf32>
    %109 = vector.broadcast %108 : vector<1x32xf32> to vector<256x32xf32>
    %110 = arith.addf %106, %109 : vector<256x32xf32>
    %cst_66 = arith.constant 0.000000e+00 : f32
    %111 = vector.broadcast %cst_66 : f32 to vector<256x32xf32>
    %112 = arith.maximumf %110, %111 : vector<256x32xf32>
    %c17_67 = arith.constant 17 : index
    %c0_68 = arith.constant 0 : index
    %113 = vector.load %arg11[%c17_67, %c0_68] : memref<290x32xf32, #tpu.memory_space<vmem>>, vector<256x32xf32>
    tpu.vector_store %arg11[%c17_67, %c0_68], %112 {strides = array<i32>} : memref<290x32xf32, #tpu.memory_space<vmem>>, vector<256x32xf32>,
    %cst_69 = arith.constant 0.000000e+00 : f32
    %114 = vector.broadcast %cst_69 : f32 to vector<256x32xf32>
    %c0_70 = arith.constant 0 : index
    %c0_71 = arith.constant 0 : index
    %115 = vector.load %arg11[%c0_70, %c0_71] : memref<290x32xf32, #tpu.memory_space<vmem>>, vector<256x32xf32>
    %116 = arith.truncf %115 : vector<256x32xf32> to vector<256x32xbf16>
    %c0_72 = arith.constant 0 : index
    %c0_73 = arith.constant 0 : index
    %c0_74 = arith.constant 0 : index
    %c0_75 = arith.constant 0 : index
    %117 = vector.load %arg6[%c0_72, %c0_73, %c0_74, %c0_75] : memref<1x9x32x32xbf16, #tpu.memory_space<vmem>>, vector<1x1x32x32xbf16>
    %118 = vector.shape_cast %117 : vector<1x1x32x32xbf16> to vector<32x32xbf16>
    %cst_76 = arith.constant dense<0.000000e+00> : vector<256x32xf32>
    %119 = tpu.matmul %116, %118, %cst_76 {dimension_numbers = #tpu.dot_dimension_numbers<[1], [0], [0], [1], [0, 0, 1, 1], [], []>} : vector<256x32xbf16>, vector<32x32xbf16>, vector<256x32xf32> -> vector<256x32xf32>
    %cst_77 = arith.constant 0.000000e+00 : f32
    %120 = vector.shape_cast %21 : vector<256x1xi1> to vector<256x1xi1>
    %121 = vector.broadcast %120 : vector<256x1xi1> to vector<256x32xi1>
    %122 = vector.broadcast %cst_77 : f32 to vector<256x32xf32>
    %123 = arith.select %121, %119, %122 : vector<256x32xi1>, vector<256x32xf32>
    %124 = arith.addf %114, %123 : vector<256x32xf32>
    %c1_78 = arith.constant 1 : index
    %c0_79 = arith.constant 0 : index
    %125 = vector.load %arg11[%c1_78, %c0_79] : memref<290x32xf32, #tpu.memory_space<vmem>>, vector<256x32xf32>
    %126 = arith.truncf %125 : vector<256x32xf32> to vector<256x32xbf16>
    %c0_80 = arith.constant 0 : index
    %c1_81 = arith.constant 1 : index
    %c0_82 = arith.constant 0 : index
    %c0_83 = arith.constant 0 : index
    %127 = vector.load %arg6[%c0_80, %c1_81, %c0_82, %c0_83] : memref<1x9x32x32xbf16, #tpu.memory_space<vmem>>, vector<1x1x32x32xbf16>
    %128 = vector.shape_cast %127 : vector<1x1x32x32xbf16> to vector<32x32xbf16>
    %cst_84 = arith.constant dense<0.000000e+00> : vector<256x32xf32>
    %129 = tpu.matmul %126, %128, %cst_84 {dimension_numbers = #tpu.dot_dimension_numbers<[1], [0], [0], [1], [0, 0, 1, 1], [], []>} : vector<256x32xbf16>, vector<32x32xbf16>, vector<256x32xf32> -> vector<256x32xf32>
    %130 = arith.addf %124, %129 : vector<256x32xf32>
    %c2_85 = arith.constant 2 : index
    %c0_86 = arith.constant 0 : index
    %131 = vector.load %arg11[%c2_85, %c0_86] : memref<290x32xf32, #tpu.memory_space<vmem>>, vector<256x32xf32>
    %132 = arith.truncf %131 : vector<256x32xf32> to vector<256x32xbf16>
    %c0_87 = arith.constant 0 : index
    %c2_88 = arith.constant 2 : index
    %c0_89 = arith.constant 0 : index
    %c0_90 = arith.constant 0 : index
    %133 = vector.load %arg6[%c0_87, %c2_88, %c0_89, %c0_90] : memref<1x9x32x32xbf16, #tpu.memory_space<vmem>>, vector<1x1x32x32xbf16>
    %134 = vector.shape_cast %133 : vector<1x1x32x32xbf16> to vector<32x32xbf16>
    %cst_91 = arith.constant dense<0.000000e+00> : vector<256x32xf32>
    %135 = tpu.matmul %132, %134, %cst_91 {dimension_numbers = #tpu.dot_dimension_numbers<[1], [0], [0], [1], [0, 0, 1, 1], [], []>} : vector<256x32xbf16>, vector<32x32xbf16>, vector<256x32xf32> -> vector<256x32xf32>
    %cst_92 = arith.constant 0.000000e+00 : f32
    %136 = vector.shape_cast %23 : vector<256x1xi1> to vector<256x1xi1>
    %137 = vector.broadcast %136 : vector<256x1xi1> to vector<256x32xi1>
    %138 = vector.broadcast %cst_92 : f32 to vector<256x32xf32>
    %139 = arith.select %137, %135, %138 : vector<256x32xi1>, vector<256x32xf32>
    %140 = arith.addf %130, %139 : vector<256x32xf32>
    %c16_93 = arith.constant 16 : index
    %c0_94 = arith.constant 0 : index
    %141 = vector.load %arg11[%c16_93, %c0_94] : memref<290x32xf32, #tpu.memory_space<vmem>>, vector<256x32xf32>
    %142 = arith.truncf %141 : vector<256x32xf32> to vector<256x32xbf16>
    %c0_95 = arith.constant 0 : index
    %c3_96 = arith.constant 3 : index
    %c0_97 = arith.constant 0 : index
    %c0_98 = arith.constant 0 : index
    %143 = vector.load %arg6[%c0_95, %c3_96, %c0_97, %c0_98] : memref<1x9x32x32xbf16, #tpu.memory_space<vmem>>, vector<1x1x32x32xbf16>
    %144 = vector.shape_cast %143 : vector<1x1x32x32xbf16> to vector<32x32xbf16>
    %cst_99 = arith.constant dense<0.000000e+00> : vector<256x32xf32>
    %145 = tpu.matmul %142, %144, %cst_99 {dimension_numbers = #tpu.dot_dimension_numbers<[1], [0], [0], [1], [0, 0, 1, 1], [], []>} : vector<256x32xbf16>, vector<32x32xbf16>, vector<256x32xf32> -> vector<256x32xf32>
    %cst_100 = arith.constant 0.000000e+00 : f32
    %146 = vector.shape_cast %21 : vector<256x1xi1> to vector<256x1xi1>
    %147 = vector.broadcast %146 : vector<256x1xi1> to vector<256x32xi1>
    %148 = vector.broadcast %cst_100 : f32 to vector<256x32xf32>
    %149 = arith.select %147, %145, %148 : vector<256x32xi1>, vector<256x32xf32>
    %150 = arith.addf %140, %149 : vector<256x32xf32>
    %c17_101 = arith.constant 17 : index
    %c0_102 = arith.constant 0 : index
    %151 = vector.load %arg11[%c17_101, %c0_102] : memref<290x32xf32, #tpu.memory_space<vmem>>, vector<256x32xf32>
    %152 = arith.truncf %151 : vector<256x32xf32> to vector<256x32xbf16>
    %c0_103 = arith.constant 0 : index
    %c4_104 = arith.constant 4 : index
    %c0_105 = arith.constant 0 : index
    %c0_106 = arith.constant 0 : index
    %153 = vector.load %arg6[%c0_103, %c4_104, %c0_105, %c0_106] : memref<1x9x32x32xbf16, #tpu.memory_space<vmem>>, vector<1x1x32x32xbf16>
    %154 = vector.shape_cast %153 : vector<1x1x32x32xbf16> to vector<32x32xbf16>
    %cst_107 = arith.constant dense<0.000000e+00> : vector<256x32xf32>
    %155 = tpu.matmul %152, %154, %cst_107 {dimension_numbers = #tpu.dot_dimension_numbers<[1], [0], [0], [1], [0, 0, 1, 1], [], []>} : vector<256x32xbf16>, vector<32x32xbf16>, vector<256x32xf32> -> vector<256x32xf32>
    %156 = arith.addf %150, %155 : vector<256x32xf32>
    %c18_108 = arith.constant 18 : index
    %c0_109 = arith.constant 0 : index
    %157 = vector.load %arg11[%c18_108, %c0_109] : memref<290x32xf32, #tpu.memory_space<vmem>>, vector<256x32xf32>
    %158 = arith.truncf %157 : vector<256x32xf32> to vector<256x32xbf16>
    %c0_110 = arith.constant 0 : index
    %c5_111 = arith.constant 5 : index
    %c0_112 = arith.constant 0 : index
    %c0_113 = arith.constant 0 : index
    %159 = vector.load %arg6[%c0_110, %c5_111, %c0_112, %c0_113] : memref<1x9x32x32xbf16, #tpu.memory_space<vmem>>, vector<1x1x32x32xbf16>
    %160 = vector.shape_cast %159 : vector<1x1x32x32xbf16> to vector<32x32xbf16>
    %cst_114 = arith.constant dense<0.000000e+00> : vector<256x32xf32>
    %161 = tpu.matmul %158, %160, %cst_114 {dimension_numbers = #tpu.dot_dimension_numbers<[1], [0], [0], [1], [0, 0, 1, 1], [], []>} : vector<256x32xbf16>, vector<32x32xbf16>, vector<256x32xf32> -> vector<256x32xf32>
    %cst_115 = arith.constant 0.000000e+00 : f32
    %162 = vector.shape_cast %23 : vector<256x1xi1> to vector<256x1xi1>
    %163 = vector.broadcast %162 : vector<256x1xi1> to vector<256x32xi1>
    %164 = vector.broadcast %cst_115 : f32 to vector<256x32xf32>
    %165 = arith.select %163, %161, %164 : vector<256x32xi1>, vector<256x32xf32>
    %166 = arith.addf %156, %165 : vector<256x32xf32>
    %c32_116 = arith.constant 32 : index
    %c0_117 = arith.constant 0 : index
    %167 = vector.load %arg11[%c32_116, %c0_117] : memref<290x32xf32, #tpu.memory_space<vmem>>, vector<256x32xf32>
    %168 = arith.truncf %167 : vector<256x32xf32> to vector<256x32xbf16>
    %c0_118 = arith.constant 0 : index
    %c6_119 = arith.constant 6 : index
    %c0_120 = arith.constant 0 : index
    %c0_121 = arith.constant 0 : index
    %169 = vector.load %arg6[%c0_118, %c6_119, %c0_120, %c0_121] : memref<1x9x32x32xbf16, #tpu.memory_space<vmem>>, vector<1x1x32x32xbf16>
    %170 = vector.shape_cast %169 : vector<1x1x32x32xbf16> to vector<32x32xbf16>
    %cst_122 = arith.constant dense<0.000000e+00> : vector<256x32xf32>
    %171 = tpu.matmul %168, %170, %cst_122 {dimension_numbers = #tpu.dot_dimension_numbers<[1], [0], [0], [1], [0, 0, 1, 1], [], []>} : vector<256x32xbf16>, vector<32x32xbf16>, vector<256x32xf32> -> vector<256x32xf32>
    %cst_123 = arith.constant 0.000000e+00 : f32
    %172 = vector.shape_cast %21 : vector<256x1xi1> to vector<256x1xi1>
    %173 = vector.broadcast %172 : vector<256x1xi1> to vector<256x32xi1>
    %174 = vector.broadcast %cst_123 : f32 to vector<256x32xf32>
    %175 = arith.select %173, %171, %174 : vector<256x32xi1>, vector<256x32xf32>
    %176 = arith.addf %166, %175 : vector<256x32xf32>
    %c33_124 = arith.constant 33 : index
    %c0_125 = arith.constant 0 : index
    %177 = vector.load %arg11[%c33_124, %c0_125] : memref<290x32xf32, #tpu.memory_space<vmem>>, vector<256x32xf32>
    %178 = arith.truncf %177 : vector<256x32xf32> to vector<256x32xbf16>
    %c0_126 = arith.constant 0 : index
    %c7_127 = arith.constant 7 : index
    %c0_128 = arith.constant 0 : index
    %c0_129 = arith.constant 0 : index
    %179 = vector.load %arg6[%c0_126, %c7_127, %c0_128, %c0_129] : memref<1x9x32x32xbf16, #tpu.memory_space<vmem>>, vector<1x1x32x32xbf16>
    %180 = vector.shape_cast %179 : vector<1x1x32x32xbf16> to vector<32x32xbf16>
    %cst_130 = arith.constant dense<0.000000e+00> : vector<256x32xf32>
    %181 = tpu.matmul %178, %180, %cst_130 {dimension_numbers = #tpu.dot_dimension_numbers<[1], [0], [0], [1], [0, 0, 1, 1], [], []>} : vector<256x32xbf16>, vector<32x32xbf16>, vector<256x32xf32> -> vector<256x32xf32>
    %182 = arith.addf %176, %181 : vector<256x32xf32>
    %c34_131 = arith.constant 34 : index
    %c0_132 = arith.constant 0 : index
    %183 = vector.load %arg11[%c34_131, %c0_132] : memref<290x32xf32, #tpu.memory_space<vmem>>, vector<256x32xf32>
    %184 = arith.truncf %183 : vector<256x32xf32> to vector<256x32xbf16>
    %c0_133 = arith.constant 0 : index
    %c8_134 = arith.constant 8 : index
    %c0_135 = arith.constant 0 : index
    %c0_136 = arith.constant 0 : index
    %185 = vector.load %arg6[%c0_133, %c8_134, %c0_135, %c0_136] : memref<1x9x32x32xbf16, #tpu.memory_space<vmem>>, vector<1x1x32x32xbf16>
    %186 = vector.shape_cast %185 : vector<1x1x32x32xbf16> to vector<32x32xbf16>
    %cst_137 = arith.constant dense<0.000000e+00> : vector<256x32xf32>
    %187 = tpu.matmul %184, %186, %cst_137 {dimension_numbers = #tpu.dot_dimension_numbers<[1], [0], [0], [1], [0, 0, 1, 1], [], []>} : vector<256x32xbf16>, vector<32x32xbf16>, vector<256x32xf32> -> vector<256x32xf32>
    %cst_138 = arith.constant 0.000000e+00 : f32
    %188 = vector.shape_cast %23 : vector<256x1xi1> to vector<256x1xi1>
    %189 = vector.broadcast %188 : vector<256x1xi1> to vector<256x32xi1>
    %190 = vector.broadcast %cst_138 : f32 to vector<256x32xf32>
    %191 = arith.select %189, %187, %190 : vector<256x32xi1>, vector<256x32xf32>
    %192 = arith.addf %182, %191 : vector<256x32xf32>
    %c17_139 = arith.constant 17 : index
    %c0_140 = arith.constant 0 : index
    %193 = vector.load %arg10[%c17_139, %c0_140] : memref<290x32xf32, #tpu.memory_space<vmem>>, vector<256x32xf32>
    %c0_141 = arith.constant 0 : index
    %c0_142 = arith.constant 0 : index
    %c0_143 = arith.constant 0 : index
    %194 = vector.load %arg7[%c0_141, %c0_142, %c0_143] : memref<1x1x32xf32, #tpu.memory_space<vmem>>, vector<1x1x32xf32>
    %195 = vector.shape_cast %194 : vector<1x1x32xf32> to vector<1x32xf32>
    %196 = vector.broadcast %195 : vector<1x32xf32> to vector<256x32xf32>
    %197 = arith.mulf %192, %196 : vector<256x32xf32>
    %c0_144 = arith.constant 0 : index
    %c0_145 = arith.constant 0 : index
    %c0_146 = arith.constant 0 : index
    %198 = vector.load %arg8[%c0_144, %c0_145, %c0_146] : memref<1x1x32xf32, #tpu.memory_space<vmem>>, vector<1x1x32xf32>
    %199 = vector.shape_cast %198 : vector<1x1x32xf32> to vector<1x32xf32>
    %200 = vector.broadcast %199 : vector<1x32xf32> to vector<256x32xf32>
    %201 = arith.addf %197, %200 : vector<256x32xf32>
    %202 = arith.addf %201, %193 : vector<256x32xf32>
    %cst_147 = arith.constant 0.000000e+00 : f32
    %203 = vector.broadcast %cst_147 : f32 to vector<256x32xf32>
    %204 = arith.maximumf %202, %203 : vector<256x32xf32>
    %c17_148 = arith.constant 17 : index
    %c0_149 = arith.constant 0 : index
    %205 = vector.load %arg10[%c17_148, %c0_149] : memref<290x32xf32, #tpu.memory_space<vmem>>, vector<256x32xf32>
    tpu.vector_store %arg10[%c17_148, %c0_149], %204 {strides = array<i32>} : memref<290x32xf32, #tpu.memory_space<vmem>>, vector<256x32xf32>,
    %c1_i32_150 = arith.constant 1 : i32
    %206 = arith.cmpi eq, %arg1, %c1_i32_150 : i32
    %207 = arith.extui %206 : i1 to i32
    %c0_i32_151 = arith.constant 0 : i32
    %208 = arith.cmpi ne, %207, %c0_i32_151 : i32
    scf.if %208 {
      %c0_152 = arith.constant 0 : index
      %c0_153 = arith.constant 0 : index
      %c0_154 = arith.constant 0 : index
      %209 = vector.load %arg9[%c0_152, %c0_153, %c0_154] : memref<1x256x32xf32, #tpu.memory_space<vmem>>, vector<1x256x32xf32>
      %210 = vector.shape_cast %209 : vector<1x256x32xf32> to vector<256x32xf32>
      %211 = vector.shape_cast %204 : vector<256x32xf32> to vector<1x256x32xf32>
      tpu.vector_store %arg9[%c0_152, %c0_153, %c0_154], %211 {strides = array<i32>} : memref<1x256x32xf32, #tpu.memory_space<vmem>>, vector<1x256x32xf32>,
    } else {
    }
    return
  }
  func.func @transform_0(%arg0: i32, %arg1: i32) -> (i32, i32, i32) {
    %c0_i32 = arith.constant 0 : i32
    %c0_i32_0 = arith.constant 0 : i32
    %c0_i32_1 = arith.constant 0 : i32
    return %arg0, %c0_i32, %c0_i32_0 : i32, i32, i32
  }
  func.func @transform_1(%arg0: i32, %arg1: i32) -> (i32, i32, i32, i32) {
    %c0_i32 = arith.constant 0 : i32
    %c0_i32_0 = arith.constant 0 : i32
    %c0_i32_1 = arith.constant 0 : i32
    %c0_i32_2 = arith.constant 0 : i32
    return %arg1, %c0_i32, %c0_i32_0, %c0_i32_1 : i32, i32, i32, i32
  }
  func.func @transform_2(%arg0: i32, %arg1: i32) -> (i32, i32, i32) {
    %c0_i32 = arith.constant 0 : i32
    %c0_i32_0 = arith.constant 0 : i32
    %c0_i32_1 = arith.constant 0 : i32
    return %arg1, %c0_i32, %c0_i32_0 : i32, i32, i32
  }
  func.func @transform_3(%arg0: i32, %arg1: i32) -> (i32, i32, i32) {
    %c0_i32 = arith.constant 0 : i32
    %c0_i32_0 = arith.constant 0 : i32
    %c0_i32_1 = arith.constant 0 : i32
    return %arg1, %c0_i32, %c0_i32_0 : i32, i32, i32
  }
  func.func @transform_4(%arg0: i32, %arg1: i32) -> (i32, i32, i32, i32) {
    %c0_i32 = arith.constant 0 : i32
    %c0_i32_0 = arith.constant 0 : i32
    %c0_i32_1 = arith.constant 0 : i32
    %c0_i32_2 = arith.constant 0 : i32
    return %arg1, %c0_i32, %c0_i32_0, %c0_i32_1 : i32, i32, i32, i32
  }
  func.func @transform_5(%arg0: i32, %arg1: i32) -> (i32, i32, i32) {
    %c0_i32 = arith.constant 0 : i32
    %c0_i32_0 = arith.constant 0 : i32
    %c0_i32_1 = arith.constant 0 : i32
    return %arg1, %c0_i32, %c0_i32_0 : i32, i32, i32
  }
  func.func @transform_6(%arg0: i32, %arg1: i32) -> (i32, i32, i32) {
    %c0_i32 = arith.constant 0 : i32
    %c0_i32_0 = arith.constant 0 : i32
    %c0_i32_1 = arith.constant 0 : i32
    return %arg1, %c0_i32, %c0_i32_0 : i32, i32, i32
  }
  func.func @transform_7(%arg0: i32, %arg1: i32) -> (i32, i32, i32) {
    %c0_i32 = arith.constant 0 : i32
    %c0_i32_0 = arith.constant 0 : i32
    %c0_i32_1 = arith.constant 0 : i32
    return %arg0, %c0_i32, %c0_i32_0 : i32, i32, i32
  }
}

</mosaic_0001>

<bundles_post_ra>
// kernel: resnet_layer_fused.1
= control target key start
LH: loop header
LB: loop body
LE: loop exit
PB: predicated region body
PF: predicated region fallthrough
CT: control target
= control target key end

     0   :  { %12 = vsyncpa [#allocation5], 0  ;;  %s12009_s0 = inlined_call_operand.vmem [shape: f32[2,290,32], index: 0, kind: input, shape index: {}]   ;;  %s12010_s1 = inlined_call_operand.vmem [shape: bf16[2,9,32,32], index: 1, kind: input, shape index: {}]   ;;  %s12011_s2 = inlined_call_operand.vmem [shape: f32[2,1,32], index: 2, kind: input, shape index: {}]   ;;  %s12012_s3 = inlined_call_operand.vmem [shape: f32[2,1,32], index: 3, kind: input, shape index: {}]   ;;  %s12013_s4 = inlined_call_operand.vmem [shape: bf16[2,9,32,32], index: 4, kind: input, shape index: {}]   ;;  %s12014_s5 = inlined_call_operand.vmem [shape: f32[2,1,32], index: 5, kind: input, shape index: {}]   ;;  %s12015_s6 = inlined_call_operand.vmem [shape: f32[2,1,32], index: 6, kind: input, shape index: {}]   ;;  %s12016_s7 = inlined_call_operand.hbm [shape: f32[2,256,32], index: 7, kind: output, shape index: {}]  }
   0x1   :  { %14 = vsyncpa [#allocation5 + $0x1], 0  ;;  %s9167_s24 = smov 0   ;;  %s9169_s25 = smov 0  }
   0x2   :  { %s9171_s26 = smov 0   ;;  %s9173_s27 = smov 0  }
   0x3   :  { %s9175_s28 = smov 0   ;;  %s9177_s29 = smov 0  }
   0x4   :  { %s9179_s30 = smov 0   ;;  %s9181_s8 = smov 0  }
   0x5 LB: > { %12184 = sst [smem:[#allocation7_spill]] %s9093_s24  ;;  %s7534_s9 = sadd.s32 4294967295, %s9121_s8   ;;  %s9121_s8 = sphi %s9181_s8, %s20_s8   ;;  %s9117_s30 = sphi %s9179_s30, %s12673_s30   ;;  %s9113_s29 = sphi %s9177_s29, %s12672_s29   ;;  %s9109_s28 = sphi %s9175_s28, %s12671_s28   ;;  %s9105_s27 = sphi %s9173_s27, %s12670_s27   ;;  %s9101_s26 = sphi %s9171_s26, %s12669_s26   ;;  %s9097_s25 = sphi %s9169_s25, %s12675_s25   ;;  %s9093_s24 = sphi %s9167_s24, %s12674_s24  }
   0x6   : > { %12185 = sst [smem:[#allocation8_spill]] %s9101_s26  ;;  %s7535_s10 = sadd.s32 4294967294, %s9121_s8  }
   0x7   : > { %12186 = sst [smem:[#allocation9_spill]] %s9113_s29  ;;  %s29_s11 = sadd.s32 1, %s9113_s29 }
   0x8   : > { %12187 = sst [smem:[#allocation10_spill]] %s9117_s30  ;;  %p30_p0 = scmp.ge.s32.totalorder %s29_s11, 2 }
   0x9   : > { %12188 = sst [smem:[#allocation11_spill]] %s9121_s8  ;;  %s32_s12 = sadd.s32 1, %s9117_s30 }
   0xa   : > { %p231_p1 = scmp.ne.s32.totalorder %s9101_s26, %s9097_s25  ;;  %p232_p2 = scmp.eq.s32.totalorder %s7534_s9, 3 }
   0xb   : > { %s12677_s11 = smov (%p30_p0, %s29_s11), 0  ;;  %s12679_s12 = smov (!%p30_p0, %s32_s12), %s9117_s30 }
   0xc   : > { %12189 = sst [smem:[#allocation12_spill]] %s12677_s11  ;;  %p9216_p3 = por %p232_p2, %p231_p1 }
   0xd   : > { %p237_p4 = scmp.ne.s32.totalorder %s9097_s25, %s9093_s24  ;;  %p34_p5 = scmp.ge.s32.totalorder %s12679_s12, 2 }
   0xe   : > { %p238_p6 = scmp.eq.s32.totalorder %s7535_s10, 3  ;;  %p7538_p7 = scmp.ge.s32.totalorder %s9121_s8, 1 }
   0xf   : > { %p304_p8 = scmp.lt.s32.totalorder %s9121_s8, 5  ;;  %s12681_s12 = smov (%p34_p5, %s12679_s12), 0 }
  0x10   : > { %12191 = sst [smem:[#allocation13_spill]] %s12681_s12  ;;  %p9226_p9 = por %p238_p6, %p237_p4 }
  0x11   : > { %p305_p10 = pnand %p7538_p7, %p304_p8  ;;  %s218_s15 = ssub.s32 %s9117_s30, %s12681_s12 }
  0x12   : > { %s12192_s14 = scalar_select %p9226_p9, 1, 0 }
  0x13   : > { %s221_s16 = sadd.s32 1, %s9101_s26  ;;  %p219_p11 = scmp.eq.s32.totalorder %s218_s15, 0 }
  0x14   : > { %12193 = sst [smem:[#allocation14_spill]] %s12192_s14  ;;  %308 = sbr.rel (%p305_p10) target bundleno = 1161 (0x489), region = 48 }
  0x15   : > { %s9234_s17 = scalar_select %p219_p11, %s9101_s26, %s221_s16  }
  0x17   : > { %12194 = sst [smem:[#allocation15_spill]] %s9234_s17 }
  0x1b   : > { %s12018_s18 = sand.u32 1, %s9097_s25   ;;  %p358_p12 = scmp.lt.s32.totalorder %s9109_s28, 1 }
  0x1c   : > { %s7539_s19 = sshll.u32 %s12018_s18, 8  ;;  %p363_p13 = scmp.lt.s32.totalorder %s9105_s27, 1 }
  0x1d   : > { %s359_s20 = scalar_select %p358_p12, %s9109_s28, 1 }
  0x1e   : > { %s9243_s21 = scalar_select %p363_p13, %s9105_s27, 1 }
  0x1f   : > { %s8915_s22 = smul.u32 296, %s359_s20  ;;  %s9277_s30 = scalar_lea.vmem [#allocation4], %s7539_s19 }
  0x20   : > { %s8916_s23 = smul.u32 144, %s9243_s21  ;;  %s373_s29 = scalar_lea.vmem %s12012_s3, %s9243_s21 }
  0x21   : > { %s9253_s11 = scalar_lea.vmem %s12009_s0, %s8915_s22  ;;  %s381_s12 = scalar_lea.vmem %s12014_s5, %s9243_s21 }
  0x22   : > { %s9262_s14 = scalar_lea.vmem %s12010_s1, %s8916_s23  ;;  %s9267_s8 = scalar_lea.vmem %s12013_s4, %s8916_s23 }
  0x23   : > { %s384_s15 = scalar_lea.vmem %s12015_s6, %s9243_s21  ;;  %p7543_p0 = scmp.ne.s32.totalorder %s9105_s27, 0 }
  0x24   : > { %v390_v0 = vld [vmem:[%s9253_s11] sm:$0xff] (!%p7543_p0)  ;;  %vm427_vm0 = vcmask (!%p7543_p0), 261120   ;;  %v391_v1 = vld [vmem:[%s9253_s11 + $0x8] sm:$0xff] (!%p7543_p0)  ;;  %v392_v2 = vld [vmem:[%s9253_s11 + $0x10] sm:$0xff] (!%p7543_p0)  ;;  %vm464_vm1 = vcmask (!%p7543_p0), 254976   ;;  %v9123_v6 = vmov (!%p7543_p0), 0.0  }
  0x25   : > { %389 = sbr.rel (%p7543_p0) target bundleno = 74 (0x4a), region = 52  ;;  %428 = vst.msk [vmem:[#allocation2] sm:$0xff] (!%p7543_p0), %vm427_vm0, %v390_v0  ;;  %429 = vst.msk [vmem:[#allocation2 + $0x8] sm:$0xff] (!%p7543_p0), %vm427_vm0, %v391_v1  ;;  %v393_v3 = vld [vmem:[%s9253_s11 + $0x18] sm:$0xff] (!%p7543_p0)  ;;  %v394_v4 = vld [vmem:[%s9253_s11 + $0x20] sm:$0xff] (!%p7543_p0) }
  0x26   : > { %430 = vst.msk [vmem:[#allocation2 + $0x10] sm:$0xff] (!%p7543_p0), %vm427_vm0, %v392_v2  ;;  %v395_v5 = vld [vmem:[%s9253_s11 + $0x28] sm:$0xff] (!%p7543_p0)  ;;  %466 = vst.msk [vmem:[#allocation3] sm:$0xff] (!%p7543_p0), %vm427_vm0, %v9123_v6  ;;  %v396_v7 = vld [vmem:[%s9253_s11 + $0x30] sm:$0xff] (!%p7543_p0) }
  0x27   : > { %467 = vst.msk [vmem:[#allocation3 + $0x8] sm:$0xff] (!%p7543_p0), %vm427_vm0, %v9123_v6  ;;  %468 = vst.msk [vmem:[#allocation3 + $0x10] sm:$0xff] (!%p7543_p0), %vm427_vm0, %v9123_v6  ;;  %v397_v8 = vld [vmem:[%s9253_s11 + $0x38] sm:$0xff] (!%p7543_p0)  ;;  %v398_v9 = vld [vmem:[%s9253_s11 + $0x40] sm:$0xff] (!%p7543_p0) }
  0x28   : > { %469 = vst.msk [vmem:[#allocation3 + $0x18] sm:$0xff] (!%p7543_p0), %vm427_vm0, %v9123_v6  ;;  %470 = vst.msk [vmem:[#allocation3 + $0x20] sm:$0xff] (!%p7543_p0), %vm427_vm0, %v9123_v6  ;;  %v399_v10 = vld [vmem:[%s9253_s11 + $0x48] sm:$0xff] (!%p7543_p0)  ;;  %v400_v11 = vld [vmem:[%s9253_s11 + $0x50] sm:$0xff] (!%p7543_p0) }
  0x29   : > { %471 = vst.msk [vmem:[#allocation3 + $0x28] sm:$0xff] (!%p7543_p0), %vm427_vm0, %v9123_v6  ;;  %472 = vst.msk [vmem:[#allocation3 + $0x30] sm:$0xff] (!%p7543_p0), %vm427_vm0, %v9123_v6  ;;  %v401_v12 = vld [vmem:[%s9253_s11 + $0x58] sm:$0xff] (!%p7543_p0)  ;;  %v402_v13 = vld [vmem:[%s9253_s11 + $0x60] sm:$0xff] (!%p7543_p0) }
  0x2a   : > { %473 = vst.msk [vmem:[#allocation3 + $0x38] sm:$0xff] (!%p7543_p0), %vm427_vm0, %v9123_v6  ;;  %474 = vst.msk [vmem:[#allocation3 + $0x40] sm:$0xff] (!%p7543_p0), %vm427_vm0, %v9123_v6  ;;  %v403_v14 = vld [vmem:[%s9253_s11 + $0x68] sm:$0xff] (!%p7543_p0)  ;;  %v404_v15 = vld [vmem:[%s9253_s11 + $0x70] sm:$0xff] (!%p7543_p0) }
  0x2b   : > { %475 = vst.msk [vmem:[#allocation3 + $0x48] sm:$0xff] (!%p7543_p0), %vm427_vm0, %v9123_v6  ;;  %476 = vst.msk [vmem:[#allocation3 + $0x50] sm:$0xff] (!%p7543_p0), %vm427_vm0, %v9123_v6  ;;  %v405_v16 = vld [vmem:[%s9253_s11 + $0x78] sm:$0xff] (!%p7543_p0)  ;;  %v406_v17 = vld [vmem:[%s9253_s11 + $0x80] sm:$0xff] (!%p7543_p0) }
  0x2c   : > { %477 = vst.msk [vmem:[#allocation3 + $0x58] sm:$0xff] %vm427_vm0, %v9123_v6  ;;  %478 = vst.msk [vmem:[#allocation3 + $0x60] sm:$0xff] %vm427_vm0, %v9123_v6  ;;  %v407_v18 = vld [vmem:[%s9253_s11 + $0x88] sm:$0xff]  ;;  %v408_v19 = vld [vmem:[%s9253_s11 + $0x90] sm:$0xff] }
  0x2d   : > { %479 = vst.msk [vmem:[#allocation3 + $0x68] sm:$0xff] %vm427_vm0, %v9123_v6  ;;  %480 = vst.msk [vmem:[#allocation3 + $0x70] sm:$0xff] %vm427_vm0, %v9123_v6  ;;  %v409_v20 = vld [vmem:[%s9253_s11 + $0x98] sm:$0xff]  ;;  %v410_v21 = vld [vmem:[%s9253_s11 + $0xa0] sm:$0xff] }
  0x2e   : > { %481 = vst.msk [vmem:[#allocation3 + $0x78] sm:$0xff] %vm427_vm0, %v9123_v6  ;;  %482 = vst.msk [vmem:[#allocation3 + $0x80] sm:$0xff] %vm427_vm0, %v9123_v6  ;;  %v411_v22 = vld [vmem:[%s9253_s11 + $0xa8] sm:$0xff]  ;;  %v412_v23 = vld [vmem:[%s9253_s11 + $0xb0] sm:$0xff] }
  0x2f   : > { %483 = vst.msk [vmem:[#allocation3 + $0x88] sm:$0xff] %vm427_vm0, %v9123_v6  ;;  %484 = vst.msk [vmem:[#allocation3 + $0x90] sm:$0xff] %vm427_vm0, %v9123_v6  ;;  %v413_v24 = vld [vmem:[%s9253_s11 + $0xb8] sm:$0xff]  ;;  %v414_v25 = vld [vmem:[%s9253_s11 + $0xc0] sm:$0xff] }
  0x30   : > { %485 = vst.msk [vmem:[#allocation3 + $0x98] sm:$0xff] %vm427_vm0, %v9123_v6  ;;  %486 = vst.msk [vmem:[#allocation3 + $0xa0] sm:$0xff] %vm427_vm0, %v9123_v6  ;;  %v415_v26 = vld [vmem:[%s9253_s11 + $0xc8] sm:$0xff]  ;;  %v416_v27 = vld [vmem:[%s9253_s11 + $0xd0] sm:$0xff] }
  0x31   : > { %487 = vst.msk [vmem:[#allocation3 + $0xa8] sm:$0xff] %vm427_vm0, %v9123_v6  ;;  %488 = vst.msk [vmem:[#allocation3 + $0xb0] sm:$0xff] %vm427_vm0, %v9123_v6  ;;  %v417_v28 = vld [vmem:[%s9253_s11 + $0xd8] sm:$0xff]  ;;  %v418_v29 = vld [vmem:[%s9253_s11 + $0xe0] sm:$0xff] }
  0x32   : > { %489 = vst.msk [vmem:[#allocation3 + $0xb8] sm:$0xff] %vm427_vm0, %v9123_v6  ;;  %490 = vst.msk [vmem:[#allocation3 + $0xc0] sm:$0xff] %vm427_vm0, %v9123_v6  ;;  %v419_v30 = vld [vmem:[%s9253_s11 + $0xe8] sm:$0xff]  ;;  %v420_v31 = vld [vmem:[%s9253_s11 + $0xf0] sm:$0xff] }
  0x33   : > { %491 = vst.msk [vmem:[#allocation3 + $0xc8] sm:$0xff] %vm427_vm0, %v9123_v6  ;;  %492 = vst.msk [vmem:[#allocation3 + $0xd0] sm:$0xff] %vm427_vm0, %v9123_v6  ;;  %v421_v32 = vld [vmem:[%s9253_s11 + $0xf8] sm:$0xff]  ;;  %v422_v33 = vld [vmem:[%s9253_s11 + $0x100] sm:$0xff] }
  0x34   : > { %493 = vst.msk [vmem:[#allocation3 + $0xd8] sm:$0xff] %vm427_vm0, %v9123_v6  ;;  %494 = vst.msk [vmem:[#allocation3 + $0xe0] sm:$0xff] %vm427_vm0, %v9123_v6  ;;  %v423_v34 = vld [vmem:[%s9253_s11 + $0x108] sm:$0xff]  ;;  %v424_v35 = vld [vmem:[%s9253_s11 + $0x110] sm:$0xff] }
  0x35   : > { %495 = vst.msk [vmem:[#allocation3 + $0xe8] sm:$0xff] %vm427_vm0, %v9123_v6  ;;  %496 = vst.msk [vmem:[#allocation3 + $0xf0] sm:$0xff] %vm427_vm0, %v9123_v6  ;;  %v425_v36 = vld [vmem:[%s9253_s11 + $0x118] sm:$0xff]  ;;  %v426_v37 = vld [vmem:[%s9253_s11 + $0x120] sm:$0x3] }
  0x36   : > { %497 = vst.msk [vmem:[#allocation3 + $0xf8] sm:$0xff] %vm427_vm0, %v9123_v6  ;;  %498 = vst.msk [vmem:[#allocation3 + $0x100] sm:$0xff] %vm427_vm0, %v9123_v6 }
  0x37   : > { %499 = vst.msk [vmem:[#allocation3 + $0x108] sm:$0xff] %vm427_vm0, %v9123_v6  ;;  %500 = vst.msk [vmem:[#allocation3 + $0x110] sm:$0xff] %vm427_vm0, %v9123_v6 }
  0x38   : > { %501 = vst.msk [vmem:[#allocation3 + $0x118] sm:$0xff] %vm427_vm0, %v9123_v6  ;;  %431 = vst.msk [vmem:[#allocation2 + $0x18] sm:$0xff] %vm427_vm0, %v393_v3 }
  0x39   : > { %502 = vst.msk [vmem:[#allocation3 + $0x120] sm:$0x3] %vm464_vm1, %v9123_v6  ;;  %465 = vst.msk [vmem:[#allocation2 + $0x120] sm:$0x3] %vm464_vm1, %v426_v37 }
  0x3a   : > { %432 = vst.msk [vmem:[#allocation2 + $0x20] sm:$0xff] %vm427_vm0, %v394_v4  ;;  %433 = vst.msk [vmem:[#allocation2 + $0x28] sm:$0xff] %vm427_vm0, %v395_v5 }
  0x3b   : > { %434 = vst.msk [vmem:[#allocation2 + $0x30] sm:$0xff] %vm427_vm0, %v396_v7  ;;  %435 = vst.msk [vmem:[#allocation2 + $0x38] sm:$0xff] %vm427_vm0, %v397_v8 }
  0x3c   : > { %436 = vst.msk [vmem:[#allocation2 + $0x40] sm:$0xff] %vm427_vm0, %v398_v9  ;;  %437 = vst.msk [vmem:[#allocation2 + $0x48] sm:$0xff] %vm427_vm0, %v399_v10 }
  0x3d   : > { %438 = vst.msk [vmem:[#allocation2 + $0x50] sm:$0xff] %vm427_vm0, %v400_v11  ;;  %439 = vst.msk [vmem:[#allocation2 + $0x58] sm:$0xff] %vm427_vm0, %v401_v12 }
  0x3e   : > { %440 = vst.msk [vmem:[#allocation2 + $0x60] sm:$0xff] %vm427_vm0, %v402_v13  ;;  %441 = vst.msk [vmem:[#allocation2 + $0x68] sm:$0xff] %vm427_vm0, %v403_v14 }
  0x3f   : > { %442 = vst.msk [vmem:[#allocation2 + $0x70] sm:$0xff] %vm427_vm0, %v404_v15  ;;  %443 = vst.msk [vmem:[#allocation2 + $0x78] sm:$0xff] %vm427_vm0, %v405_v16 }
  0x40   : > { %444 = vst.msk [vmem:[#allocation2 + $0x80] sm:$0xff] %vm427_vm0, %v406_v17  ;;  %445 = vst.msk [vmem:[#allocation2 + $0x88] sm:$0xff] %vm427_vm0, %v407_v18 }
  0x41   : > { %446 = vst.msk [vmem:[#allocation2 + $0x90] sm:$0xff] %vm427_vm0, %v408_v19  ;;  %447 = vst.msk [vmem:[#allocation2 + $0x98] sm:$0xff] %vm427_vm0, %v409_v20 }
  0x42   : > { %448 = vst.msk [vmem:[#allocation2 + $0xa0] sm:$0xff] %vm427_vm0, %v410_v21  ;;  %449 = vst.msk [vmem:[#allocation2 + $0xa8] sm:$0xff] %vm427_vm0, %v411_v22 }
  0x43   : > { %450 = vst.msk [vmem:[#allocation2 + $0xb0] sm:$0xff] %vm427_vm0, %v412_v23  ;;  %451 = vst.msk [vmem:[#allocation2 + $0xb8] sm:$0xff] %vm427_vm0, %v413_v24 }
  0x44   : > { %452 = vst.msk [vmem:[#allocation2 + $0xc0] sm:$0xff] %vm427_vm0, %v414_v25  ;;  %453 = vst.msk [vmem:[#allocation2 + $0xc8] sm:$0xff] %vm427_vm0, %v415_v26 }
  0x45   : > { %454 = vst.msk [vmem:[#allocation2 + $0xd0] sm:$0xff] %vm427_vm0, %v416_v27  ;;  %455 = vst.msk [vmem:[#allocation2 + $0xd8] sm:$0xff] %vm427_vm0, %v417_v28 }
  0x46   : > { %456 = vst.msk [vmem:[#allocation2 + $0xe0] sm:$0xff] %vm427_vm0, %v418_v29  ;;  %457 = vst.msk [vmem:[#allocation2 + $0xe8] sm:$0xff] %vm427_vm0, %v419_v30 }
  0x47   : > { %458 = vst.msk [vmem:[#allocation2 + $0xf0] sm:$0xff] %vm427_vm0, %v420_v31  ;;  %459 = vst.msk [vmem:[#allocation2 + $0xf8] sm:$0xff] %vm427_vm0, %v421_v32 }
  0x48   : > { %460 = vst.msk [vmem:[#allocation2 + $0x100] sm:$0xff] %vm427_vm0, %v422_v33  ;;  %461 = vst.msk [vmem:[#allocation2 + $0x108] sm:$0xff] %vm427_vm0, %v423_v34 }
  0x49   : > { %462 = vst.msk [vmem:[#allocation2 + $0x110] sm:$0xff] %vm427_vm0, %v424_v35  ;;  %463 = vst.msk [vmem:[#allocation2 + $0x118] sm:$0xff] %vm427_vm0, %v425_v36 }
  0x4a PF: > { %v8991_v38 = vld [vmem:[%s9262_s14] sm:$0xff]   ;;  %v8992_v39 = vld [vmem:[%s9262_s14 + $0x10] sm:$0xff]   ;;  %v8993_v40 = vld [vmem:[%s9262_s14 + $0x8] sm:$0xff]   ;;  %vm12070_vm2 = vcmask 261120   ;;  %s12333_s11 = scalar_lea.vmem %s12011_s2, %s9243_s21  ;;  %p7936_p1 = scmp.ne.s32.totalorder %s9105_s27, 1 }
  0x4b   : > { %8267 = vmatprep.subr.bf16.mxu0 %v8991_v38  ;;  %8303 = vmatprep.subr.bf16.mxu1 %v8992_v39  ;;  %v8994_v41 = vld [vmem:[%s9262_s14 + $0x18] sm:$0xff]   ;;  %v984_v42 = vld [vmem:[#allocation2] sm:$0xff]  ;;  %v985_v43 = vld [vmem:[#allocation2 + $0x8] sm:$0xff] }
  0x4c   : > { %8268 = vmatpush3.bf16.msra.mxu0 %v8991_v38  ;;  %8304 = vmatpush3.bf16.msra.mxu1 %v8992_v39  ;;  %v1386_v44 = vld [vmem:[#allocation2 + $0x1] sm:$0xff]  ;;  %v1016_v45 = vpack.c.bf16 %v985_v43, %v984_v42  ;;  %v1387_v46 = vld [vmem:[#allocation2 + $0x9] sm:$0xff]  ;;  %v987_v48 = vld [vmem:[#allocation2 + $0x18] sm:$0xff] }
  0x4d   : > { %8269 = vmatprep.subr.bf16.mxu0 %v8993_v40  ;;  %8305 = vmatprep.subr.bf16.mxu1 %v8994_v41  ;;  %v986_v47 = vld [vmem:[#allocation2 + $0x10] sm:$0xff]  ;;  %v1418_v49 = vpack.c.bf16 %v1387_v46, %v1386_v44  ;;  %v1389_v52 = vld [vmem:[#allocation2 + $0x19] sm:$0xff]  ;;  %v989_v56 = vld [vmem:[#allocation2 + $0x28] sm:$0xff] }
  0x4e   : > { %v9395_v50 = vpack.c.bf16 %v987_v48, %v986_v47  ;;  %v1388_v51 = vld [vmem:[#allocation2 + $0x11] sm:$0xff]  ;;  %8271 = vmatprep.mubr.msk.bf16.mxu0 %vm12070_vm2, %v1016_v45  ;;  %v8995_v54 = vld [vmem:[%s9262_s14 + $0x20] sm:$0xff]   ;;  %v1391_v58 = vld [vmem:[#allocation2 + $0x29] sm:$0xff] }
  0x4f   : > { %v9398_v53 = vpack.c.bf16 %v1389_v52, %v1388_v51  ;;  %v988_v55 = vld [vmem:[#allocation2 + $0x20] sm:$0xff]  ;;  %8307 = vmatprep.mubr.msk.bf16.mxu1 %vm12070_vm2, %v1418_v49  ;;  %v990_v61 = vld [vmem:[#allocation2 + $0x30] sm:$0xff]  ;;  %v991_v62 = vld [vmem:[#allocation2 + $0x38] sm:$0xff] }
  0x50   : > { %8270 = vmatpush3.bf16.msra.mxu0 %v8993_v40  ;;  %8306 = vmatpush3.bf16.msra.mxu1 %v8994_v41  ;;  %v1390_v57 = vld [vmem:[#allocation2 + $0x21] sm:$0xff]  ;;  %v9402_v59 = vpack.c.bf16 %v989_v56, %v988_v55  ;;  %v1392_v63 = vld [vmem:[#allocation2 + $0x31] sm:$0xff]  ;;  %v1393_v0 = vld [vmem:[#allocation2 + $0x39] sm:$0xff]  ;;  %v9414_v5 = vpack.c.bf16 %v991_v62, %v990_v61 }
  0x51   : > { %8339 = vmatprep.subr.bf16.mxu0 %v8995_v54  ;;  %v9404_v60 = vpack.c.bf16 %v1391_v58, %v1390_v57  ;;  %v992_v1 = vld [vmem:[#allocation2 + $0x40] sm:$0xff]  ;;  %v993_v2 = vld [vmem:[#allocation2 + $0x48] sm:$0xff]  ;;  %v9416_v6 = vpack.c.bf16 %v1393_v0, %v1392_v63  ;;  %v994_v9 = vld [vmem:[#allocation2 + $0x50] sm:$0xff] }
  0x52   : > { %v1394_v3 = vld [vmem:[#allocation2 + $0x41] sm:$0xff]  ;;  %v1395_v4 = vld [vmem:[#allocation2 + $0x49] sm:$0xff]  ;;  %v9418_v7 = vpack.c.bf16 %v993_v2, %v992_v1  ;;  %v995_v10 = vld [vmem:[#allocation2 + $0x58] sm:$0xff] }
  0x53   : > { %8272 = vmatmul.mubr.msk.bf16.vlgmr.msra.gmra.mrb[0].mxu0 %vm12070_vm2, %v9395_v50  ;;  %8308 = vmatmul.mubr.msk.bf16.vlgmr.msra.gmra.mrb[0].mxu1 %vm12070_vm2, %v9398_v53  ;;  %v9420_v8 = vpack.c.bf16 %v1395_v4, %v1394_v3  ;;  %v1396_v11 = vld [vmem:[#allocation2 + $0x51] sm:$0xff]  ;;  %v8996_v12 = vld [vmem:[%s9262_s14 + $0x28] sm:$0xff]   ;;  %v1397_v13 = vld [vmem:[#allocation2 + $0x59] sm:$0xff]  ;;  %v9431_v18 = vpack.c.bf16 %v995_v10, %v994_v9 }
  0x54   : > { %8340 = vmatpush3.bf16.msra.mxu0 %v8995_v54  ;;  %8275 = vmatprep.mubr.msk.bf16.mxu0 %vm12070_vm2, %v9402_v59  ;;  %v996_v14 = vld [vmem:[#allocation2 + $0x60] sm:$0xff]  ;;  %v997_v15 = vld [vmem:[#allocation2 + $0x68] sm:$0xff]  ;;  %v9433_v19 = vpack.c.bf16 %v1397_v13, %v1396_v11  ;;  %v998_v22 = vld [vmem:[#allocation2 + $0x70] sm:$0xff] }
  0x55   : > { %8311 = vmatprep.mubr.msk.bf16.mxu1 %vm12070_vm2, %v9404_v60  ;;  %v1398_v16 = vld [vmem:[#allocation2 + $0x61] sm:$0xff]  ;;  %v1399_v17 = vld [vmem:[#allocation2 + $0x69] sm:$0xff]  ;;  %8341 = vmatprep.subr.bf16.mxu0 %v8996_v12  ;;  %v9435_v20 = vpack.c.bf16 %v997_v15, %v996_v14  ;;  %v999_v23 = vld [vmem:[#allocation2 + $0x78] sm:$0xff] }
  0x56   : > { %v9437_v21 = vpack.c.bf16 %v1399_v17, %v1398_v16  ;;  %v1400_v24 = vld [vmem:[#allocation2 + $0x71] sm:$0xff]  ;;  %v1401_v25 = vld [vmem:[#allocation2 + $0x79] sm:$0xff]  ;;  %v1001_v27 = vld [vmem:[#allocation2 + $0x88] sm:$0xff]  ;;  %v9449_v32 = vpack.c.bf16 %v999_v23, %v998_v22 }
  0x57   : > { %v1000_v26 = vld [vmem:[#allocation2 + $0x80] sm:$0xff]  ;;  %v8997_v28 = vld [vmem:[%s9262_s14 + $0x30] sm:$0xff]   ;;  %v8998_v31 = vld [vmem:[%s9262_s14 + $0x38] sm:$0xff]   ;;  %v9451_v33 = vpack.c.bf16 %v1401_v25, %v1400_v24 }
  0x58   : > { %8342 = vmatpush3.bf16.msra.mxu0 %v8996_v12  ;;  %v1402_v29 = vld [vmem:[#allocation2 + $0x81] sm:$0xff]  ;;  %v1403_v30 = vld [vmem:[#allocation2 + $0x89] sm:$0xff]  ;;  %8375 = vmatprep.subr.bf16.mxu1 %v8997_v28  ;;  %v9453_v34 = vpack.c.bf16 %v1001_v27, %v1000_v26  ;;  %v1003_v38 = vld [vmem:[#allocation2 + $0x98] sm:$0xff] }
  0x59   : > { %8376 = vmatpush3.bf16.msra.mxu1 %v8997_v28  ;;  %v9456_v35 = vld [vmem:[%s9262_s14 + $0x40] sm:$0xff]   ;;  %v9458_v36 = vpack.c.bf16 %v1403_v30, %v1402_v29  ;;  %v1002_v37 = vld [vmem:[#allocation2 + $0x90] sm:$0xff]  ;;  %v1005_v42 = vld [vmem:[#allocation2 + $0xa8] sm:$0xff] }
  0x5a   : > { %8377 = vmatprep.subr.bf16.mxu1 %v8998_v31  ;;  %8411 = vmatprep.subr.bf16.mxu0 %v9456_v35  ;;  %v1404_v39 = vld [vmem:[#allocation2 + $0x91] sm:$0xff]  ;;  %v1405_v40 = vld [vmem:[#allocation2 + $0x99] sm:$0xff]  ;;  %v1406_v43 = vld [vmem:[#allocation2 + $0xa1] sm:$0xff]  ;;  %v9469_v45 = vpack.c.bf16 %v1003_v38, %v1002_v37 }
  0x5b   : > { %8276 = vmatmul.mubr.msk.bf16.gmra.mrb[4].mxu0 %vm12070_vm2, %v9414_v5  ;;  %8312 = vmatmul.mubr.msk.bf16.gmra.mrb[4].mxu1 %vm12070_vm2, %v9416_v6  ;;  %v1004_v41 = vld [vmem:[#allocation2 + $0xa0] sm:$0xff]  ;;  %v1407_v44 = vld [vmem:[#allocation2 + $0xa9] sm:$0xff]  ;;  %v9471_v46 = vpack.c.bf16 %v1405_v40, %v1404_v39  ;;  %v1007_v51 = vld [vmem:[#allocation2 + $0xb8] sm:$0xff] }
  0x5c   : > { %8279 = vmatprep.mubr.msk.bf16.mxu0 %vm12070_vm2, %v9418_v7  ;;  %8315 = vmatprep.mubr.msk.bf16.mxu1 %vm12070_vm2, %v9420_v8  ;;  %v9473_v47 = vpack.c.bf16 %v1005_v42, %v1004_v41  ;;  %v9475_v48 = vpack.c.bf16 %v1407_v44, %v1406_v43  ;;  %v1006_v49 = vld [vmem:[#allocation2 + $0xb0] sm:$0xff]  ;;  %v1409_v54 = vld [vmem:[#allocation2 + $0xb9] sm:$0xff]  ;;  %v1009_v56 = vld [vmem:[#allocation2 + $0xc8] sm:$0xff] }
  0x5d   : > { %8378 = vmatpush3.bf16.msra.mxu1 %v8998_v31  ;;  %v1408_v52 = vld [vmem:[#allocation2 + $0xb1] sm:$0xff]  ;;  %v1008_v55 = vld [vmem:[#allocation2 + $0xc0] sm:$0xff]  ;;  %v1411_v61 = vld [vmem:[#allocation2 + $0xc9] sm:$0xff]  ;;  %v9486_v62 = vpack.c.bf16 %v1007_v51, %v1006_v49 }
  0x5e   : > { %v9001_v57 = vld [vmem:[%s9262_s14 + $0x50] sm:$0xff]   ;;  %v1410_v58 = vld [vmem:[#allocation2 + $0xc1] sm:$0xff]  ;;  %v9488_v63 = vpack.c.bf16 %v1409_v54, %v1408_v52  ;;  %v9490_v0 = vpack.c.bf16 %v1009_v56, %v1008_v55  ;;  %v1011_v3 = vld [vmem:[#allocation2 + $0xd8] sm:$0xff] }
  0x5f   : > { %8447 = vmatprep.subr.bf16.mxu1 %v9001_v57  ;;  %v9492_v1 = vpack.c.bf16 %v1411_v61, %v1410_v58  ;;  %v1010_v2 = vld [vmem:[#allocation2 + $0xd0] sm:$0xff]  ;;  %v1413_v9 = vld [vmem:[#allocation2 + $0xd9] sm:$0xff]  ;;  %v1013_v11 = vld [vmem:[#allocation2 + $0xe8] sm:$0xff] }
  0x60   : > { %v1412_v4 = vld [vmem:[#allocation2 + $0xd1] sm:$0xff]  ;;  %v1012_v10 = vld [vmem:[#allocation2 + $0xe0] sm:$0xff]  ;;  %v1415_v13 = vld [vmem:[#allocation2 + $0xe9] sm:$0xff]  ;;  %v9502_v14 = vpack.c.bf16 %v1011_v3, %v1010_v2 }
  0x61   : > { %v1414_v12 = vld [vmem:[#allocation2 + $0xe1] sm:$0xff]  ;;  %v9504_v15 = vpack.c.bf16 %v1413_v9, %v1412_v4  ;;  %v9506_v16 = vpack.c.bf16 %v1013_v11, %v1012_v10  ;;  %v1014_v22 = vld [vmem:[#allocation2 + $0xf0] sm:$0xff]  ;;  %v1015_v23 = vld [vmem:[#allocation2 + $0xf8] sm:$0xff] }
  0x62   : > { %v9508_v17 = vpack.c.bf16 %v1415_v13, %v1414_v12  ;;  %v1416_v24 = vld [vmem:[#allocation2 + $0xf1] sm:$0xff]  ;;  %v1417_v25 = vld [vmem:[#allocation2 + $0xf9] sm:$0xff]  ;;  %v1692_v26 = vld [vmem:[#allocation2 + $0x2] sm:$0xff]  ;;  %v9518_v28 = vpack.c.bf16 %v1015_v23, %v1014_v22 }
  0x63   : > { %8280 = vmatmul.mubr.msk.bf16.gmra.mrb[8].mxu0 %vm12070_vm2, %v9431_v18  ;;  %8316 = vmatmul.mubr.msk.bf16.gmra.mrb[8].mxu1 %vm12070_vm2, %v9433_v19  ;;  %v1693_v27 = vld [vmem:[#allocation2 + $0xa] sm:$0xff]  ;;  %v9520_v29 = vpack.c.bf16 %v1417_v25, %v1416_v24  ;;  %v1694_v31 = vld [vmem:[#allocation2 + $0x12] sm:$0xff]  ;;  %v1695_v37 = vld [vmem:[#allocation2 + $0x1a] sm:$0xff] }
  0x64   : > { %8283 = vmatprep.mubr.msk.bf16.mxu0 %vm12070_vm2, %v9435_v20  ;;  %8319 = vmatprep.mubr.msk.bf16.mxu1 %vm12070_vm2, %v9437_v21  ;;  %v1724_v30 = vpack.c.bf16 %v1693_v27, %v1692_v26  ;;  %v1696_v38 = vld [vmem:[#allocation2 + $0x22] sm:$0xff]  ;;  %v1697_v39 = vld [vmem:[#allocation2 + $0x2a] sm:$0xff]  ;;  %v9529_v40 = vpack.c.bf16 %v1695_v37, %v1694_v31  ;;  %v9002_v43 = vld [vmem:[%s9262_s14 + $0x58] sm:$0xff]  }
  0x65   : > { %v9531_v41 = vpack.c.bf16 %v1697_v39, %v1696_v38  ;;  %v9000_v42 = vld [vmem:[%s9262_s14 + $0x48] sm:$0xff]   ;;  %v1698_v44 = vld [vmem:[#allocation2 + $0x32] sm:$0xff]  ;;  %v9545_v52 = vld [vmem:[%s9262_s14 + $0x60] sm:$0xff]  }
  0x66   : > { %v1700_v49 = vld [vmem:[#allocation2 + $0x42] sm:$0xff]  ;;  %v1701_v51 = vld [vmem:[#allocation2 + $0x4a] sm:$0xff]  ;;  %v1702_v56 = vld [vmem:[#allocation2 + $0x52] sm:$0xff] }
  0x67   : > { %v9550_v55 = vld [vmem:[%s9262_s14 + $0x70] sm:$0xff]   ;;  %v1704_v58 = vld [vmem:[#allocation2 + $0x62] sm:$0xff]  ;;  %v1707_v9 = vld [vmem:[#allocation2 + $0x7a] sm:$0xff] }
  0x68   : > { %v1705_v61 = vld [vmem:[#allocation2 + $0x6a] sm:$0xff]  ;;  %v1706_v4 = vld [vmem:[#allocation2 + $0x72] sm:$0xff]  ;;  %v1708_v10 = vld [vmem:[#allocation2 + $0x82] sm:$0xff] }
  0x69   : > { %v9566_v3 = vpack.c.bf16 %v1705_v61, %v1704_v58  ;;  %v1709_v11 = vld [vmem:[#allocation2 + $0x8a] sm:$0xff]  ;;  %v9576_v12 = vpack.c.bf16 %v1707_v9, %v1706_v4  ;;  %v1710_v22 = vld [vmem:[#allocation2 + $0x92] sm:$0xff]  ;;  %v1711_v23 = vld [vmem:[#allocation2 + $0x9a] sm:$0xff] }
  0x6a   : > { %v9578_v13 = vpack.c.bf16 %v1709_v11, %v1708_v10  ;;  %v1712_v24 = vld [vmem:[#allocation2 + $0xa2] sm:$0xff]  ;;  %v1713_v25 = vld [vmem:[#allocation2 + $0xaa] sm:$0xff]  ;;  %v9588_v26 = vpack.c.bf16 %v1711_v23, %v1710_v22  ;;  %v1715_v31 = vld [vmem:[#allocation2 + $0xba] sm:$0xff] }
  0x6b   : > { %8284 = vmatmul.mubr.msk.bf16.gmra.mrb[12].mxu0 %vm12070_vm2, %v9449_v32  ;;  %8320 = vmatmul.mubr.msk.bf16.gmra.mrb[12].mxu1 %vm12070_vm2, %v9451_v33  ;;  %v1734_v27 = vpack.c.bf16 %v1713_v25, %v1712_v24  ;;  %v1716_v37 = vld [vmem:[#allocation2 + $0xc2] sm:$0xff]  ;;  %v1717_v38 = vld [vmem:[#allocation2 + $0xca] sm:$0xff]  ;;  %v1723_v58 = vld [vmem:[#allocation2 + $0xfa] sm:$0xff] }
  0x6c   : > { %8287 = vmatprep.mubr.msk.bf16.mxu0 %vm12070_vm2, %v9453_v34  ;;  %8323 = vmatprep.mubr.msk.bf16.mxu1 %vm12070_vm2, %v9458_v36  ;;  %v2124_v61 = vld [vmem:[#allocation2 + $0x100] sm:$0xff]  ;;  %v2125_v4 = vld [vmem:[#allocation2 + $0x108] sm:$0xff]  ;;  %v9006_v22 = vld [vmem:[%s9262_s14 + $0x78] sm:$0xff]  }
  0x6d   : > { %v9609_v10 = vpack.c.bf16 %v2125_v4, %v2124_v61  ;;  %v9004_v11 = vld [vmem:[%s9262_s14 + $0x68] sm:$0xff]  }
  0x6e   : > { %v2769_v23 = vld [vmem:[#allocation2 + $0x10a] sm:$0xff] }
  0x73   : > { %8288 = vmatmul.mubr.msk.bf16.gmra.mrb[16].mxu0 %vm12070_vm2, %v9469_v45  ;;  %8324 = vmatmul.mubr.msk.bf16.gmra.mrb[16].mxu1 %vm12070_vm2, %v9471_v46 }
  0x74   : > { %8291 = vmatprep.mubr.msk.bf16.mxu0 %vm12070_vm2, %v9473_v47  ;;  %8327 = vmatprep.mubr.msk.bf16.mxu1 %vm12070_vm2, %v9475_v48 }
  0x7b   : > { %8292 = vmatmul.mubr.msk.bf16.gmra.mrb[20].mxu0 %vm12070_vm2, %v9486_v62  ;;  %8328 = vmatmul.mubr.msk.bf16.gmra.mrb[20].mxu1 %vm12070_vm2, %v9488_v63 }
  0x7c   : > { %8295 = vmatprep.mubr.msk.bf16.mxu0 %vm12070_vm2, %v9490_v0  ;;  %8331 = vmatprep.mubr.msk.bf16.mxu1 %vm12070_vm2, %v9492_v1 }
  0x83   : > { %8296 = vmatmul.mubr.msk.bf16.gmra.mrb[24].mxu0 %vm12070_vm2, %v9502_v14  ;;  %8332 = vmatmul.mubr.msk.bf16.gmra.mrb[24].mxu1 %vm12070_vm2, %v9504_v15 }
  0x84   : > { %8299 = vmatprep.mubr.msk.bf16.mxu0 %vm12070_vm2, %v9506_v16  ;;  %8335 = vmatprep.mubr.msk.bf16.mxu1 %vm12070_vm2, %v9508_v17 }
  0x8b   : > { %8300 = vmatmul.mubr.msk.bf16.gmra.mrb[28].mxu0 %vm12070_vm2, %v9518_v28  ;;  %8336 = vmatmul.mubr.msk.bf16.gmra.mrb[28].mxu1 %vm12070_vm2, %v9520_v29 }
  0x8c   : > { %8343 = vmatprep.mubr.msk.bf16.mxu0 %vm12070_vm2, %v1724_v30  ;;  %8379 = vmatprep.mubr.msk.bf16.mxu1 %vm12070_vm2, %v9395_v50  ;;  %v1699_v50 = vld [vmem:[#allocation2 + $0x3a] sm:$0xff]  ;;  %v1714_v30 = vld [vmem:[#allocation2 + $0xb2] sm:$0xff] }
  0x8d   : > { %v9547_v54 = vpack.c.bf16 %v1699_v50, %v1698_v44  ;;  %v1735_v39 = vpack.c.bf16 %v1715_v31, %v1714_v30  ;;  %v1719_v44 = vld [vmem:[#allocation2 + $0xda] sm:$0xff]  ;;  %v1720_v50 = vld [vmem:[#allocation2 + $0xe2] sm:$0xff]  ;;  %v503_v30 = vlaneseq }
  0x93   : > { %8344 = vmatmul.mubr.msk.bf16.vlgmr.msra.gmra.mrb[32].mxu0 %vm12070_vm2, %v9529_v40  ;;  %8380 = vmatmul.mubr.msk.bf16.vlgmr.msra.gmra.mrb[32].mxu1 %vm12070_vm2, %v9402_v59 }
  0x94   : > { %8412 = vmatpush3.bf16.msra.mxu0 %v9456_v35  ;;  %8347 = vmatprep.mubr.msk.bf16.mxu0 %vm12070_vm2, %v9531_v41  ;;  %v9552_v35 = vpack.c.bf16 %v1701_v51, %v1700_v49  ;;  %v1721_v49 = vld [vmem:[#allocation2 + $0xea] sm:$0xff] }
  0x95   : > { %8383 = vmatprep.mubr.msk.bf16.mxu1 %vm12070_vm2, %v9414_v5  ;;  %8413 = vmatprep.subr.bf16.mxu0 %v9000_v42 }
  0x96   : > { %8448 = vmatpush3.bf16.msra.mxu1 %v9001_v57  ;;  %v1703_v57 = vld [vmem:[#allocation2 + $0x5a] sm:$0xff] }
  0x97   : > { %8449 = vmatprep.subr.bf16.mxu1 %v9002_v43  ;;  %v9564_v2 = vpack.c.bf16 %v1703_v57, %v1702_v56  ;;  %v1738_v56 = vpack.c.bf16 %v1721_v49, %v1720_v50  ;;  %v1722_v57 = vld [vmem:[#allocation2 + $0xf2] sm:$0xff] }
  0x98   : > { %8414 = vmatpush3.bf16.msra.mxu0 %v9000_v42  ;;  %v1736_v42 = vpack.c.bf16 %v1717_v38, %v1716_v37  ;;  %v1739_v9 = vpack.c.bf16 %v1723_v58, %v1722_v57  ;;  %v12204_v58 = vmov 0 }
  0x99   : > { %8483 = vmatprep.subr.bf16.mxu0 %v9545_v52 }
  0x9a   : > { %8450 = vmatpush3.bf16.msra.mxu1 %v9002_v43  ;;  %v1718_v43 = vld [vmem:[#allocation2 + $0xd2] sm:$0xff] }
  0x9b   : > { %8348 = vmatmul.mubr.msk.bf16.gmra.mrb[36].mxu0 %vm12070_vm2, %v9547_v54  ;;  %8519 = vmatprep.subr.bf16.mxu1 %v9550_v55  ;;  %v1737_v51 = vpack.c.bf16 %v1719_v44, %v1718_v43 }
  0x9c   : > { %8384 = vmatmul.mubr.msk.bf16.gmra.mrb[36].mxu1 %vm12070_vm2, %v9418_v7  ;;  %8351 = vmatprep.mubr.msk.bf16.mxu0 %vm12070_vm2, %v9552_v35 }
  0x9d   : > { %8387 = vmatprep.mubr.msk.bf16.mxu1 %vm12070_vm2, %v9431_v18 }
  0xa3   : > { %8352 = vmatmul.mubr.msk.bf16.gmra.mrb[40].mxu0 %vm12070_vm2, %v9564_v2 }
  0xa4   : > { %8388 = vmatmul.mubr.msk.bf16.gmra.mrb[40].mxu1 %vm12070_vm2, %v9435_v20  ;;  %8355 = vmatprep.mubr.msk.bf16.mxu0 %vm12070_vm2, %v9566_v3 }
  0xa5   : > { %8391 = vmatprep.mubr.msk.bf16.mxu1 %vm12070_vm2, %v9449_v32 }
  0xab   : > { %8356 = vmatmul.mubr.msk.bf16.gmra.mrb[44].mxu0 %vm12070_vm2, %v9576_v12 }
  0xac   : > { %8392 = vmatmul.mubr.msk.bf16.gmra.mrb[44].mxu1 %vm12070_vm2, %v9453_v34  ;;  %8359 = vmatprep.mubr.msk.bf16.mxu0 %vm12070_vm2, %v9578_v13 }
  0xad   : > { %8395 = vmatprep.mubr.msk.bf16.mxu1 %vm12070_vm2, %v9469_v45 }
  0xb3   : > { %8360 = vmatmul.mubr.msk.bf16.gmra.mrb[48].mxu0 %vm12070_vm2, %v9588_v26 }
  0xb4   : > { %8396 = vmatmul.mubr.msk.bf16.gmra.mrb[48].mxu1 %vm12070_vm2, %v9473_v47  ;;  %8363 = vmatprep.mubr.msk.bf16.mxu0 %vm12070_vm2, %v1734_v27 }
  0xb5   : > { %8399 = vmatprep.mubr.msk.bf16.mxu1 %vm12070_vm2, %v9486_v62 }
  0xbb   : > { %8364 = vmatmul.mubr.msk.bf16.gmra.mrb[52].mxu0 %vm12070_vm2, %v1735_v39 }
  0xbc   : > { %8400 = vmatmul.mubr.msk.bf16.gmra.mrb[52].mxu1 %vm12070_vm2, %v9490_v0  ;;  %8367 = vmatprep.mubr.msk.bf16.mxu0 %vm12070_vm2, %v1736_v42 }
  0xbd   : > { %8403 = vmatprep.mubr.msk.bf16.mxu1 %vm12070_vm2, %v9502_v14 }
  0xc3   : > { %8368 = vmatmul.mubr.msk.bf16.gmra.mrb[56].mxu0 %vm12070_vm2, %v1737_v51 }
  0xc4   : > { %8404 = vmatmul.mubr.msk.bf16.gmra.mrb[56].mxu1 %vm12070_vm2, %v9506_v16  ;;  %8371 = vmatprep.mubr.msk.bf16.mxu0 %vm12070_vm2, %v1738_v56 }
  0xc5   : > { %8407 = vmatprep.mubr.msk.bf16.mxu1 %vm12070_vm2, %v9518_v28 }
  0xcb   : > { %8372 = vmatmul.mubr.msk.bf16.gmra.mrb[60].mxu0 %vm12070_vm2, %v1739_v9 }
  0xcc   : > { %8408 = vmatmul.mubr.msk.bf16.gmra.mrb[60].mxu1 %vm12070_vm2, %v9609_v10  ;;  %8415 = vmatprep.mubr.msk.bf16.mxu0 %vm12070_vm2, %v9398_v53  ;;  %v9007_v53 = vld [vmem:[%s9262_s14 + $0x80] sm:$0xff]  }
  0xcd   : > { %8451 = vmatprep.mubr.msk.bf16.mxu1 %vm12070_vm2, %v9529_v40  ;;  %v2462_v40 = vld [vmem:[#allocation2 + $0x101] sm:$0xff] }
  0xd3   : > { %8416 = vmatmul.mubr.msk.bf16.vlgmr.msra.gmra.mrb[64].mxu0 %vm12070_vm2, %v9404_v60 }
  0xd4   : > { %8452 = vmatmul.mubr.msk.bf16.vlgmr.msra.gmra.mrb[64].mxu1 %vm12070_vm2, %v9531_v41  ;;  %8484 = vmatpush3.bf16.msra.mxu0 %v9545_v52  ;;  %v2463_v52 = vld [vmem:[#allocation2 + $0x109] sm:$0xff] }
  0xd5   : > { %8419 = vmatprep.mubr.msk.bf16.mxu0 %vm12070_vm2, %v9416_v6  ;;  %8455 = vmatprep.mubr.msk.bf16.mxu1 %vm12070_vm2, %v9547_v54  ;;  %v9673_v24 = vpack.c.bf16 %v2463_v52, %v2462_v40 }
  0xd6   : > { %8485 = vmatprep.subr.bf16.mxu0 %v9004_v11  ;;  %8520 = vmatpush3.bf16.msra.mxu1 %v9550_v55  ;;  %v2768_v55 = vld [vmem:[#allocation2 + $0x102] sm:$0xff] }
  0xd7   : > { %8521 = vmatprep.subr.bf16.mxu1 %v9006_v22  ;;  %v9675_v25 = vpack.c.bf16 %v2769_v23, %v2768_v55 }
  0xd8   : > { %8486 = vmatpush3.bf16.msra.mxu0 %v9004_v11 }
  0xd9   : > { %8555 = vmatprep.subr.bf16.mxu0 %v9007_v53 }
  0xda   : > { %8522 = vmatpush3.bf16.msra.mxu1 %v9006_v22 }
  0xdb   : > { %8420 = vmatmul.mubr.msk.bf16.gmra.mrb[68].mxu0 %vm12070_vm2, %v9420_v8 }
  0xdc   : > { %8456 = vmatmul.mubr.msk.bf16.gmra.mrb[68].mxu1 %vm12070_vm2, %v9552_v35  ;;  %8423 = vmatprep.mubr.msk.bf16.mxu0 %vm12070_vm2, %v9433_v19 }
  0xdd   : > { %8459 = vmatprep.mubr.msk.bf16.mxu1 %vm12070_vm2, %v9564_v2 }
  0xe3   : > { %8424 = vmatmul.mubr.msk.bf16.gmra.mrb[72].mxu0 %vm12070_vm2, %v9437_v21 }
  0xe4   : > { %8460 = vmatmul.mubr.msk.bf16.gmra.mrb[72].mxu1 %vm12070_vm2, %v9566_v3  ;;  %8427 = vmatprep.mubr.msk.bf16.mxu0 %vm12070_vm2, %v9451_v33 }
  0xe5   : > { %8463 = vmatprep.mubr.msk.bf16.mxu1 %vm12070_vm2, %v9576_v12 }
  0xeb   : > { %8428 = vmatmul.mubr.msk.bf16.gmra.mrb[76].mxu0 %vm12070_vm2, %v9458_v36 }
  0xec   : > { %8464 = vmatmul.mubr.msk.bf16.gmra.mrb[76].mxu1 %vm12070_vm2, %v9578_v13  ;;  %8431 = vmatprep.mubr.msk.bf16.mxu0 %vm12070_vm2, %v9471_v46 }
  0xed   : > { %8467 = vmatprep.mubr.msk.bf16.mxu1 %vm12070_vm2, %v9588_v26 }
  0xf3   : > { %8432 = vmatmul.mubr.msk.bf16.gmra.mrb[80].mxu0 %vm12070_vm2, %v9475_v48 }
  0xf4   : > { %8468 = vmatmul.mubr.msk.bf16.gmra.mrb[80].mxu1 %vm12070_vm2, %v1734_v27  ;;  %8435 = vmatprep.mubr.msk.bf16.mxu0 %vm12070_vm2, %v9488_v63  ;;  %v9008_v27 = vld [vmem:[%s9262_s14 + $0x88] sm:$0xff]  }
  0xf5   : > { %8471 = vmatprep.mubr.msk.bf16.mxu1 %vm12070_vm2, %v1735_v39 }
  0xfb   : > { %8436 = vmatmul.mubr.msk.bf16.gmra.mrb[84].mxu0 %vm12070_vm2, %v9492_v1 }
  0xfc   : > { %8472 = vmatmul.mubr.msk.bf16.gmra.mrb[84].mxu1 %vm12070_vm2, %v1736_v42  ;;  %8439 = vmatprep.mubr.msk.bf16.mxu0 %vm12070_vm2, %v9504_v15 }
  0xfd   : > { %8475 = vmatprep.mubr.msk.bf16.mxu1 %vm12070_vm2, %v1737_v51 }
 0x103   : > { %8440 = vmatmul.mubr.msk.bf16.gmra.mrb[88].mxu0 %vm12070_vm2, %v9508_v17 }
 0x104   : > { %8476 = vmatmul.mubr.msk.bf16.gmra.mrb[88].mxu1 %vm12070_vm2, %v1738_v56  ;;  %8443 = vmatprep.mubr.msk.bf16.mxu0 %vm12070_vm2, %v9520_v29  ;;  %v12201_v56 = vmov 0 }
 0x105   : > { %8479 = vmatprep.mubr.msk.bf16.mxu1 %vm12070_vm2, %v1739_v9 }
 0x10b   : > { %8444 = vmatmul.mubr.msk.bf16.gmra.mrb[92].mxu0 %vm12070_vm2, %v9673_v24 }
 0x10c   : > { %8480 = vmatmul.mubr.msk.bf16.gmra.mrb[92].mxu1 %vm12070_vm2, %v9675_v25  ;;  %8487 = vmatprep.mubr.msk.bf16.mxu0 %vm12070_vm2, %v9402_v59  ;;  %v9694_v59 = vshrl.u32 %v503_v30, 7 }
 0x10d   : > { %8523 = vmatprep.mubr.msk.bf16.mxu1 %vm12070_vm2, %v9404_v60 }
 0x10e   : > { %v506_v60 = vadd.s32 16, %v9694_v59  ;;  %v514_v57 = vadd.s32 80, %v9694_v59 }
 0x113   : > { %8488 = vmatmul.mubr.msk.bf16.vlgmr.msra.gmra.mrb[96].mxu0 %vm12070_vm2, %v9414_v5  ;;  %v554_v5 = vand.u32 15, %v506_v60 }
 0x114   : > { %8556 = vmatpush3.bf16.msra.mxu0 %v9007_v53  ;;  %8524 = vmatmul.mubr.msk.bf16.vlgmr.msra.gmra.mrb[96].mxu1 %vm12070_vm2, %v9416_v6  ;;  %v540_v6 = vand.u32 15, %v9694_v59 }
 0x115   : > { %8491 = vmatprep.mubr.msk.bf16.mxu0 %vm12070_vm2, %v9418_v7  ;;  %8527 = vmatprep.mubr.msk.bf16.mxu1 %vm12070_vm2, %v9420_v8  ;;  %vm9712_vm3 = vcmp.ge.s32.totalorder %v554_v5, 1  ;;  %v12195_v7 = vmov 0  ;;  %v510_v8 = vadd.s32 48, %v9694_v59  ;;  %v12207_v5 = vmov 0 }
 0x116   : > { %8557 = vmatprep.subr.bf16.mxu0 %v9008_v27  ;;  %v12196_v7 = vsel %vm9712_vm3, 4294967295, %v12195_v7  ;;  %vm9719_vm4 = vcmp.ge.s32.totalorder %v540_v6, 1  ;;  %v518_v6 = vadd.s32 112, %v9694_v59 }
 0x117   : > { %12197 = vst [vmem:[#allocation16_spill] sm:$0xff] %v12196_v7 }
 0x118   : > { %8558 = vmatpush3.bf16.msra.mxu0 %v9008_v27 }
 0x11b   : > { %8492 = vmatmul.mubr.msk.bf16.gmra.mrb[100].mxu0 %vm12070_vm2, %v9431_v18  ;;  %v12198_v18 = vmov 0 }
 0x11c   : > { %8528 = vmatmul.mubr.msk.bf16.gmra.mrb[100].mxu1 %vm12070_vm2, %v9433_v19  ;;  %8495 = vmatprep.mubr.msk.bf16.mxu0 %vm12070_vm2, %v9435_v20  ;;  %v12199_v18 = vsel %vm9719_vm4, 4294967295, %v12198_v18  ;;  %v508_v19 = vadd.s32 32, %v9694_v59 }
 0x11d   : > { %8531 = vmatprep.mubr.msk.bf16.mxu1 %vm12070_vm2, %v9437_v21  ;;  %12200 = vst [vmem:[#allocation17_spill] sm:$0xff] %v12199_v18 }
 0x11e   : > { %v568_v44 = vand.u32 15, %v508_v19 }
 0x120   : > { %vm9749_vm6 = vcmp.ge.s32.totalorder %v568_v44, 1 }
 0x121   : > { %v12205_v58 = vsel %vm9749_vm6, 4294967295, %v12204_v58 }
 0x122   : > { %12206 = vst [vmem:[#allocation19_spill] sm:$0xff] %v12205_v58 }
 0x123   : > { %8496 = vmatmul.mubr.msk.bf16.gmra.mrb[104].mxu0 %vm12070_vm2, %v9449_v32 }
 0x124   : > { %8532 = vmatmul.mubr.msk.bf16.gmra.mrb[104].mxu1 %vm12070_vm2, %v9451_v33  ;;  %8499 = vmatprep.mubr.msk.bf16.mxu0 %vm12070_vm2, %v9453_v34 }
 0x125   : > { %8535 = vmatprep.mubr.msk.bf16.mxu1 %vm12070_vm2, %v9458_v36  ;;  %v582_v36 = vand.u32 15, %v510_v8  ;;  %v12210_v8 = vmov 0 }
 0x126   : > { %v8273_v20 = vpop.f32.mrb[0].mxu0  ;;  %v8309_v21 = vpop.f32.mrb[0].mxu1 }
 0x127   : > { %v1131_v32 = vpop.f32.mrb[1].mxu0  ;;  %v1324_v33 = vsel %vm9712_vm3, %v8273_v20, 0.0  ;;  %v1533_v34 = vpop.f32.mrb[1].mxu1  ;;  %vm9742_vm5 = vcmp.ge.s32.totalorder %v582_v36, 1 }
 0x128   : > { %v8274_v31 = vpop.f32.mrb[2].mxu0  ;;  %v9726_v37 = vadd.f32 %v8309_v21, %v1324_v33  ;;  %v1322_v38 = vsel %vm9719_vm4, %v1131_v32, 0.0  ;;  %v8310_v39 = vpop.f32.mrb[2].mxu1  ;;  %v12202_v56 = vsel %vm9742_vm5, 4294967295, %v12201_v56 }
 0x129   : > { %v1134_v42 = vpop.f32.mrb[3].mxu0  ;;  %v9730_v43 = vadd.f32 %v1533_v34, %v1322_v38  ;;  %v1536_v50 = vpop.f32.mrb[3].mxu1  ;;  %v9732_v49 = vadd.f32 %v8310_v39, %v8274_v31  ;;  %12203 = vst [vmem:[#allocation18_spill] sm:$0xff] %v12202_v56 }
 0x12a   : > { %v9736_v51 = vadd.f32 %v1536_v50, %v1134_v42 }
 0x12b   : > { %8500 = vmatmul.mubr.msk.bf16.gmra.mrb[108].mxu0 %vm12070_vm2, %v9469_v45  ;;  %v512_v45 = vadd.s32 64, %v9694_v59 }
 0x12c   : > { %8536 = vmatmul.mubr.msk.bf16.gmra.mrb[108].mxu1 %vm12070_vm2, %v9471_v46  ;;  %8503 = vmatprep.mubr.msk.bf16.mxu0 %vm12070_vm2, %v9473_v47 }
 0x12d   : > { %8539 = vmatprep.mubr.msk.bf16.mxu1 %vm12070_vm2, %v9475_v48  ;;  %v610_v48 = vand.u32 15, %v514_v57  ;;  %v596_v23 = vand.u32 15, %v512_v45  ;;  %v12213_v57 = vmov 0  ;;  %v522_v45 = vadd.s32 144, %v9694_v59 }
 0x12e   : > { %v8277_v61 = vpop.f32.mrb[4].mxu0  ;;  %v8313_v46 = vpop.f32.mrb[4].mxu1 }
 0x12f   : > { %v1147_v4 = vpop.f32.mrb[5].mxu0  ;;  %v1328_v47 = vsel %vm9742_vm5, %v8277_v61, 0.0  ;;  %v1549_v9 = vpop.f32.mrb[5].mxu1  ;;  %vm9772_vm7 = vcmp.ge.s32.totalorder %v610_v48, 1  ;;  %vm9779_vm8 = vcmp.ge.s32.totalorder %v596_v23, 1  ;;  %v12216_v61 = vmov 0 }
 0x130   : > { %v8278_v11 = vpop.f32.mrb[6].mxu0  ;;  %v9756_v22 = vadd.f32 %v8313_v46, %v1328_v47  ;;  %v1326_v53 = vsel %vm9749_vm6, %v1147_v4, 0.0  ;;  %v8314_v40 = vpop.f32.mrb[6].mxu1  ;;  %v12208_v5 = vsel %vm9772_vm7, 4294967295, %v12207_v5  ;;  %v12211_v8 = vsel %vm9779_vm8, 4294967295, %v12210_v8 }
 0x131   : > { %v1150_v52 = vpop.f32.mrb[7].mxu0  ;;  %v9760_v55 = vadd.f32 %v1549_v9, %v1326_v53  ;;  %v1552_v27 = vpop.f32.mrb[7].mxu1  ;;  %v9762_v30 = vadd.f32 %v8314_v40, %v8278_v11  ;;  %12209 = vst [vmem:[#allocation20_spill] sm:$0xff] %v12208_v5  ;;  %12212 = vst [vmem:[#allocation21_spill] sm:$0xff] %v12211_v8  ;;  %v9009_v8 = vld [vmem:[%s9267_s8] sm:$0xff]  }
 0x132   : > { %v9766_v60 = vadd.f32 %v1552_v27, %v1150_v52  ;;  %8591 = vmatprep.subr.bf16.mxu1 %v9009_v8 }
 0x133   : > { %8504 = vmatmul.mubr.msk.bf16.gmra.mrb[112].mxu0 %vm12070_vm2, %v9486_v62  ;;  %v516_v62 = vadd.s32 96, %v9694_v59  ;;  %8592 = vmatpush3.bf16.msra.mxu1 %v9009_v8 }
 0x134   : > { %8540 = vmatmul.mubr.msk.bf16.gmra.mrb[112].mxu1 %vm12070_vm2, %v9488_v63  ;;  %8507 = vmatprep.mubr.msk.bf16.mxu0 %vm12070_vm2, %v9490_v0 }
 0x135   : > { %8543 = vmatprep.mubr.msk.bf16.mxu1 %vm12070_vm2, %v9492_v1  ;;  %v638_v1 = vand.u32 15, %v518_v6  ;;  %v624_v39 = vand.u32 15, %v516_v62 }
 0x136   : > { %v8281_v19 = vpop.f32.mrb[8].mxu0  ;;  %v8317_v63 = vpop.f32.mrb[8].mxu1 }
 0x137   : > { %v1163_v20 = vpop.f32.mrb[9].mxu0  ;;  %v1332_v0 = vsel %vm9772_vm7, %v8281_v19, 0.0  ;;  %v1565_v21 = vpop.f32.mrb[9].mxu1  ;;  %vm9802_vm9 = vcmp.ge.s32.totalorder %v638_v1, 1  ;;  %vm9809_vm10 = vcmp.ge.s32.totalorder %v624_v39, 1  ;;  %v3106_v19 = vld [vmem:[#allocation2 + $0x110] sm:$0xff] }
 0x138   : > { %v8282_v32 = vpop.f32.mrb[10].mxu0  ;;  %v9786_v33 = vadd.f32 %v8317_v63, %v1332_v0  ;;  %v1330_v34 = vsel %vm9779_vm8, %v1163_v20, 0.0  ;;  %v8318_v31 = vpop.f32.mrb[10].mxu1  ;;  %v12214_v57 = vsel %vm9802_vm9, 4294967295, %v12213_v57  ;;  %v12217_v61 = vsel %vm9809_vm10, 4294967295, %v12216_v61  ;;  %v3107_v63 = vld [vmem:[#allocation2 + $0x118] sm:$0xff] }
 0x139   : > { %v1166_v38 = vpop.f32.mrb[11].mxu0  ;;  %v9790_v36 = vadd.f32 %v1565_v21, %v1330_v34  ;;  %v1568_v42 = vpop.f32.mrb[11].mxu1  ;;  %v9792_v44 = vadd.f32 %v8318_v31, %v8282_v32  ;;  %12215 = vst [vmem:[#allocation22_spill] sm:$0xff] %v12214_v57  ;;  %12218 = vst [vmem:[#allocation23_spill] sm:$0xff] %v12217_v61  ;;  %v12219_v20 = vmov 0  ;;  %v526_v0 = vadd.s32 176, %v9694_v59 }
 0x13a   : > { %v9796_v50 = vadd.f32 %v1568_v42, %v1166_v38  ;;  %v3445_v21 = vld [vmem:[#allocation2 + $0x119] sm:$0xff]  ;;  %v12222_v32 = vmov 0  ;;  %v3123_v31 = vpack.c.bf16 %v3107_v63, %v3106_v19 }
 0x13b   : > { %8508 = vmatmul.mubr.msk.bf16.gmra.mrb[116].mxu0 %vm12070_vm2, %v9502_v14  ;;  %v520_v14 = vadd.s32 128, %v9694_v59 }
 0x13c   : > { %8544 = vmatmul.mubr.msk.bf16.gmra.mrb[116].mxu1 %vm12070_vm2, %v9504_v15  ;;  %8511 = vmatprep.mubr.msk.bf16.mxu0 %vm12070_vm2, %v9506_v16 }
 0x13d   : > { %8547 = vmatprep.mubr.msk.bf16.mxu1 %vm12070_vm2, %v9508_v17  ;;  %v666_v17 = vand.u32 15, %v522_v45  ;;  %v652_v23 = vand.u32 15, %v520_v14 }
 0x13e   : > { %v8285_v46 = vpop.f32.mrb[12].mxu0  ;;  %v8321_v15 = vpop.f32.mrb[12].mxu1 }
 0x13f   : > { %v1179_v4 = vpop.f32.mrb[13].mxu0  ;;  %v1336_v16 = vsel %vm9802_vm9, %v8285_v46, 0.0  ;;  %v1581_v47 = vpop.f32.mrb[13].mxu1  ;;  %vm9832_vm11 = vcmp.ge.s32.totalorder %v666_v17, 1  ;;  %vm9839_vm12 = vcmp.ge.s32.totalorder %v652_v23, 1  ;;  %v694_v46 = vand.u32 15, %v526_v0 }
 0x140   : > { %v8286_v9 = vpop.f32.mrb[14].mxu0  ;;  %v9816_v11 = vadd.f32 %v8321_v15, %v1336_v16  ;;  %v1334_v53 = vsel %vm9809_vm10, %v1179_v4, 0.0  ;;  %v8322_v48 = vpop.f32.mrb[14].mxu1  ;;  %v12220_v20 = vsel %vm9832_vm11, 4294967295, %v12219_v20  ;;  %v12223_v32 = vsel %vm9839_vm12, 4294967295, %v12222_v32 }
 0x141   : > { %v1182_v40 = vpop.f32.mrb[15].mxu0  ;;  %v9820_v52 = vadd.f32 %v1581_v47, %v1334_v53  ;;  %v1584_v27 = vpop.f32.mrb[15].mxu1  ;;  %v9822_v6 = vadd.f32 %v8322_v48, %v8286_v9  ;;  %12221 = vst [vmem:[#allocation24_spill] sm:$0xff] %v12220_v20  ;;  %12224 = vst [vmem:[#allocation25_spill] sm:$0xff] %v12223_v32  ;;  %vm9860_vm13 = vcmp.ge.s32.totalorder %v694_v46, 1  ;;  %v12225_v48 = vmov 0 }
 0x142   : > { %v9826_v62 = vadd.f32 %v1584_v27, %v1182_v40  ;;  %v12226_v48 = vsel %vm9860_vm13, 4294967295, %v12225_v48  ;;  %v530_v40 = vadd.s32 208, %v9694_v59  ;;  %v12228_v23 = vmov 0 }
 0x143   : > { %8512 = vmatmul.mubr.msk.bf16.gmra.mrb[120].mxu0 %vm12070_vm2, %v9518_v28  ;;  %v3444_v28 = vld [vmem:[#allocation2 + $0x111] sm:$0xff]  ;;  %12227 = vst [vmem:[#allocation26_spill] sm:$0xff] %v12226_v48  ;;  %v528_v27 = vadd.s32 192, %v9694_v59  ;;  %v12231_v46 = vmov 0  ;;  %v12270_v20 = vmov 0 }
 0x144   : > { %8548 = vmatmul.mubr.msk.bf16.gmra.mrb[120].mxu1 %vm12070_vm2, %v9520_v29  ;;  %8515 = vmatprep.mubr.msk.bf16.mxu0 %vm12070_vm2, %v9609_v10  ;;  %v524_v29 = vadd.s32 160, %v9694_v59  ;;  %v3461_v45 = vpack.c.bf16 %v3445_v21, %v3444_v28 }
 0x145   : > { %8551 = vmatprep.mubr.msk.bf16.mxu1 %vm12070_vm2, %v9673_v24 }
 0x146   : > { %v8289_v10 = vpop.f32.mrb[16].mxu0  ;;  %v8325_v34 = vpop.f32.mrb[16].mxu1  ;;  %v680_v47 = vand.u32 15, %v524_v29 }
 0x147   : > { %v1195_v1 = vpop.f32.mrb[17].mxu0  ;;  %v1340_v38 = vsel %vm9832_vm11, %v8289_v10, 0.0  ;;  %v1597_v39 = vpop.f32.mrb[17].mxu1 }
 0x148   : > { %v8290_v42 = vpop.f32.mrb[18].mxu0  ;;  %v9846_v14 = vadd.f32 %v8325_v34, %v1340_v38  ;;  %v1338_v24 = vsel %vm9839_vm12, %v1195_v1, 0.0  ;;  %v8326_v15 = vpop.f32.mrb[18].mxu1  ;;  %vm9865_vm14 = vcmp.ge.s32.totalorder %v680_v47, 1  ;;  %v722_v34 = vand.u32 15, %v530_v40 }
 0x149   : > { %v1198_v4 = vpop.f32.mrb[19].mxu0  ;;  %v9850_v16 = vadd.f32 %v1597_v39, %v1338_v24  ;;  %v1600_v9 = vpop.f32.mrb[19].mxu1  ;;  %v9852_v53 = vadd.f32 %v8326_v15, %v8290_v42  ;;  %v12229_v23 = vsel %vm9865_vm14, 4294967295, %v12228_v23  ;;  %v708_v39 = vand.u32 15, %v528_v27 }
 0x14a   : > { %v9855_v17 = vadd.f32 %v1600_v9, %v1198_v4  ;;  %12230 = vst [vmem:[#allocation27_spill] sm:$0xff] %v12229_v23  ;;  %vm9886_vm15 = vcmp.ge.s32.totalorder %v722_v34, 1  ;;  %v534_v15 = vadd.s32 240, %v9694_v59  ;;  %v12234_v4 = vmov 0 }
 0x14b   : > { %8516 = vmatmul.mubr.msk.bf16.gmra.mrb[124].mxu0 %vm12070_vm2, %v3123_v31  ;;  %v12232_v46 = vsel %vm9886_vm15, 4294967295, %v12231_v46  ;;  %vm9891_vm0 = vcmp.ge.s32.totalorder %v708_v39, 1  ;;  %v532_v47 = vadd.s32 224, %v9694_v59 }
 0x14c   : > { %8552 = vmatmul.mubr.msk.bf16.gmra.mrb[124].mxu1 %vm12070_vm2, %v3461_v45  ;;  %8559 = vmatprep.mubr.msk.bf16.mxu0 %vm12070_vm2, %v9531_v41  ;;  %12233 = vst [vmem:[#allocation28_spill] sm:$0xff] %v12232_v46  ;;  %v12235_v4 = vsel %vm9891_vm0, 4294967295, %v12234_v4 }
 0x14d   : > { %12236 = vst [vmem:[#allocation29_spill] sm:$0xff] %v12235_v4  ;;  %v736_v34 = vand.u32 15, %v532_v47 }
 0x14e   : > { %v8293_v19 = vpop.f32.mrb[20].mxu0  ;;  %v8329_v63 = vpop.f32.mrb[20].mxu1 }
 0x14f   : > { %v1211_v0 = vpop.f32.mrb[21].mxu0  ;;  %v1344_v28 = vsel %vm9860_vm13, %v8293_v19, 0.0  ;;  %v1613_v21 = vpop.f32.mrb[21].mxu1 }
 0x150   : > { %v8294_v41 = vpop.f32.mrb[22].mxu0  ;;  %v9872_v29 = vadd.f32 %v8329_v63, %v1344_v28  ;;  %v1342_v10 = vsel %vm9865_vm14, %v1211_v0, 0.0  ;;  %v8330_v1 = vpop.f32.mrb[22].mxu1  ;;  %v750_v28 = vand.u32 15, %v534_v15  ;;  %v12241_v15 = vmov 0 }
 0x151   : > { %v1214_v31 = vpop.f32.mrb[23].mxu0  ;;  %v9876_v38 = vadd.f32 %v1613_v21, %v1342_v10  ;;  %v1616_v42 = vpop.f32.mrb[23].mxu1  ;;  %v9878_v45 = vadd.f32 %v8330_v1, %v8294_v41 }
 0x152   : > { %v9882_v24 = vadd.f32 %v1616_v42, %v1214_v31  ;;  %vm9912_vm1 = vcmp.ge.s32.totalorder %v750_v28, 1  ;;  %v12238_v42 = vmov 0 }
 0x153   : > { %8560 = vmatmul.mubr.msk.bf16.vlgmr.msra.gmra.mrb[128].mxu0 %vm12070_vm2, %v9547_v54  ;;  %v12239_v42 = vsel %vm9912_vm1, 4294967295, %v12238_v42 }
 0x154   : > { %8563 = vmatprep.mubr.msk.bf16.mxu0 %vm12070_vm2, %v9552_v35  ;;  %12240 = vst [vmem:[#allocation31_spill] sm:$0xff] %v12239_v42 }
 0x156   : > { %v8297_v9 = vpop.f32.mrb[24].mxu0  ;;  %v8333_v40 = vpop.f32.mrb[24].mxu1 }
 0x157   : > { %v1227_v54 = vpop.f32.mrb[25].mxu0  ;;  %v1348_v27 = vsel %vm9886_vm15, %v8297_v9, 0.0  ;;  %v1629_v19 = vpop.f32.mrb[25].mxu1  ;;  %v507_v9 = vadd.s32 24, %v9694_v59 }
 0x158   : > { %v8298_v35 = vpop.f32.mrb[26].mxu0  ;;  %v9898_v63 = vadd.f32 %v8333_v40, %v1348_v27  ;;  %v1346_v0 = vsel %vm9891_vm0, %v1227_v54, 0.0  ;;  %v8334_v21 = vpop.f32.mrb[26].mxu1  ;;  %vm9916_vm0 = vcmp.ge.s32.totalorder %v736_v34, 1 }
 0x159   : > { %v1230_v41 = vpop.f32.mrb[27].mxu0  ;;  %v9902_v10 = vadd.f32 %v1629_v19, %v1346_v0  ;;  %v1632_v1 = vpop.f32.mrb[27].mxu1  ;;  %v9904_v31 = vadd.f32 %v8334_v21, %v8298_v35  ;;  %v12242_v15 = vsel %vm9916_vm0, 4294967295, %v12241_v15 }
 0x15a   : > { %v9908_v39 = vadd.f32 %v1632_v1, %v1230_v41  ;;  %12243 = vst [vmem:[#allocation32_spill] sm:$0xff] %v12242_v15  ;;  %v561_v1 = vand.u32 15, %v507_v9  ;;  %v12248_v15 = vmov 0  ;;  %v511_v9 = vadd.s32 56, %v9694_v59 }
 0x15b   : > { %8564 = vmatmul.mubr.msk.bf16.gmra.mrb[132].mxu0 %vm12070_vm2, %v9564_v2  ;;  %v505_v2 = vadd.s32 8, %v9694_v59 }
 0x15c   : > { %12237 = vst [vmem:[#allocation30_spill] sm:$0xff] %v9908_v39  ;;  %8567 = vmatprep.mubr.msk.bf16.mxu0 %vm12070_vm2, %v9566_v3 }
 0x15d   : > { %v547_v42 = vand.u32 15, %v505_v2  ;;  %v509_v2 = vadd.s32 40, %v9694_v59 }
 0x15e   : > { %v8301_v47 = vpop.f32.mrb[28].mxu0  ;;  %v8337_v40 = vpop.f32.mrb[28].mxu1 }
 0x15f   : > { %v1243_v54 = vpop.f32.mrb[29].mxu0  ;;  %v1352_v27 = vsel %vm9912_vm1, %v8301_v47, 0.0  ;;  %v1645_v19 = vpop.f32.mrb[29].mxu1  ;;  %vm9944_vm1 = vcmp.le.s32.totalorder %v547_v42, 14 }
 0x160   : > { %v8302_v3 = vpop.f32.mrb[30].mxu0  ;;  %v9924_v35 = vadd.f32 %v8337_v40, %v1352_v27  ;;  %v1350_v0 = vsel %vm9916_vm0, %v1243_v54, 0.0  ;;  %v8338_v28 = vpop.f32.mrb[30].mxu1  ;;  %v3736_v40 = vld [vmem:[#allocation2 + $0xa2] sm:$0xff]  ;;  %v3737_v27 = vld [vmem:[#allocation2 + $0xaa] sm:$0xff]  ;;  %vm9938_vm0 = vcmp.le.s32.totalorder %v561_v1, 14 }
 0x161   : > { %v1246_v21 = vpop.f32.mrb[31].mxu0  ;;  %v9928_v41 = vadd.f32 %v1645_v19, %v1350_v0  ;;  %v1648_v34 = vpop.f32.mrb[31].mxu1  ;;  %v9930_v39 = vadd.f32 %v8338_v28, %v8302_v3  ;;  %v12249_v15 = vsel %vm9938_vm0, 4294967295, %v12248_v15  ;;  %v3760_v1 = vpack.c.bf16 %v3737_v27, %v3736_v40 }
 0x162   : > { %12244 = vst [vmem:[#allocation33_spill] sm:$0xff] %v9924_v35  ;;  %v9934_v47 = vadd.f32 %v1648_v34, %v1246_v21  ;;  %v575_v27 = vand.u32 15, %v509_v2 }
 0x163   : > { %12245 = vst [vmem:[#allocation34_spill] sm:$0xff] %v9928_v41  ;;  %12246 = vst [vmem:[#allocation35_spill] sm:$0xff] %v9930_v39  ;;  %8568 = vmatmul.mubr.msk.bf16.gmra.mrb[136].mxu0 %vm12070_vm2, %v9576_v12  ;;  %v12250_v12 = vmov 0 }
 0x164   : > { %12247 = vst [vmem:[#allocation36_spill] sm:$0xff] %v9934_v47  ;;  %8571 = vmatprep.mubr.msk.bf16.mxu0 %vm12070_vm2, %v9578_v13  ;;  %v12251_v12 = vsel %vm9944_vm1, 4294967295, %v12250_v12 }
 0x166   : > { %v8345_v54 = vpop.f32.mrb[32].mxu0  ;;  %v8381_v0 = vpop.f32.mrb[32].mxu1 }
 0x167   : > { %v2064_v19 = vadd.f32 %v8345_v54, %v9726_v37  ;;  %v1839_v3 = vpop.f32.mrb[33].mxu0  ;;  %v2370_v28 = vsel %vm9712_vm3, %v8381_v0, 0.0  ;;  %v2241_v34 = vpop.f32.mrb[33].mxu1  ;;  %v589_v0 = vand.u32 15, %v511_v9  ;;  %vm9977_vm3 = vcmp.le.s32.totalorder %v575_v27, 14 }
 0x168   : > { %v2062_v13 = vadd.f32 %v1839_v3, %v9730_v43  ;;  %v8346_v21 = vpop.f32.mrb[34].mxu0  ;;  %v2368_v42 = vsel %vm9719_vm4, %v2241_v34, 0.0  ;;  %v8382_v39 = vpop.f32.mrb[34].mxu1  ;;  %v3741_v34 = vld [vmem:[#allocation2 + $0xca] sm:$0xff] }
 0x169   : > { %v9952_v47 = vadd.f32 %v2370_v28, %v2064_v19  ;;  %v2033_v37 = vsel %vm9938_vm0, %v8346_v21, 0.0  ;;  %v1842_v54 = vpop.f32.mrb[35].mxu0  ;;  %v2244_v3 = vpop.f32.mrb[35].mxu1  ;;  %v3738_v28 = vld [vmem:[#allocation2 + $0xb2] sm:$0xff]  ;;  %v3739_v21 = vld [vmem:[#allocation2 + $0xba] sm:$0xff]  ;;  %vm9971_vm4 = vcmp.le.s32.totalorder %v589_v0, 14 }
 0x16a   : > { %v2065_v41 = vadd.f32 %v2033_v37, %v9732_v49  ;;  %v9959_v35 = vadd.f32 %v2368_v42, %v2062_v13  ;;  %v2031_v43 = vsel %vm9944_vm1, %v1842_v54, 0.0  ;;  %v3740_v13 = vld [vmem:[#allocation2 + $0xc2] sm:$0xff]  ;;  %v12252_v42 = vmov 0 }
 0x16b   : > { %v2063_v40 = vadd.f32 %v2031_v43, %v9736_v51  ;;  %8572 = vmatmul.mubr.msk.bf16.gmra.mrb[140].mxu0 %vm12070_vm2, %v9588_v26  ;;  %v12253_v42 = vsel %vm9971_vm4, 4294967295, %v12252_v42  ;;  %v515_v51 = vadd.s32 88, %v9694_v59  ;;  %v3761_v2 = vpack.c.bf16 %v3739_v21, %v3738_v28  ;;  %v12296_v61 = vld [vmem:[#allocation35_spill] sm:$0xff] }
 0x16c   : > { %v9966_v19 = vadd.f32 %v8382_v39, %v2065_v41  ;;  %8575 = vmatprep.mubr.msk.bf16.mxu0 %vm12070_vm2, %v3760_v1  ;;  %v12254_v41 = vmov 0  ;;  %v513_v1 = vadd.s32 72, %v9694_v59 }
 0x16d   : > { %v9969_v49 = vadd.f32 %v2244_v3, %v2063_v40  ;;  %v12255_v41 = vsel %vm9977_vm3, 4294967295, %v12254_v41  ;;  %v3762_v40 = vpack.c.bf16 %v3741_v34, %v3740_v13 }
 0x16e   : > { %v8349_v37 = vpop.f32.mrb[36].mxu0  ;;  %v603_v34 = vand.u32 15, %v513_v1 }
 0x16f   : > { %v2068_v26 = vadd.f32 %v8349_v37, %v9756_v22  ;;  %v1855_v9 = vpop.f32.mrb[37].mxu0  ;;  %v8385_v39 = vpop.f32.mrb[36].mxu1 }
 0x170   : > { %v2066_v54 = vadd.f32 %v1855_v9, %v9760_v55  ;;  %v2374_v43 = vsel %vm9742_vm5, %v8385_v39, 0.0  ;;  %v8350_v3 = vpop.f32.mrb[38].mxu0  ;;  %v2257_v0 = vpop.f32.mrb[37].mxu1  ;;  %v617_v39 = vand.u32 15, %v515_v51  ;;  %vm10009_vm5 = vcmp.le.s32.totalorder %v603_v34, 14 }
 0x171   : > { %v9985_v18 = vadd.f32 %v2374_v43, %v2068_v26  ;;  %v2037_v22 = vsel %vm9971_vm4, %v8350_v3, 0.0  ;;  %v2372_v27 = vsel %vm9749_vm6, %v2257_v0, 0.0  ;;  %v1858_v37 = vpop.f32.mrb[39].mxu0  ;;  %v8386_v28 = vpop.f32.mrb[38].mxu1  ;;  %v3742_v43 = vld [vmem:[#allocation2 + $0xd2] sm:$0xff]  ;;  %v3743_v3 = vld [vmem:[#allocation2 + $0xda] sm:$0xff] }
 0x172   : > { %v2069_v21 = vadd.f32 %v2037_v22, %v9762_v30  ;;  %v9992_v7 = vadd.f32 %v2372_v27, %v2066_v54  ;;  %v2035_v55 = vsel %vm9977_vm3, %v1858_v37, 0.0  ;;  %v2260_v9 = vpop.f32.mrb[39].mxu1  ;;  %v3744_v30 = vld [vmem:[#allocation2 + $0xe2] sm:$0xff]  ;;  %v3745_v54 = vld [vmem:[#allocation2 + $0xea] sm:$0xff]  ;;  %vm10003_vm6 = vcmp.le.s32.totalorder %v617_v39, 14 }
 0x173   : > { %v2067_v13 = vadd.f32 %v2035_v55, %v9766_v60  ;;  %8576 = vmatmul.mubr.msk.bf16.gmra.mrb[144].mxu0 %vm12070_vm2, %v3761_v2  ;;  %v12256_v27 = vmov 0  ;;  %v519_v60 = vadd.s32 120, %v9694_v59  ;;  %v12258_v37 = vmov 0 }
 0x174   : > { %v9998_v26 = vadd.f32 %v8386_v28, %v2069_v21  ;;  %8579 = vmatprep.mubr.msk.bf16.mxu0 %vm12070_vm2, %v3762_v40  ;;  %v12257_v27 = vsel %vm10003_vm6, 4294967295, %v12256_v27  ;;  %v12259_v37 = vsel %vm10009_vm5, 4294967295, %v12258_v37  ;;  %v3763_v40 = vpack.c.bf16 %v3743_v3, %v3742_v43 }
 0x175   : > { %v10001_v0 = vadd.f32 %v2260_v9, %v2067_v13  ;;  %v517_v28 = vadd.s32 104, %v9694_v59  ;;  %v3764_v13 = vpack.c.bf16 %v3745_v54, %v3744_v30  ;;  %v645_v30 = vand.u32 15, %v519_v60 }
 0x176   : > { %v8353_v22 = vpop.f32.mrb[40].mxu0  ;;  %v523_v60 = vadd.s32 152, %v9694_v59 }
 0x177   : > { %v2072_v51 = vadd.f32 %v8353_v22, %v9786_v33  ;;  %v1871_v2 = vpop.f32.mrb[41].mxu0  ;;  %v8389_v1 = vpop.f32.mrb[40].mxu1 }
 0x178   : > { %v2070_v21 = vadd.f32 %v1871_v2, %v9790_v36  ;;  %v2378_v55 = vsel %vm9772_vm7, %v8389_v1, 0.0  ;;  %v8354_v9 = vpop.f32.mrb[42].mxu0  ;;  %v2273_v39 = vpop.f32.mrb[41].mxu1 }
 0x179   : > { %v10017_v58 = vadd.f32 %v2378_v55, %v2072_v51  ;;  %v2041_v33 = vsel %vm10003_vm6, %v8354_v9, 0.0  ;;  %v2376_v34 = vsel %vm9779_vm8, %v2273_v39, 0.0  ;;  %v1874_v43 = vpop.f32.mrb[43].mxu0  ;;  %v8390_v3 = vpop.f32.mrb[42].mxu1  ;;  %v631_v51 = vand.u32 15, %v517_v28  ;;  %v3746_v9 = vld [vmem:[#allocation2 + $0xf2] sm:$0xff] }
 0x17a   : > { %v2073_v22 = vadd.f32 %v2041_v33, %v9792_v44  ;;  %v10024_v36 = vadd.f32 %v2376_v34, %v2070_v21  ;;  %v2039_v2 = vsel %vm10009_vm5, %v1874_v43, 0.0  ;;  %v2276_v1 = vpop.f32.mrb[43].mxu1  ;;  %v3747_v39 = vld [vmem:[#allocation2 + $0xfa] sm:$0xff]  ;;  %vm10036_vm8 = vcmp.le.s32.totalorder %v645_v30, 14 }
 0x17b   : > { %v2071_v54 = vadd.f32 %v2039_v2, %v9796_v50  ;;  %8580 = vmatmul.mubr.msk.bf16.gmra.mrb[148].mxu0 %vm12070_vm2, %v3763_v40  ;;  %v12260_v33 = vmov 0  ;;  %vm10042_vm7 = vcmp.le.s32.totalorder %v631_v51, 14  ;;  %v12262_v34 = vmov 0 }
 0x17c   : > { %v10030_v55 = vadd.f32 %v8390_v3, %v2073_v22  ;;  %8583 = vmatprep.mubr.msk.bf16.mxu0 %vm12070_vm2, %v3764_v13  ;;  %v12261_v33 = vsel %vm10036_vm8, 4294967295, %v12260_v33  ;;  %v12263_v34 = vsel %vm10042_vm7, 4294967295, %v12262_v34  ;;  %v3765_v13 = vpack.c.bf16 %v3747_v39, %v3746_v9 }
 0x17d   : > { %v10034_v44 = vadd.f32 %v2276_v1, %v2071_v54  ;;  %v521_v43 = vadd.s32 136, %v9694_v59 }
 0x17e   : > { %v8357_v21 = vpop.f32.mrb[44].mxu0 }
 0x17f   : > { %v2076_v50 = vadd.f32 %v8357_v21, %v9816_v11  ;;  %v1887_v40 = vpop.f32.mrb[45].mxu0  ;;  %v8393_v28 = vpop.f32.mrb[44].mxu1 }
 0x180   : > { %v2074_v3 = vadd.f32 %v1887_v40, %v9820_v52  ;;  %v2382_v22 = vsel %vm9802_vm9, %v8393_v28, 0.0  ;;  %v8358_v2 = vpop.f32.mrb[46].mxu0  ;;  %v2289_v1 = vpop.f32.mrb[45].mxu1  ;;  %v673_v40 = vand.u32 15, %v523_v60  ;;  %v659_v28 = vand.u32 15, %v521_v43 }
 0x181   : > { %v10050_v30 = vadd.f32 %v2382_v22, %v2076_v50  ;;  %v2045_v11 = vsel %vm10036_vm8, %v8358_v2, 0.0  ;;  %v2380_v54 = vsel %vm9809_vm10, %v2289_v1, 0.0  ;;  %v1890_v51 = vpop.f32.mrb[47].mxu0  ;;  %v8394_v9 = vpop.f32.mrb[46].mxu1  ;;  %v3750_v2 = vld [vmem:[#allocation2 + $0x112] sm:$0xff]  ;;  %v3751_v1 = vld [vmem:[#allocation2 + $0x11a] sm:$0xff] }
 0x182   : > { %v2077_v39 = vadd.f32 %v2045_v11, %v9822_v6  ;;  %v10057_v8 = vadd.f32 %v2380_v54, %v2074_v3  ;;  %v2043_v52 = vsel %vm10042_vm7, %v1890_v51, 0.0  ;;  %v2292_v21 = vpop.f32.mrb[47].mxu1  ;;  %vm10069_vm10 = vcmp.le.s32.totalorder %v673_v40, 14 }
 0x183   : > { %v2075_v50 = vadd.f32 %v2043_v52, %v9826_v62  ;;  %8584 = vmatmul.mubr.msk.bf16.gmra.mrb[152].mxu0 %vm12070_vm2, %v3765_v13  ;;  %v12264_v11 = vmov 0  ;;  %v527_v60 = vadd.s32 184, %v9694_v59  ;;  %vm10075_vm9 = vcmp.le.s32.totalorder %v659_v28, 14 }
 0x184   : > { %v10063_v22 = vadd.f32 %v8394_v9, %v2077_v39  ;;  %8587 = vmatprep.mubr.msk.bf16.mxu0 %vm12070_vm2, %v9675_v25  ;;  %v12265_v11 = vsel %vm10069_vm10, 4294967295, %v12264_v11  ;;  %v12267_v54 = vmov 0  ;;  %v3767_v25 = vpack.c.bf16 %v3751_v1, %v3750_v2 }
 0x185   : > { %v10067_v6 = vadd.f32 %v2292_v21, %v2075_v50  ;;  %12266 = vst [vmem:[#allocation37_spill] sm:$0xff] %v12265_v11  ;;  %v12268_v54 = vsel %vm10075_vm9, 4294967295, %v12267_v54  ;;  %v525_v51 = vadd.s32 168, %v9694_v59 }
 0x186   : > { %v8361_v3 = vpop.f32.mrb[48].mxu0  ;;  %12269 = vst [vmem:[#allocation38_spill] sm:$0xff] %v12268_v54 }
 0x187   : > { %v2080_v62 = vadd.f32 %v8361_v3, %v9846_v14  ;;  %v1903_v13 = vpop.f32.mrb[49].mxu0  ;;  %v8397_v43 = vpop.f32.mrb[48].mxu1 }
 0x188   : > { %v2078_v9 = vadd.f32 %v1903_v13, %v9850_v16  ;;  %v2386_v39 = vsel %vm9832_vm11, %v8397_v43, 0.0  ;;  %v8362_v52 = vpop.f32.mrb[50].mxu0  ;;  %v2305_v21 = vpop.f32.mrb[49].mxu1  ;;  %v701_v43 = vand.u32 15, %v527_v60 }
 0x189   : > { %v10083_v40 = vadd.f32 %v2386_v39, %v2080_v62  ;;  %v2049_v14 = vsel %vm10069_vm10, %v8362_v52, 0.0  ;;  %v2384_v50 = vsel %vm9839_vm12, %v2305_v21, 0.0  ;;  %v1906_v28 = vpop.f32.mrb[51].mxu0  ;;  %v8398_v3 = vpop.f32.mrb[50].mxu1  ;;  %v687_v39 = vand.u32 15, %v525_v51 }
 0x18a   : > { %v2081_v2 = vadd.f32 %v2049_v14, %v9852_v53  ;;  %v10090_v1 = vadd.f32 %v2384_v50, %v2078_v9  ;;  %v2047_v16 = vsel %vm10075_vm9, %v1906_v28, 0.0  ;;  %v2308_v13 = vpop.f32.mrb[51].mxu1  ;;  %vm10100_vm12 = vcmp.le.s32.totalorder %v701_v43, 14 }
 0x18b   : > { %v2079_v62 = vadd.f32 %v2047_v16, %v9855_v17  ;;  %8588 = vmatmul.mubr.msk.bf16.gmra.mrb[156].mxu0 %vm12070_vm2, %v3767_v25  ;;  %v12271_v20 = vsel %vm10100_vm12, 4294967295, %v12270_v20  ;;  %v531_v53 = vadd.s32 216, %v9694_v59  ;;  %vm10106_vm11 = vcmp.le.s32.totalorder %v687_v39, 14 }
 0x18c   : > { %v10096_v52 = vadd.f32 %v8398_v3, %v2081_v2  ;;  %12272 = vst [vmem:[#allocation39_spill] sm:$0xff] %v12271_v20  ;;  %v12273_v17 = vmov 0  ;;  %v529_v25 = vadd.s32 200, %v9694_v59 }
 0x18d   : > { %v10098_v32 = vadd.f32 %v2308_v13, %v2079_v62  ;;  %v12274_v17 = vsel %vm10106_vm11, 4294967295, %v12273_v17 }
 0x18e   : > { %v8365_v21 = vpop.f32.mrb[52].mxu0  ;;  %12275 = vst [vmem:[#allocation40_spill] sm:$0xff] %v12274_v17 }
 0x18f   : > { %v2084_v9 = vadd.f32 %v8365_v21, %v9872_v29  ;;  %v1919_v14 = vpop.f32.mrb[53].mxu0  ;;  %v8401_v60 = vpop.f32.mrb[52].mxu1 }
 0x190   : > { %v2082_v51 = vadd.f32 %v1919_v14, %v9876_v38  ;;  %v2390_v50 = vsel %vm9860_vm13, %v8401_v60, 0.0  ;;  %v8366_v28 = vpop.f32.mrb[54].mxu0  ;;  %v2321_v3 = vpop.f32.mrb[53].mxu1  ;;  %v729_v14 = vand.u32 15, %v531_v53  ;;  %v715_v60 = vand.u32 15, %v529_v25 }
 0x191   : > { %v10114_v2 = vadd.f32 %v2390_v50, %v2084_v9  ;;  %v2053_v29 = vsel %vm10100_vm12, %v8366_v28, 0.0  ;;  %v2388_v16 = vsel %vm9865_vm14, %v2321_v3, 0.0  ;;  %v1922_v13 = vpop.f32.mrb[55].mxu0  ;;  %v8402_v43 = vpop.f32.mrb[54].mxu1  ;;  %v12276_v3 = vmov 0 }
 0x192   : > { %v2085_v62 = vadd.f32 %v2053_v29, %v9878_v45  ;;  %v10121_v39 = vadd.f32 %v2388_v16, %v2082_v51  ;;  %v2051_v38 = vsel %vm10106_vm11, %v1922_v13, 0.0  ;;  %v2324_v21 = vpop.f32.mrb[55].mxu1  ;;  %vm10130_vm2 = vcmp.le.s32.totalorder %v729_v14, 14 }
 0x193   : > { %v2083_v9 = vadd.f32 %v2051_v38, %v9882_v24  ;;  %v12277_v3 = vsel %vm10130_vm2, 4294967295, %v12276_v3  ;;  %v535_v45 = vadd.s32 248, %v9694_v59  ;;  %vm10136_vm14 = vcmp.le.s32.totalorder %v715_v60, 14 }
 0x194   : > { %v10126_v50 = vadd.f32 %v8402_v43, %v2085_v62  ;;  %12278 = vst [vmem:[#allocation41_spill] sm:$0xff] %v12277_v3  ;;  %v12279_v53 = vmov 0  ;;  %v533_v24 = vadd.s32 232, %v9694_v59  ;;  %vm12282_vm13 = vnez %v12235_v4 }
 0x195   : > { %v10128_v28 = vadd.f32 %v2324_v21, %v2083_v9  ;;  %v12280_v53 = vsel %vm10136_vm14, 4294967295, %v12279_v53  ;;  %v12284_v4 = vmov 0 }
 0x196   : > { %v8369_v23 = vpop.f32.mrb[56].mxu0  ;;  %12281 = vst [vmem:[#allocation42_spill] sm:$0xff] %v12280_v53 }
 0x197   : > { %v2088_v51 = vadd.f32 %v8369_v23, %v9898_v63  ;;  %v1935_v29 = vpop.f32.mrb[57].mxu0  ;;  %v8405_v16 = vpop.f32.mrb[56].mxu1 }
 0x198   : > { %v2086_v25 = vadd.f32 %v1935_v29, %v9902_v10  ;;  %v2394_v13 = vsel %vm9886_vm15, %v8405_v16, 0.0  ;;  %v8370_v43 = vpop.f32.mrb[58].mxu0  ;;  %v2337_v62 = vpop.f32.mrb[57].mxu1  ;;  %v757_v29 = vand.u32 15, %v535_v45  ;;  %v12283_v16 = vld [vmem:[#allocation30_spill] sm:$0xff]  ;;  %v12288_v45 = vmov 0 }
 0x199   : > { %v10144_v38 = vadd.f32 %v2394_v13, %v2088_v51  ;;  %v2057_v23 = vsel %vm10130_vm2, %v8370_v43, 0.0  ;;  %v2392_v63 = vsel %vm12282_vm13, %v2337_v62, 0.0  ;;  %v1938_v21 = vpop.f32.mrb[59].mxu0  ;;  %v8406_v14 = vpop.f32.mrb[58].mxu1  ;;  %v743_v13 = vand.u32 15, %v533_v24  ;;  %v9010_v43 = vld [vmem:[%s9267_s8 + $0x8] sm:$0xff]  }
 0x19a   : > { %v2089_v59 = vadd.f32 %v2057_v23, %v9904_v31  ;;  %v10151_v9 = vadd.f32 %v2392_v63, %v2086_v25  ;;  %v2055_v10 = vsel %vm10136_vm14, %v1938_v21, 0.0  ;;  %v2340_v60 = vpop.f32.mrb[59].mxu1  ;;  %vm10161_vm13 = vcmp.le.s32.totalorder %v757_v29, 14  ;;  %8593 = vmatprep.subr.bf16.mxu1 %v9010_v43  ;;  %v12287_v31 = vld [vmem:[#allocation33_spill] sm:$0xff]  ;;  %v12291_v24 = vld [vmem:[#allocation34_spill] sm:$0xff] }
 0x19b   : > { %v2087_v51 = vadd.f32 %v2055_v10, %v12283_v16  ;;  %v12285_v4 = vsel %vm10161_vm13, 4294967295, %v12284_v4  ;;  %vm10166_vm15 = vcmp.le.s32.totalorder %v743_v13, 14  ;;  %8594 = vmatpush3.bf16.msra.mxu1 %v9010_v43 }
 0x19c   : > { %v10156_v46 = vadd.f32 %v8406_v14, %v2089_v59  ;;  %12286 = vst [vmem:[#allocation30_spill] sm:$0xff] %v12285_v4  ;;  %v12289_v45 = vsel %vm10166_vm15, 4294967295, %v12288_v45  ;;  %v12292_v14 = vld [vmem:[#allocation31_spill] sm:$0xff] }
 0x19d   : > { %v10159_v48 = vadd.f32 %v2340_v60, %v2087_v51  ;;  %12290 = vst [vmem:[#allocation33_spill] sm:$0xff] %v12289_v45  ;;  %vm12293_vm14 = vnez %v12292_v14  ;;  %v12294_v51 = vld [vmem:[#allocation32_spill] sm:$0xff] }
 0x19e   : > { %v8373_v62 = vpop.f32.mrb[60].mxu0  ;;  %vm12295_vm2 = vnez %v12294_v51 }
 0x19f   : > { %v2092_v25 = vadd.f32 %v8373_v62, %v12287_v31  ;;  %v1951_v23 = vpop.f32.mrb[61].mxu0  ;;  %v8409_v63 = vpop.f32.mrb[60].mxu1 }
 0x1a0   : > { %v2090_v21 = vadd.f32 %v1951_v23, %v12291_v24  ;;  %v2398_v59 = vsel %vm12293_vm14, %v8409_v63, 0.0  ;;  %v8374_v10 = vpop.f32.mrb[62].mxu0  ;;  %v2353_v60 = vpop.f32.mrb[61].mxu1  ;;  %v12297_v24 = vld [vmem:[#allocation36_spill] sm:$0xff] }
 0x1a1   : > { %v10173_v29 = vadd.f32 %v2398_v59, %v2092_v25  ;;  %v2061_v16 = vsel %vm10161_vm13, %v8374_v10, 0.0  ;;  %v2396_v62 = vsel %vm12295_vm2, %v2353_v60, 0.0  ;;  %v1954_v13 = vpop.f32.mrb[63].mxu0  ;;  %v8410_v31 = vpop.f32.mrb[62].mxu1 }
 0x1a2   : > { %v2093_v57 = vadd.f32 %v2061_v16, %v12296_v61  ;;  %v10180_v43 = vadd.f32 %v2396_v62, %v2090_v21  ;;  %v2059_v23 = vsel %vm10166_vm15, %v1954_v13, 0.0  ;;  %v2356_v63 = vpop.f32.mrb[63].mxu1 }
 0x1a3   : > { %v2091_v14 = vadd.f32 %v2059_v23, %v12297_v24 }
 0x1a4   : > { %v10185_v25 = vadd.f32 %v8410_v31, %v2093_v57 }
 0x1a5   : > { %v10187_v59 = vadd.f32 %v2356_v63, %v2091_v14 }
 0x1a6   : > { %v8417_v10 = vpop.f32.mrb[64].mxu0 }
 0x1a7   : > { %v2708_v51 = vadd.f32 %v8417_v10, %v9952_v47  ;;  %v2579_v60 = vpop.f32.mrb[65].mxu0  ;;  %v8453_v5 = vpop.f32.mrb[64].mxu1 }
 0x1a8   : > { %v2706_v56 = vadd.f32 %v2579_v60, %v9959_v35  ;;  %v8418_v61 = vpop.f32.mrb[66].mxu0  ;;  %v2885_v21 = vpop.f32.mrb[65].mxu1 }
 0x1a9   : > { %v10191_v16 = vadd.f32 %v8453_v5, %v2708_v51  ;;  %v2709_v62 = vadd.f32 %v8418_v61, %v9966_v19  ;;  %v2582_v13 = vpop.f32.mrb[67].mxu0  ;;  %v8454_v45 = vpop.f32.mrb[66].mxu1 }
 0x1aa   : > { %v10194_v23 = vadd.f32 %v2885_v21, %v2706_v56  ;;  %v2707_v57 = vadd.f32 %v2582_v13, %v9969_v49  ;;  %v3015_v14 = vsel %vm9938_vm0, %v8454_v45, 0.0  ;;  %v2888_v47 = vpop.f32.mrb[67].mxu1 }
 0x1ab   : > { %v10199_v31 = vadd.f32 %v3015_v14, %v2709_v62  ;;  %v3013_v35 = vsel %vm9944_vm1, %v2888_v47, 0.0 }
 0x1ac   : > { %v10203_v63 = vadd.f32 %v3013_v35, %v2707_v57  ;;  %v9011_v35 = vld [vmem:[%s9267_s8 + $0x10] sm:$0xff]  }
 0x1ad   : > { %8627 = vmatprep.subr.bf16.mxu0 %v9011_v35 }
 0x1ae   : > { %v8421_v5 = vpop.f32.mrb[68].mxu0  ;;  %8628 = vmatpush3.bf16.msra.mxu0 %v9011_v35  ;;  %v4537_v35 = vld [vmem:[#allocation3 + $0x1] sm:$0xff] }
 0x1af   : > { %v2712_v19 = vadd.f32 %v8421_v5, %v9985_v18  ;;  %v2595_v51 = vpop.f32.mrb[69].mxu0  ;;  %v8457_v56 = vpop.f32.mrb[68].mxu1 }
 0x1b0   : > { %v2710_v24 = vadd.f32 %v2595_v51, %v9992_v7  ;;  %v8422_v49 = vpop.f32.mrb[70].mxu0  ;;  %v2901_v10 = vpop.f32.mrb[69].mxu1 }
 0x1b1   : > { %v10207_v60 = vadd.f32 %v8457_v56, %v2712_v19  ;;  %v2713_v45 = vadd.f32 %v8422_v49, %v9998_v26  ;;  %v2598_v61 = vpop.f32.mrb[71].mxu0  ;;  %v8458_v21 = vpop.f32.mrb[70].mxu1  ;;  %v9012_v49 = vld [vmem:[%s9267_s8 + $0x18] sm:$0xff]  }
 0x1b2   : > { %v10210_v62 = vadd.f32 %v2901_v10, %v2710_v24  ;;  %v2711_v13 = vadd.f32 %v2598_v61, %v10001_v0  ;;  %v3019_v18 = vsel %vm9971_vm4, %v8458_v21, 0.0  ;;  %v2904_v57 = vpop.f32.mrb[71].mxu1  ;;  %8629 = vmatprep.subr.bf16.mxu0 %v9012_v49 }
 0x1b3   : > { %v10215_v14 = vadd.f32 %v3019_v18, %v2713_v45  ;;  %v3017_v7 = vsel %vm9977_vm3, %v2904_v57, 0.0  ;;  %8630 = vmatpush3.bf16.msra.mxu0 %v9012_v49  ;;  %vm12298_vm3 = vcmask 261120  }
 0x1b4   : > { %v10219_v47 = vadd.f32 %v3017_v7, %v2711_v13  ;;  %v4200_v7 = vld [vmem:[#allocation3] sm:$0xff] }
 0x1b6   : > { %v8425_v26 = vpop.f32.mrb[72].mxu0 }
 0x1b7   : > { %v2716_v5 = vadd.f32 %v8425_v26, %v10017_v58  ;;  %v2611_v19 = vpop.f32.mrb[73].mxu0  ;;  %v8461_v51 = vpop.f32.mrb[72].mxu1 }
 0x1b8   : > { %v2714_v0 = vadd.f32 %v2611_v19, %v10024_v36  ;;  %v8426_v56 = vpop.f32.mrb[74].mxu0  ;;  %v2917_v24 = vpop.f32.mrb[73].mxu1  ;;  %v4201_v36 = vld [vmem:[#allocation3 + $0x8] sm:$0xff] }
 0x1b9   : > { %v10225_v10 = vadd.f32 %v8461_v51, %v2716_v5  ;;  %v2717_v45 = vadd.f32 %v8426_v56, %v10030_v55  ;;  %v2614_v61 = vpop.f32.mrb[75].mxu0  ;;  %v8462_v21 = vpop.f32.mrb[74].mxu1  ;;  %v4232_v55 = vpack.c.bf16 %v4201_v36, %v4200_v7  ;;  %v4538_v19 = vld [vmem:[#allocation3 + $0x9] sm:$0xff] }
 0x1ba   : > { %v10228_v13 = vadd.f32 %v2917_v24, %v2714_v0  ;;  %v2715_v18 = vadd.f32 %v2614_v61, %v10034_v44  ;;  %v3023_v58 = vsel %vm10003_vm6, %v8462_v21, 0.0  ;;  %v2920_v57 = vpop.f32.mrb[75].mxu1  ;;  %v4569_v0 = vpack.c.bf16 %v4538_v19, %v4537_v35  ;;  %vm12299_vm6 = vmmov %vm12298_vm3  ;;  %v10256_v19 = vld [vmem:[%s9267_s8 + $0x20] sm:$0xff]  }
 0x1bb   : > { %v10233_v26 = vadd.f32 %v3023_v58, %v2717_v45  ;;  %v3021_v5 = vsel %vm10009_vm5, %v2920_v57, 0.0  ;;  %8595 = vmatprep.mubr.msk.bf16.mxu1 %vm12298_vm3, %v4232_v55  ;;  %8663 = vmatprep.subr.bf16.mxu1 %v10256_v19  ;;  %vm12300_vm3 = vnez %v12277_v3 }
 0x1bc   : > { %v10237_v51 = vadd.f32 %v3021_v5, %v2715_v18  ;;  %8631 = vmatprep.mubr.msk.bf16.mxu0 %vm12299_vm6, %v4569_v0  ;;  %vm12301_vm6 = vnez %v12280_v53 }
 0x1be   : > { %v8429_v44 = vpop.f32.mrb[76].mxu0 }
 0x1bf   : > { %v2720_v56 = vadd.f32 %v8429_v44, %v10050_v30  ;;  %v2627_v24 = vpop.f32.mrb[77].mxu0  ;;  %v8465_v45 = vpop.f32.mrb[76].mxu1 }
 0x1c0   : > { %v2718_v61 = vadd.f32 %v2627_v24, %v10057_v8  ;;  %v8430_v21 = vpop.f32.mrb[78].mxu0  ;;  %v2933_v58 = vpop.f32.mrb[77].mxu1 }
 0x1c1   : > { %v10243_v49 = vadd.f32 %v8465_v45, %v2720_v56  ;;  %v2721_v18 = vadd.f32 %v8430_v21, %v10063_v22  ;;  %v2630_v57 = vpop.f32.mrb[79].mxu0  ;;  %v8466_v7 = vpop.f32.mrb[78].mxu1 }
 0x1c2   : > { %v10246_v36 = vadd.f32 %v2933_v58, %v2718_v61  ;;  %v2719_v35 = vadd.f32 %v2630_v57, %v10067_v6  ;;  %v3027_v30 = vsel %vm10036_vm8, %v8466_v7, 0.0  ;;  %v2936_v5 = vpop.f32.mrb[79].mxu1 }
 0x1c3   : > { %v10251_v55 = vadd.f32 %v3027_v30, %v2721_v18  ;;  %v3025_v8 = vsel %vm10042_vm7, %v2936_v5, 0.0 }
 0x1c4   : > { %v10258_v0 = vadd.f32 %v3025_v8, %v2719_v35 }
 0x1c6   : > { %v8433_v22 = vpop.f32.mrb[80].mxu0 }
 0x1c7   : > { %v2724_v44 = vadd.f32 %v8433_v22, %v10083_v40  ;;  %v2643_v56 = vpop.f32.mrb[81].mxu0  ;;  %v8469_v6 = vpop.f32.mrb[80].mxu1 }
 0x1c8   : > { %v2722_v24 = vadd.f32 %v2643_v56, %v10090_v1  ;;  %v8434_v45 = vpop.f32.mrb[82].mxu0  ;;  %v2949_v61 = vpop.f32.mrb[81].mxu1 }
 0x1c9   : > { %v10263_v21 = vadd.f32 %v8469_v6, %v2724_v44  ;;  %v2725_v58 = vadd.f32 %v8434_v45, %v10096_v52  ;;  %v2646_v18 = vpop.f32.mrb[83].mxu0  ;;  %v8470_v57 = vpop.f32.mrb[82].mxu1 }
 0x1ca   : > { %v10266_v7 = vadd.f32 %v2949_v61, %v2722_v24  ;;  %v2723_v35 = vadd.f32 %v2646_v18, %v10098_v32  ;;  %v3031_v30 = vsel %vm10069_vm10, %v8470_v57, 0.0  ;;  %v2952_v40 = vpop.f32.mrb[83].mxu1 }
 0x1cb   : > { %v10271_v5 = vadd.f32 %v3031_v30, %v2725_v58  ;;  %v3029_v1 = vsel %vm10075_vm9, %v2952_v40, 0.0 }
 0x1cc   : > { %v10275_v8 = vadd.f32 %v3029_v1, %v2723_v35 }
 0x1ce   : > { %v8437_v22 = vpop.f32.mrb[84].mxu0 }
 0x1cf   : > { %v2728_v52 = vadd.f32 %v8437_v22, %v10114_v2  ;;  %v2659_v44 = vpop.f32.mrb[85].mxu0  ;;  %v8473_v56 = vpop.f32.mrb[84].mxu1 }
 0x1d0   : > { %v2726_v6 = vadd.f32 %v2659_v44, %v10121_v39  ;;  %v8438_v24 = vpop.f32.mrb[86].mxu0  ;;  %v2965_v32 = vpop.f32.mrb[85].mxu1 }
 0x1d1   : > { %v10279_v45 = vadd.f32 %v8473_v56, %v2728_v52  ;;  %v2729_v61 = vadd.f32 %v8438_v24, %v10126_v50  ;;  %v2662_v58 = vpop.f32.mrb[87].mxu0  ;;  %v8474_v18 = vpop.f32.mrb[86].mxu1 }
 0x1d2   : > { %v10282_v57 = vadd.f32 %v2965_v32, %v2726_v6  ;;  %v2727_v35 = vadd.f32 %v2662_v58, %v10128_v28  ;;  %v3035_v30 = vsel %vm10100_vm12, %v8474_v18, 0.0  ;;  %v2968_v2 = vpop.f32.mrb[87].mxu1 }
 0x1d3   : > { %v10287_v40 = vadd.f32 %v3035_v30, %v2729_v61  ;;  %v3033_v39 = vsel %vm10106_vm11, %v2968_v2, 0.0 }
 0x1d4   : > { %v10291_v1 = vadd.f32 %v3033_v39, %v2727_v35 }
 0x1d6   : > { %v8441_v22 = vpop.f32.mrb[88].mxu0 }
 0x1d7   : > { %v2732_v50 = vadd.f32 %v8441_v22, %v10144_v38  ;;  %v2675_v52 = vpop.f32.mrb[89].mxu0  ;;  %v8477_v44 = vpop.f32.mrb[88].mxu1 }
 0x1d8   : > { %v2730_v56 = vadd.f32 %v2675_v52, %v10151_v9  ;;  %v8442_v6 = vpop.f32.mrb[90].mxu0  ;;  %v2981_v28 = vpop.f32.mrb[89].mxu1 }
 0x1d9   : > { %v10295_v24 = vadd.f32 %v8477_v44, %v2732_v50  ;;  %v2733_v32 = vadd.f32 %v8442_v6, %v10156_v46  ;;  %v2678_v61 = vpop.f32.mrb[91].mxu0  ;;  %v8478_v58 = vpop.f32.mrb[90].mxu1 }
 0x1da   : > { %v10298_v18 = vadd.f32 %v2981_v28, %v2730_v56  ;;  %v2731_v35 = vadd.f32 %v2678_v61, %v10159_v48  ;;  %v3039_v30 = vsel %vm12300_vm3, %v8478_v58, 0.0  ;;  %v2984_v38 = vpop.f32.mrb[91].mxu1 }
 0x1db   : > { %v10303_v2 = vadd.f32 %v3039_v30, %v2733_v32  ;;  %v3037_v9 = vsel %vm12301_vm6, %v2984_v38, 0.0 }
 0x1dc   : > { %v10307_v39 = vadd.f32 %v3037_v9, %v2731_v35 }
 0x1de   : > { %v8445_v22 = vpop.f32.mrb[92].mxu0 }
 0x1df   : > { %v2736_v46 = vadd.f32 %v8445_v22, %v10173_v29  ;;  %v2691_v50 = vpop.f32.mrb[93].mxu0  ;;  %v8481_v52 = vpop.f32.mrb[92].mxu1 }
 0x1e0   : > { %v2734_v44 = vadd.f32 %v2691_v50, %v10180_v43  ;;  %v8446_v56 = vpop.f32.mrb[94].mxu0  ;;  %v2997_v48 = vpop.f32.mrb[93].mxu1  ;;  %v12303_v50 = vld [vmem:[#allocation16_spill] sm:$0xff] }
 0x1e1   : > { %v10311_v6 = vadd.f32 %v8481_v52, %v2736_v46  ;;  %v2737_v28 = vadd.f32 %v8446_v56, %v10185_v25  ;;  %v2694_v32 = vpop.f32.mrb[95].mxu0  ;;  %v8482_v61 = vpop.f32.mrb[94].mxu1  ;;  %vm12304_vm6 = vnez %v12303_v50 }
 0x1e2   : > { %v10314_v58 = vadd.f32 %v2997_v48, %v2734_v44  ;;  %v2735_v35 = vadd.f32 %v2694_v32, %v10187_v59  ;;  %v3043_v30 = vsel %vm10161_vm13, %v8482_v61, 0.0  ;;  %v3000_v29 = vpop.f32.mrb[95].mxu1  ;;  %v12305_v59 = vld [vmem:[#allocation17_spill] sm:$0xff] }
 0x1e3   : > { %v10319_v38 = vadd.f32 %v3043_v30, %v2737_v28  ;;  %v3041_v43 = vsel %vm10166_vm15, %v3000_v29, 0.0  ;;  %vm12306_vm3 = vnez %v12305_v59 }
 0x1e4   : > { %v10323_v22 = vadd.f32 %v3041_v43, %v2735_v35 }
 0x1e6   : > { %v8489_v46 = vpop.f32.mrb[96].mxu0 }
 0x1e7   : > { %v3352_v25 = vsel %vm12304_vm6, %v8489_v46, 0.0  ;;  %v3223_v52 = vpop.f32.mrb[97].mxu0  ;;  %v8525_v44 = vpop.f32.mrb[96].mxu1 }
 0x1e8   : > { %v3384_v56 = vadd.f32 %v3352_v25, %v10191_v16  ;;  %v3350_v48 = vsel %vm12306_vm3, %v3223_v52, 0.0  ;;  %v8490_v32 = vpop.f32.mrb[98].mxu0  ;;  %v3561_v61 = vpop.f32.mrb[97].mxu1  ;;  %v12307_v52 = vld [vmem:[#allocation18_spill] sm:$0xff] }
 0x1e9   : > { %v3382_v28 = vadd.f32 %v3350_v48, %v10194_v23  ;;  %v3385_v30 = vadd.f32 %v8490_v32, %v10199_v31  ;;  %v3226_v29 = vpop.f32.mrb[99].mxu0  ;;  %v8526_v35 = vpop.f32.mrb[98].mxu1  ;;  %vm12308_vm3 = vnez %v12307_v52 }
 0x1ea   : > { %v10332_v43 = vadd.f32 %v8525_v44, %v3384_v56  ;;  %v3383_v50 = vadd.f32 %v3226_v29, %v10203_v63  ;;  %v3564_v46 = vpop.f32.mrb[99].mxu1  ;;  %v12309_v44 = vld [vmem:[#allocation19_spill] sm:$0xff] }
 0x1eb   : > { %v10335_v9 = vadd.f32 %v3561_v61, %v3382_v28  ;;  %v10337_v4 = vadd.f32 %v8526_v35, %v3385_v30  ;;  %vm12310_vm6 = vnez %v12309_v44 }
 0x1ec   : > { %v10339_v16 = vadd.f32 %v3564_v46, %v3383_v50 }
 0x1ee   : > { %v8493_v25 = vpop.f32.mrb[100].mxu0 }
 0x1ef   : > { %v3356_v59 = vsel %vm12308_vm3, %v8493_v25, 0.0  ;;  %v3239_v23 = vpop.f32.mrb[101].mxu0  ;;  %v8529_v31 = vpop.f32.mrb[100].mxu1 }
 0x1f0   : > { %v3388_v48 = vadd.f32 %v3356_v59, %v10207_v60  ;;  %v3354_v56 = vsel %vm12310_vm6, %v3239_v23, 0.0  ;;  %v8494_v63 = vpop.f32.mrb[102].mxu0  ;;  %v3577_v32 = vpop.f32.mrb[101].mxu1  ;;  %v10358_v59 = vld [vmem:[%s9267_s8 + $0x30] sm:$0xff]  }
 0x1f1   : > { %v3386_v61 = vadd.f32 %v3354_v56, %v10210_v62  ;;  %v3389_v28 = vadd.f32 %v8494_v63, %v10215_v14  ;;  %v3242_v50 = vpop.f32.mrb[103].mxu0  ;;  %v8530_v30 = vpop.f32.mrb[102].mxu1  ;;  %8699 = vmatprep.subr.bf16.mxu0 %v10358_v59  ;;  %v12311_v62 = vld [vmem:[#allocation20_spill] sm:$0xff] }
 0x1f2   : > { %v10348_v29 = vadd.f32 %v8529_v31, %v3388_v48  ;;  %v3387_v35 = vadd.f32 %v3242_v50, %v10219_v47  ;;  %v3580_v46 = vpop.f32.mrb[103].mxu1  ;;  %vm12312_vm6 = vnez %v12311_v62  ;;  %v12313_v47 = vld [vmem:[#allocation21_spill] sm:$0xff] }
 0x1f3   : > { %v10351_v25 = vadd.f32 %v3577_v32, %v3386_v61  ;;  %v10353_v52 = vadd.f32 %v8530_v30, %v3389_v28  ;;  %vm12314_vm3 = vnez %v12313_v47 }
 0x1f4   : > { %v10355_v60 = vadd.f32 %v3580_v46, %v3387_v35 }
 0x1f6   : > { %v8497_v23 = vpop.f32.mrb[104].mxu0 }
 0x1f7   : > { %v3360_v14 = vsel %vm12312_vm6, %v8497_v23, 0.0  ;;  %v3255_v56 = vpop.f32.mrb[105].mxu0  ;;  %v8533_v31 = vpop.f32.mrb[104].mxu1 }
 0x1f8   : > { %v3392_v48 = vadd.f32 %v3360_v14, %v10225_v10  ;;  %v3358_v63 = vsel %vm12314_vm3, %v3255_v56, 0.0  ;;  %v8498_v32 = vpop.f32.mrb[106].mxu0  ;;  %v3593_v61 = vpop.f32.mrb[105].mxu1  ;;  %v12315_v56 = vld [vmem:[#allocation22_spill] sm:$0xff] }
 0x1f9   : > { %v3390_v28 = vadd.f32 %v3358_v63, %v10228_v13  ;;  %v3393_v50 = vadd.f32 %v8498_v32, %v10233_v26  ;;  %v3258_v30 = vpop.f32.mrb[107].mxu0  ;;  %v8534_v35 = vpop.f32.mrb[106].mxu1  ;;  %vm12316_vm3 = vnez %v12315_v56  ;;  %v12317_v32 = vld [vmem:[#allocation23_spill] sm:$0xff] }
 0x1fa   : > { %v10368_v46 = vadd.f32 %v8533_v31, %v3392_v48  ;;  %v3391_v62 = vadd.f32 %v3258_v30, %v10237_v51  ;;  %v3596_v23 = vpop.f32.mrb[107].mxu1  ;;  %vm12318_vm6 = vnez %v12317_v32 }
 0x1fb   : > { %v10371_v44 = vadd.f32 %v3593_v61, %v3390_v28  ;;  %v10373_v53 = vadd.f32 %v8534_v35, %v3393_v50 }
 0x1fc   : > { %v10375_v10 = vadd.f32 %v3596_v23, %v3391_v62 }
 0x1fe   : > { %v8501_v14 = vpop.f32.mrb[108].mxu0 }
 0x1ff   : > { %v3364_v47 = vsel %vm12316_vm3, %v8501_v14, 0.0  ;;  %v3271_v13 = vpop.f32.mrb[109].mxu0  ;;  %v8537_v63 = vpop.f32.mrb[108].mxu1 }
 0x200   : > { %v3396_v26 = vadd.f32 %v3364_v47, %v10243_v49  ;;  %v3362_v31 = vsel %vm12318_vm6, %v3271_v13, 0.0  ;;  %v8502_v48 = vpop.f32.mrb[110].mxu0  ;;  %v3609_v51 = vpop.f32.mrb[109].mxu1  ;;  %v12319_v13 = vld [vmem:[#allocation24_spill] sm:$0xff] }
 0x201   : > { %v3394_v61 = vadd.f32 %v3362_v31, %v10246_v36  ;;  %v3397_v28 = vadd.f32 %v8502_v48, %v10251_v55  ;;  %v3274_v50 = vpop.f32.mrb[111].mxu0  ;;  %v8538_v62 = vpop.f32.mrb[110].mxu1  ;;  %vm12320_vm6 = vnez %v12319_v13  ;;  %v12321_v48 = vld [vmem:[#allocation25_spill] sm:$0xff] }
 0x202   : > { %v10384_v30 = vadd.f32 %v8537_v63, %v3396_v26  ;;  %v3395_v35 = vadd.f32 %v3274_v50, %v10258_v0  ;;  %v3612_v23 = vpop.f32.mrb[111].mxu1  ;;  %vm12322_vm3 = vnez %v12321_v48 }
 0x203   : > { %v10387_v14 = vadd.f32 %v3609_v51, %v3394_v61  ;;  %v10389_v56 = vadd.f32 %v8538_v62, %v3397_v28 }
 0x204   : > { %v10391_v49 = vadd.f32 %v3612_v23, %v3395_v35 }
 0x206   : > { %v8505_v47 = vpop.f32.mrb[112].mxu0 }
 0x207   : > { %v3368_v32 = vsel %vm12320_vm6, %v8505_v47, 0.0  ;;  %v3287_v36 = vpop.f32.mrb[113].mxu0  ;;  %v8541_v31 = vpop.f32.mrb[112].mxu1 }
 0x208   : > { %v3400_v55 = vadd.f32 %v3368_v32, %v10263_v21  ;;  %v3366_v63 = vsel %vm12322_vm3, %v3287_v36, 0.0  ;;  %v8506_v26 = vpop.f32.mrb[114].mxu0  ;;  %v3625_v0 = vpop.f32.mrb[113].mxu1  ;;  %v12323_v36 = vld [vmem:[#allocation26_spill] sm:$0xff] }
 0x209   : > { %v3398_v51 = vadd.f32 %v3366_v63, %v10266_v7  ;;  %v3401_v61 = vadd.f32 %v8506_v26, %v10271_v5  ;;  %v3290_v28 = vpop.f32.mrb[115].mxu0  ;;  %v8542_v50 = vpop.f32.mrb[114].mxu1  ;;  %vm12324_vm3 = vnez %v12323_v36  ;;  %v12325_v26 = vld [vmem:[#allocation27_spill] sm:$0xff] }
 0x20a   : > { %v10400_v62 = vadd.f32 %v8541_v31, %v3400_v55  ;;  %v3399_v35 = vadd.f32 %v3290_v28, %v10275_v8  ;;  %v3628_v23 = vpop.f32.mrb[115].mxu1  ;;  %vm12326_vm6 = vnez %v12325_v26 }
 0x20b   : > { %v10403_v47 = vadd.f32 %v3625_v0, %v3398_v51  ;;  %v10405_v13 = vadd.f32 %v8542_v50, %v3401_v61 }
 0x20c   : > { %v10407_v21 = vadd.f32 %v3628_v23, %v3399_v35 }
 0x20e   : > { %v8509_v32 = vpop.f32.mrb[116].mxu0 }
 0x20f   : > { %v3372_v48 = vsel %vm12324_vm3, %v8509_v32, 0.0  ;;  %v3303_v7 = vpop.f32.mrb[117].mxu0  ;;  %v8545_v63 = vpop.f32.mrb[116].mxu1 }
 0x210   : > { %v3404_v5 = vadd.f32 %v3372_v48, %v10279_v45  ;;  %v3370_v31 = vsel %vm12326_vm6, %v3303_v7, 0.0  ;;  %v8510_v55 = vpop.f32.mrb[118].mxu0  ;;  %v3641_v8 = vpop.f32.mrb[117].mxu1  ;;  %v12327_v7 = vld [vmem:[#allocation28_spill] sm:$0xff] }
 0x211   : > { %v3402_v0 = vadd.f32 %v3370_v31, %v10282_v57  ;;  %v3405_v51 = vadd.f32 %v8510_v55, %v10287_v40  ;;  %v3306_v61 = vpop.f32.mrb[119].mxu0  ;;  %v8546_v28 = vpop.f32.mrb[118].mxu1  ;;  %vm12328_vm6 = vnez %v12327_v7  ;;  %v12329_v55 = vld [vmem:[#allocation29_spill] sm:$0xff] }
 0x212   : > { %v10416_v50 = vadd.f32 %v8545_v63, %v3404_v5  ;;  %v3403_v35 = vadd.f32 %v3306_v61, %v10291_v1  ;;  %v3644_v23 = vpop.f32.mrb[119].mxu1  ;;  %vm12330_vm3 = vnez %v12329_v55 }
 0x213   : > { %v10419_v32 = vadd.f32 %v3641_v8, %v3402_v0  ;;  %v10421_v36 = vadd.f32 %v8546_v28, %v3405_v51 }
 0x214   : > { %v10423_v45 = vadd.f32 %v3644_v23, %v3403_v35 }
 0x216   : > { %v8513_v48 = vpop.f32.mrb[120].mxu0 }
 0x217   : > { %v3376_v26 = vsel %vm12328_vm6, %v8513_v48, 0.0  ;;  %v3319_v57 = vpop.f32.mrb[121].mxu0  ;;  %v8549_v31 = vpop.f32.mrb[120].mxu1 }
 0x218   : > { %v3408_v40 = vadd.f32 %v3376_v26, %v10295_v24  ;;  %v3374_v63 = vsel %vm12330_vm3, %v3319_v57, 0.0  ;;  %v8514_v5 = vpop.f32.mrb[122].mxu0  ;;  %v3657_v1 = vpop.f32.mrb[121].mxu1 }
 0x219   : > { %v3406_v8 = vadd.f32 %v3374_v63, %v10298_v18  ;;  %v3409_v0 = vadd.f32 %v8514_v5, %v10303_v2  ;;  %v3322_v51 = vpop.f32.mrb[123].mxu0  ;;  %v8550_v61 = vpop.f32.mrb[122].mxu1 }
 0x21a   : > { %v10432_v28 = vadd.f32 %v8549_v31, %v3408_v40  ;;  %v3407_v35 = vadd.f32 %v3322_v51, %v10307_v39  ;;  %v3660_v23 = vpop.f32.mrb[123].mxu1  ;;  %v12332_v31 = vld [vmem:[#allocation32_spill] sm:$0xff] }
 0x21b   : > { %v10435_v48 = vadd.f32 %v3657_v1, %v3406_v8  ;;  %v10437_v7 = vadd.f32 %v8550_v61, %v3409_v0 }
 0x21c   : > { %v10439_v24 = vadd.f32 %v3660_v23, %v3407_v35 }
 0x21e   : > { %v8517_v26 = vpop.f32.mrb[124].mxu0 }
 0x21f   : > { %v3380_v55 = vsel %vm12293_vm14, %v8517_v26, 0.0  ;;  %v3335_v18 = vpop.f32.mrb[125].mxu0  ;;  %v8553_v63 = vpop.f32.mrb[124].mxu1 }
 0x220   : > { %v3412_v2 = vadd.f32 %v3380_v55, %v10311_v6  ;;  %v3378_v40 = vsel %vm12295_vm2, %v3335_v18, 0.0  ;;  %v8518_v39 = vpop.f32.mrb[126].mxu0  ;;  %v3673_v5 = vpop.f32.mrb[125].mxu1 }
 0x221   : > { %v3410_v1 = vadd.f32 %v3378_v40, %v10314_v58  ;;  %v3413_v8 = vadd.f32 %v8518_v39, %v10319_v38  ;;  %v3338_v0 = vpop.f32.mrb[127].mxu0  ;;  %v8554_v51 = vpop.f32.mrb[126].mxu1  ;;  %v10462_v58 = vld [vmem:[%s12333_s11] ss:$0 sm:$0xff] }
 0x222   : > { %v10448_v61 = vadd.f32 %v8553_v63, %v3412_v2  ;;  %v3411_v35 = vadd.f32 %v3338_v0, %v10323_v22  ;;  %v3676_v23 = vpop.f32.mrb[127].mxu1  ;;  %v10470_v22 = vld [vmem:[%s373_s29] ss:$0 sm:$0xff] }
 0x223   : > { %v10451_v26 = vadd.f32 %v3673_v5, %v3410_v1  ;;  %v10453_v6 = vadd.f32 %v8554_v51, %v3413_v8 }
 0x224   : > { %v10455_v55 = vadd.f32 %v3676_v23, %v3411_v35 }
 0x226   : > { %v8561_v18 = vpop.f32.mrb[128].mxu0 }
 0x227   : > { %v4028_v38 = vadd.f32 %v8561_v18, %v10332_v43  ;;  %v3867_v63 = vpop.f32.mrb[129].mxu0 }
 0x228   : > { %v4026_v2 = vadd.f32 %v3867_v63, %v10335_v9  ;;  %v8562_v40 = vpop.f32.mrb[130].mxu0 }
 0x229   : > { %v4067_v39 = vmul.f32 %v10462_v58, %v4028_v38  ;;  %v3997_v5 = vsel %vm9938_vm0, %v8562_v40, 0.0  ;;  %v3870_v1 = vpop.f32.mrb[131].mxu0  ;;  %vm12334_vm0 = vcmask 261120  }
 0x22a   : > { %v4065_v8 = vmul.f32 %v10462_v58, %v4026_v2  ;;  %v4029_v43 = vadd.f32 %v3997_v5, %v10337_v4  ;;  %v3995_v0 = vsel %vm9944_vm1, %v3870_v1, 0.0  ;;  %vm12335_vm1 = vmmov %vm12334_vm0 }
 0x22b   : > { %v4106_v51 = vadd.f32 %v10470_v22, %v4067_v39  ;;  %v4027_v35 = vadd.f32 %v3995_v0, %v10339_v16  ;;  %vm12336_vm2 = vmmov %vm12334_vm0 }
 0x22c   : > { %v4104_v9 = vadd.f32 %v10470_v22, %v4065_v8  ;;  %v4068_v23 = vmul.f32 %v10462_v58, %v4029_v43 }
 0x22d   : > { %v4138_v18 = vmax.f32 %v4106_v51, 0.0  ;;  %v4066_v38 = vmul.f32 %v10462_v58, %v4027_v35 }
 0x22e   : > { %v4136_v63 = vmax.f32 %v4104_v9, 0.0  ;;  %v4107_v40 = vadd.f32 %v10470_v22, %v4068_v23  ;;  %v8565_v2 = vpop.f32.mrb[132].mxu0 }
 0x22f   : > { %4170 = vst.msk [vmem:[#allocation3 + $0x21] sm:$0xff] %vm12334_vm0, %v4138_v18  ;;  %v4105_v4 = vadd.f32 %v10470_v22, %v4066_v38  ;;  %v4032_v5 = vadd.f32 %v8565_v2, %v10348_v29  ;;  %v3883_v39 = vpop.f32.mrb[133].mxu0  ;;  %vm12337_vm0 = vnez %v12255_v41 }
 0x230   : > { %4168 = vst.msk [vmem:[#allocation3 + $0x11] sm:$0xff] %vm12335_vm1, %v4136_v63  ;;  %v4139_v16 = vmax.f32 %v4107_v40, 0.0  ;;  %v4030_v1 = vadd.f32 %v3883_v39, %v10351_v25  ;;  %v8566_v8 = vpop.f32.mrb[134].mxu0 }
 0x231   : > { %v4137_v43 = vmax.f32 %v4105_v4, 0.0  ;;  %v4071_v0 = vmul.f32 %v10462_v58, %v4032_v5  ;;  %v4001_v51 = vsel %vm9971_vm4, %v8566_v8, 0.0  ;;  %v3886_v35 = vpop.f32.mrb[135].mxu0 }
 0x232   : > { %4171 = vst.msk [vmem:[#allocation3 + $0x29] sm:$0xff] %vm12336_vm2, %v4139_v16  ;;  %v4069_v9 = vmul.f32 %v10462_v58, %v4030_v1  ;;  %v4033_v29 = vadd.f32 %v4001_v51, %v10353_v52  ;;  %v3999_v23 = vsel %vm12337_vm0, %v3886_v35, 0.0  ;;  %vm12338_vm2 = vmmov %vm12335_vm1  ;;  %vm12339_vm0 = vnez %v12257_v27 }
 0x233   : > { %4169 = vst.msk [vmem:[#allocation3 + $0x19] sm:$0xff] %vm12335_vm1, %v4137_v43  ;;  %v4110_v25 = vadd.f32 %v10470_v22, %v4071_v0  ;;  %v4031_v18 = vadd.f32 %v3999_v23, %v10355_v60 }
 0x234   : > { %v4108_v38 = vadd.f32 %v10470_v22, %v4069_v9  ;;  %v4072_v63 = vmul.f32 %v10462_v58, %v4033_v29 }
 0x235   : > { %v4142_v40 = vmax.f32 %v4110_v25, 0.0  ;;  %v4070_v2 = vmul.f32 %v10462_v58, %v4031_v18 }
 0x236   : > { %v4140_v4 = vmax.f32 %v4108_v38, 0.0  ;;  %v4111_v5 = vadd.f32 %v10470_v22, %v4072_v63  ;;  %v8569_v52 = vpop.f32.mrb[136].mxu0 }
 0x237   : > { %4174 = vst.msk [vmem:[#allocation3 + $0x41] sm:$0xff] %vm12338_vm2, %v4142_v40  ;;  %v4109_v39 = vadd.f32 %v10470_v22, %v4070_v2  ;;  %v4036_v16 = vadd.f32 %v8569_v52, %v10368_v46  ;;  %v3899_v1 = vpop.f32.mrb[137].mxu0  ;;  %v4202_v0 = vld [vmem:[#allocation3 + $0x10] sm:$0xff]  ;;  %vm12340_vm2 = vmmov %vm12335_vm1 }
 0x238   : > { %4172 = vst.msk [vmem:[#allocation3 + $0x31] sm:$0xff] %vm12335_vm1, %v4140_v4  ;;  %v4143_v60 = vmax.f32 %v4111_v5, 0.0  ;;  %v4034_v8 = vadd.f32 %v3899_v1, %v10371_v44  ;;  %v8570_v43 = vpop.f32.mrb[138].mxu0  ;;  %v4539_v23 = vld [vmem:[#allocation3 + $0x11] sm:$0xff] }
 0x239   : > { %v4141_v51 = vmax.f32 %v4109_v39, 0.0  ;;  %v4075_v35 = vmul.f32 %v10462_v58, %v4036_v16  ;;  %v4005_v9 = vsel %vm12339_vm0, %v8570_v43, 0.0  ;;  %v3902_v29 = vpop.f32.mrb[139].mxu0  ;;  %v4205_v25 = vld [vmem:[#allocation3 + $0x28] sm:$0xff]  ;;  %v9014_v43 = vld [vmem:[%s9267_s8 + $0x28] sm:$0xff]   ;;  %vm12343_vm0 = vmmov %vm12335_vm1 }
 0x23a   : > { %v4542_v18 = vld [vmem:[#allocation3 + $0x29] sm:$0xff]  ;;  %4175 = vst.msk [vmem:[#allocation3 + $0x49] sm:$0xff] %vm12340_vm2, %v4143_v60  ;;  %v4073_v46 = vmul.f32 %v10462_v58, %v4034_v8  ;;  %v4037_v38 = vadd.f32 %v4005_v9, %v10373_v53  ;;  %v4003_v44 = vsel %vm10009_vm5, %v3902_v29, 0.0  ;;  %v4203_v63 = vld [vmem:[#allocation3 + $0x18] sm:$0xff]  ;;  %v4204_v2 = vld [vmem:[#allocation3 + $0x20] sm:$0xff] }
 0x23b   : > { %v4540_v40 = vld [vmem:[#allocation3 + $0x19] sm:$0xff]  ;;  %4173 = vst.msk [vmem:[#allocation3 + $0x39] sm:$0xff] %vm12335_vm1, %v4141_v51  ;;  %v4114_v4 = vadd.f32 %v10470_v22, %v4075_v35  ;;  %v4035_v5 = vadd.f32 %v4003_v44, %v10375_v10  ;;  %v10522_v52 = vpack.c.bf16 %v4203_v63, %v4202_v0  ;;  %v4541_v16 = vld [vmem:[#allocation3 + $0x21] sm:$0xff]  ;;  %v10528_v60 = vpack.c.bf16 %v4205_v25, %v4204_v2  ;;  %v9016_v9 = vld [vmem:[%s9267_s8 + $0x38] sm:$0xff]  }
 0x23c   : > { %v10524_v39 = vpack.c.bf16 %v4540_v40, %v4539_v23  ;;  %v4112_v53 = vadd.f32 %v10470_v22, %v4073_v46  ;;  %v4076_v1 = vmul.f32 %v10462_v58, %v4037_v38  ;;  %v10530_v8 = vpack.c.bf16 %v4542_v18, %v4541_v16  ;;  %vm12341_vm2 = vmmov %vm12335_vm1  ;;  %v10552_v63 = vld [vmem:[%s9267_s8 + $0x40] sm:$0xff]  }
 0x23d   : > { %v4146_v51 = vmax.f32 %v4114_v4, 0.0  ;;  %v4074_v35 = vmul.f32 %v10462_v58, %v4035_v5  ;;  %8596 = vmatmul.mubr.msk.bf16.vlgmr.msra.gmra.mrb[128].mxu1 %vm12341_vm2, %v10522_v52  ;;  %vm12342_vm5 = vmmov %vm12335_vm1 }
 0x23e   : > { %8632 = vmatmul.mubr.msk.bf16.vlgmr.msra.gmra.mrb[160].mxu0 %vm12335_vm1, %v10524_v39  ;;  %v4144_v10 = vmax.f32 %v4112_v53, 0.0  ;;  %v4115_v0 = vadd.f32 %v10470_v22, %v4076_v1  ;;  %v8573_v29 = vpop.f32.mrb[140].mxu0  ;;  %8599 = vmatprep.mubr.msk.bf16.mxu1 %vm12342_vm5, %v10528_v60  ;;  %vm12344_vm4 = vmmov %vm12343_vm0 }
 0x23f   : > { %8635 = vmatprep.mubr.msk.bf16.mxu0 %vm12343_vm0, %v10530_v8  ;;  %4178 = vst.msk [vmem:[#allocation3 + $0x61] sm:$0xff] %vm12344_vm4, %v4146_v51  ;;  %v4113_v23 = vadd.f32 %v10470_v22, %v4074_v35  ;;  %v4040_v25 = vadd.f32 %v8573_v29, %v10384_v30  ;;  %8664 = vmatpush3.bf16.msra.mxu1 %v10256_v19  ;;  %v3915_v18 = vpop.f32.mrb[141].mxu0  ;;  %vm12345_vm2 = vmmov %vm12343_vm0  ;;  %v6503_v16 = vld [vmem:[#allocation3 + $0x31] sm:$0xff]  ;;  %v4545_v35 = vld [vmem:[#allocation3 + $0x41] sm:$0xff] }
 0x240   : > { %8700 = vmatpush3.bf16.msra.mxu0 %v10358_v59  ;;  %4176 = vst.msk [vmem:[#allocation3 + $0x51] sm:$0xff] %vm12345_vm2, %v4144_v10  ;;  %v4147_v46 = vmax.f32 %v4115_v0, 0.0  ;;  %v4038_v38 = vadd.f32 %v3915_v18, %v10387_v14  ;;  %v8574_v44 = vpop.f32.mrb[142].mxu0  ;;  %8665 = vmatprep.subr.bf16.mxu1 %v9014_v43  ;;  %v10558_v59 = vld [vmem:[%s9267_s8 + $0x50] sm:$0xff]   ;;  %vm12346_vm4 = vmmov %vm12343_vm0 }
 0x241   : > { %8701 = vmatprep.subr.bf16.mxu0 %v9016_v9  ;;  %v4145_v40 = vmax.f32 %v4113_v23, 0.0  ;;  %v4079_v2 = vmul.f32 %v10462_v58, %v4040_v25  ;;  %v4009_v19 = vsel %vm10036_vm8, %v8574_v44, 0.0  ;;  %v3918_v30 = vpop.f32.mrb[143].mxu0  ;;  %v4209_v4 = vld [vmem:[#allocation3 + $0x48] sm:$0xff]  ;;  %vm12347_vm5 = vmmov %vm12343_vm0  ;;  %v4206_v23 = vld [vmem:[#allocation3 + $0x30] sm:$0xff] }
 0x242   : > { %v4546_v5 = vld [vmem:[#allocation3 + $0x49] sm:$0xff]  ;;  %v6504_v53 = vld [vmem:[#allocation3 + $0x39] sm:$0xff]  ;;  %4179 = vst.msk [vmem:[#allocation3 + $0x69] sm:$0xff] %vm12346_vm4, %v4147_v46  ;;  %v4077_v14 = vmul.f32 %v10462_v58, %v4038_v38  ;;  %v4041_v1 = vadd.f32 %v4009_v19, %v10389_v56  ;;  %v4007_v51 = vsel %vm10042_vm7, %v3918_v30, 0.0  ;;  %vm12348_vm1 = vmmov %vm12343_vm0 }
 0x243   : > { %v10565_v10 = vpack.c.bf16 %v6504_v53, %v6503_v16  ;;  %4177 = vst.msk [vmem:[#allocation3 + $0x59] sm:$0xff] %vm12347_vm5, %v4145_v40  ;;  %v4118_v0 = vadd.f32 %v10470_v22, %v4079_v2  ;;  %v4039_v29 = vadd.f32 %v4007_v51, %v10391_v49  ;;  %v4207_v25 = vld [vmem:[#allocation3 + $0x38] sm:$0xff]  ;;  %v4208_v18 = vld [vmem:[#allocation3 + $0x40] sm:$0xff]  ;;  %v10570_v46 = vpack.c.bf16 %v4546_v5, %v4545_v35  ;;  %vm12349_vm2 = vmmov %vm12343_vm0 }
 0x244   : > { %8666 = vmatpush3.bf16.msra.mxu1 %v9014_v43  ;;  %v4116_v56 = vadd.f32 %v10470_v22, %v4077_v14  ;;  %v4080_v38 = vmul.f32 %v10462_v58, %v4041_v1  ;;  %v10574_v44 = vpack.c.bf16 %v4207_v25, %v4206_v23  ;;  %v10576_v19 = vpack.c.bf16 %v4209_v4, %v4208_v18  ;;  %vm12350_vm4 = vmmov %vm12343_vm0 }
 0x245   : > { %8702 = vmatpush3.bf16.msra.mxu0 %v9016_v9  ;;  %v4150_v40 = vmax.f32 %v4118_v0, 0.0  ;;  %v4078_v2 = vmul.f32 %v10462_v58, %v4039_v29  ;;  %8735 = vmatprep.subr.bf16.mxu1 %v10552_v63  ;;  %vm12351_vm5 = vmmov %vm12343_vm0 }
 0x246   : > { %8636 = vmatmul.mubr.msk.bf16.gmra.mrb[164].mxu0 %vm12343_vm0, %v10565_v10  ;;  %v4148_v49 = vmax.f32 %v4116_v56, 0.0  ;;  %v4119_v43 = vadd.f32 %v10470_v22, %v4080_v38  ;;  %8600 = vmatmul.mubr.msk.bf16.gmra.mrb[132].mxu1 %vm12348_vm1, %v10574_v44  ;;  %v8577_v30 = vpop.f32.mrb[144].mxu0  ;;  %vm12352_vm1 = vmmov %vm12343_vm0 }
 0x247   : > { %8639 = vmatprep.mubr.msk.bf16.mxu0 %vm12349_vm2, %v10570_v46  ;;  %4182 = vst.msk [vmem:[#allocation3 + $0x81] sm:$0xff] %vm12350_vm4, %v4150_v40  ;;  %v4117_v9 = vadd.f32 %v10470_v22, %v4078_v2  ;;  %v4044_v4 = vadd.f32 %v8577_v30, %v10400_v62  ;;  %8603 = vmatprep.mubr.msk.bf16.mxu1 %vm12351_vm5, %v10576_v19  ;;  %v3931_v5 = vpop.f32.mrb[145].mxu0  ;;  %v4210_v1 = vld [vmem:[#allocation3 + $0x50] sm:$0xff]  ;;  %vm12353_vm2 = vmmov %vm12343_vm0 }
 0x248   : > { %8771 = vmatprep.subr.bf16.mxu0 %v10558_v59  ;;  %4180 = vst.msk [vmem:[#allocation3 + $0x71] sm:$0xff] %vm12343_vm0, %v4148_v49  ;;  %v4151_v16 = vmax.f32 %v4119_v43, 0.0  ;;  %v4042_v53 = vadd.f32 %v3931_v5, %v10403_v47  ;;  %v8578_v14 = vpop.f32.mrb[146].mxu0  ;;  %v4547_v29 = vld [vmem:[#allocation3 + $0x51] sm:$0xff]  ;;  %vm12354_vm4 = vmmov %vm12343_vm0 }
 0x249   : > { %v4149_v51 = vmax.f32 %v4117_v9, 0.0  ;;  %v4083_v35 = vmul.f32 %v10462_v58, %v4044_v4  ;;  %v4013_v0 = vsel %vm10069_vm10, %v8578_v14, 0.0  ;;  %v3934_v62 = vpop.f32.mrb[147].mxu0  ;;  %v4213_v23 = vld [vmem:[#allocation3 + $0x68] sm:$0xff]  ;;  %vm12355_vm5 = vmmov %vm12343_vm0 }
 0x24a   : > { %v4550_v25 = vld [vmem:[#allocation3 + $0x69] sm:$0xff]  ;;  %4183 = vst.msk [vmem:[#allocation3 + $0x89] sm:$0xff] %vm12352_vm1, %v4151_v16  ;;  %v4081_v18 = vmul.f32 %v10462_v58, %v4042_v53  ;;  %v4045_v56 = vadd.f32 %v4013_v0, %v10405_v13  ;;  %v4011_v47 = vsel %vm10075_vm9, %v3934_v62, 0.0  ;;  %v4211_v38 = vld [vmem:[#allocation3 + $0x58] sm:$0xff]  ;;  %v4212_v2 = vld [vmem:[#allocation3 + $0x60] sm:$0xff] }
 0x24b   : > { %v4548_v40 = vld [vmem:[#allocation3 + $0x59] sm:$0xff]  ;;  %4181 = vst.msk [vmem:[#allocation3 + $0x79] sm:$0xff] %vm12353_vm2, %v4149_v51  ;;  %v4122_v49 = vadd.f32 %v10470_v22, %v4083_v35  ;;  %v4043_v43 = vadd.f32 %v4011_v47, %v10407_v21  ;;  %v10606_v30 = vpack.c.bf16 %v4211_v38, %v4210_v1  ;;  %v4549_v4 = vld [vmem:[#allocation3 + $0x61] sm:$0xff]  ;;  %v10612_v16 = vpack.c.bf16 %v4213_v23, %v4212_v2  ;;  %vm12356_vm1 = vmmov %vm12343_vm0 }
 0x24c   : > { %v10608_v9 = vpack.c.bf16 %v4548_v40, %v4547_v29  ;;  %v4120_v5 = vadd.f32 %v10470_v22, %v4081_v18  ;;  %v4084_v13 = vmul.f32 %v10462_v58, %v4045_v56  ;;  %v10614_v53 = vpack.c.bf16 %v4550_v25, %v4549_v4  ;;  %vm12357_vm2 = vmmov %vm12343_vm0 }
 0x24d   : > { %v4154_v14 = vmax.f32 %v4122_v49, 0.0  ;;  %v4082_v51 = vmul.f32 %v10462_v58, %v4043_v43 }
 0x24e   : > { %8640 = vmatmul.mubr.msk.bf16.gmra.mrb[168].mxu0 %vm12354_vm4, %v10608_v9  ;;  %v4152_v21 = vmax.f32 %v4120_v5, 0.0  ;;  %v4123_v1 = vadd.f32 %v10470_v22, %v4084_v13  ;;  %8604 = vmatmul.mubr.msk.bf16.gmra.mrb[136].mxu1 %vm12355_vm5, %v10606_v30  ;;  %v8581_v35 = vpop.f32.mrb[148].mxu0  ;;  %vm12358_vm4 = vmmov %vm12343_vm0 }
 0x24f   : > { %8643 = vmatprep.mubr.msk.bf16.mxu0 %vm12343_vm0, %v10614_v53  ;;  %4186 = vst.msk [vmem:[#allocation3 + $0xa1] sm:$0xff] %vm12356_vm1, %v4154_v14  ;;  %v4121_v0 = vadd.f32 %v10470_v22, %v4082_v51  ;;  %v4048_v62 = vadd.f32 %v8581_v35, %v10416_v50  ;;  %8607 = vmatprep.mubr.msk.bf16.mxu1 %vm12357_vm2, %v10612_v16  ;;  %v3947_v29 = vpop.f32.mrb[149].mxu0  ;;  %v4214_v56 = vld [vmem:[#allocation3 + $0x70] sm:$0xff]  ;;  %vm12359_vm5 = vmmov %vm12343_vm0 }
 0x250   : > { %4184 = vst.msk [vmem:[#allocation3 + $0x91] sm:$0xff] %vm12358_vm4, %v4152_v21  ;;  %v4155_v23 = vmax.f32 %v4123_v1, 0.0  ;;  %v4046_v25 = vadd.f32 %v3947_v29, %v10419_v32  ;;  %v8582_v18 = vpop.f32.mrb[150].mxu0  ;;  %v4551_v49 = vld [vmem:[#allocation3 + $0x71] sm:$0xff]  ;;  %vm12360_vm1 = vmmov %vm12343_vm0 }
 0x251   : > { %v4153_v47 = vmax.f32 %v4121_v0, 0.0  ;;  %v4087_v38 = vmul.f32 %v10462_v58, %v4048_v62  ;;  %v4017_v40 = vsel %vm10100_vm12, %v8582_v18, 0.0  ;;  %v3950_v2 = vpop.f32.mrb[151].mxu0  ;;  %v4217_v50 = vld [vmem:[#allocation3 + $0x88] sm:$0xff]  ;;  %vm12361_vm2 = vmmov %vm12343_vm0 }
 0x252   : > { %v4554_v43 = vld [vmem:[#allocation3 + $0x89] sm:$0xff]  ;;  %4187 = vst.msk [vmem:[#allocation3 + $0xa9] sm:$0xff] %vm12359_vm5, %v4155_v23  ;;  %v4085_v4 = vmul.f32 %v10462_v58, %v4046_v25  ;;  %v4049_v5 = vadd.f32 %v4017_v40, %v10421_v36  ;;  %v4015_v32 = vsel %vm10106_vm11, %v3950_v2, 0.0  ;;  %v4215_v13 = vld [vmem:[#allocation3 + $0x78] sm:$0xff]  ;;  %v4216_v51 = vld [vmem:[#allocation3 + $0x80] sm:$0xff] }
 0x253   : > { %v4552_v14 = vld [vmem:[#allocation3 + $0x79] sm:$0xff]  ;;  %4185 = vst.msk [vmem:[#allocation3 + $0x99] sm:$0xff] %vm12343_vm0, %v4153_v47  ;;  %v4126_v21 = vadd.f32 %v10470_v22, %v4087_v38  ;;  %v4047_v1 = vadd.f32 %v4015_v32, %v10423_v45  ;;  %v10642_v35 = vpack.c.bf16 %v4215_v13, %v4214_v56  ;;  %v4553_v62 = vld [vmem:[#allocation3 + $0x81] sm:$0xff]  ;;  %v10648_v23 = vpack.c.bf16 %v4217_v50, %v4216_v51  ;;  %vm12362_vm4 = vmmov %vm12343_vm0 }
 0x254   : > { %v10644_v0 = vpack.c.bf16 %v4552_v14, %v4551_v49  ;;  %v4124_v29 = vadd.f32 %v10470_v22, %v4085_v4  ;;  %v4088_v36 = vmul.f32 %v10462_v58, %v4049_v5  ;;  %v10650_v25 = vpack.c.bf16 %v4554_v43, %v4553_v62  ;;  %vm12363_vm5 = vmmov %vm12343_vm0 }
 0x255   : > { %v4158_v18 = vmax.f32 %v4126_v21, 0.0  ;;  %v4086_v47 = vmul.f32 %v10462_v58, %v4047_v1  ;;  %vm12433_vm11 = vmmov %vm12343_vm0 }
 0x256   : > { %8644 = vmatmul.mubr.msk.bf16.gmra.mrb[172].mxu0 %vm12360_vm1, %v10644_v0  ;;  %v4156_v45 = vmax.f32 %v4124_v29, 0.0  ;;  %v4127_v56 = vadd.f32 %v10470_v22, %v4088_v36  ;;  %8608 = vmatmul.mubr.msk.bf16.gmra.mrb[140].mxu1 %vm12361_vm2, %v10642_v35  ;;  %v8585_v38 = vpop.f32.mrb[152].mxu0  ;;  %vm12364_vm1 = vmmov %vm12343_vm0  ;;  %vm12365_vm2 = vnez %v12277_v3  ;;  %v12367_v36 = vld [vmem:[#allocation42_spill] sm:$0xff] }
 0x257   : > { %8647 = vmatprep.mubr.msk.bf16.mxu0 %vm12362_vm4, %v10650_v25  ;;  %4190 = vst.msk [vmem:[#allocation3 + $0xc1] sm:$0xff] %vm12363_vm5, %v4158_v18  ;;  %v4125_v40 = vadd.f32 %v10470_v22, %v4086_v47  ;;  %v4052_v2 = vadd.f32 %v8585_v38, %v10432_v28  ;;  %8611 = vmatprep.mubr.msk.bf16.mxu1 %vm12343_vm0, %v10648_v23  ;;  %v3963_v49 = vpop.f32.mrb[153].mxu0  ;;  %v4218_v5 = vld [vmem:[#allocation3 + $0x90] sm:$0xff]  ;;  %vm12366_vm4 = vmmov %vm12343_vm0  ;;  %vm12368_vm5 = vnez %v12367_v36 }
 0x258   : > { %4188 = vst.msk [vmem:[#allocation3 + $0xb1] sm:$0xff] %vm12364_vm1, %v4156_v45  ;;  %v4159_v50 = vmax.f32 %v4127_v56, 0.0  ;;  %v4050_v43 = vadd.f32 %v3963_v49, %v10435_v48  ;;  %v8586_v4 = vpop.f32.mrb[154].mxu0  ;;  %v4555_v21 = vld [vmem:[#allocation3 + $0x91] sm:$0xff]  ;;  %v4557_v49 = vld [vmem:[#allocation3 + $0xa1] sm:$0xff]  ;;  %vm12369_vm1 = vmmov %vm12343_vm0 }
 0x259   : > { %v4157_v32 = vmax.f32 %v4125_v40, 0.0  ;;  %v4091_v13 = vmul.f32 %v10462_v58, %v4052_v2  ;;  %v4021_v14 = vsel %vm12365_vm2, %v8586_v4, 0.0  ;;  %v3966_v51 = vpop.f32.mrb[155].mxu0  ;;  %v4221_v28 = vld [vmem:[#allocation3 + $0xa8] sm:$0xff]  ;;  %vm12372_vm2 = vmmov %vm12343_vm0 }
 0x25a   : > { %v4558_v1 = vld [vmem:[#allocation3 + $0xa9] sm:$0xff]  ;;  %4191 = vst.msk [vmem:[#allocation3 + $0xc9] sm:$0xff] %vm12366_vm4, %v4159_v50  ;;  %v4089_v62 = vmul.f32 %v10462_v58, %v4050_v43  ;;  %v4053_v29 = vadd.f32 %v4021_v14, %v10437_v7  ;;  %v4019_v48 = vsel %vm12368_vm5, %v3966_v51, 0.0  ;;  %v4219_v18 = vld [vmem:[#allocation3 + $0x98] sm:$0xff]  ;;  %v4220_v45 = vld [vmem:[#allocation3 + $0xa0] sm:$0xff] }
 0x25b   : > { %v4556_v47 = vld [vmem:[#allocation3 + $0x99] sm:$0xff]  ;;  %4189 = vst.msk [vmem:[#allocation3 + $0xb9] sm:$0xff] %vm12343_vm0, %v4157_v32  ;;  %v4130_v56 = vadd.f32 %v10470_v22, %v4091_v13  ;;  %v4051_v38 = vadd.f32 %v4019_v48, %v10439_v24  ;;  %v10678_v40 = vpack.c.bf16 %v4219_v18, %v4218_v5  ;;  %v10684_v43 = vpack.c.bf16 %v4221_v28, %v4220_v45  ;;  %vm12370_vm4 = vmmov %vm12343_vm0 }
 0x25c   : > { %v10680_v2 = vpack.c.bf16 %v4556_v47, %v4555_v21  ;;  %v4128_v50 = vadd.f32 %v10470_v22, %v4089_v62  ;;  %v4092_v7 = vmul.f32 %v10462_v58, %v4053_v29  ;;  %v10686_v4 = vpack.c.bf16 %v4558_v1, %v4557_v49  ;;  %vm12371_vm5 = vmmov %vm12343_vm0 }
 0x25d   : > { %v4162_v14 = vmax.f32 %v4130_v56, 0.0  ;;  %v4090_v32 = vmul.f32 %v10462_v58, %v4051_v38  ;;  %vm12439_vm12 = vmmov %vm12343_vm0 }
 0x25e   : > { %8648 = vmatmul.mubr.msk.bf16.gmra.mrb[176].mxu0 %vm12369_vm1, %v10680_v2  ;;  %v4160_v24 = vmax.f32 %v4128_v50, 0.0  ;;  %v4131_v5 = vadd.f32 %v10470_v22, %v4092_v7  ;;  %8612 = vmatmul.mubr.msk.bf16.gmra.mrb[144].mxu1 %vm12370_vm4, %v10678_v40  ;;  %v8589_v13 = vpop.f32.mrb[156].mxu0  ;;  %vm12373_vm1 = vmmov %vm12343_vm0 }
 0x25f   : > { %8651 = vmatprep.mubr.msk.bf16.mxu0 %vm12343_vm0, %v10686_v4  ;;  %4194 = vst.msk [vmem:[#allocation3 + $0xe1] sm:$0xff] %vm12371_vm5, %v4162_v14  ;;  %v4129_v51 = vadd.f32 %v10470_v22, %v4090_v32  ;;  %v4056_v21 = vadd.f32 %v8589_v13, %v10448_v61  ;;  %8615 = vmatprep.mubr.msk.bf16.mxu1 %vm12372_vm2, %v10684_v43  ;;  %v3979_v28 = vpop.f32.mrb[157].mxu0  ;;  %v4222_v48 = vld [vmem:[#allocation3 + $0xb0] sm:$0xff]  ;;  %vm12375_vm5 = vmmov %vm12343_vm0 }
 0x260   : > { %4192 = vst.msk [vmem:[#allocation3 + $0xd1] sm:$0xff] %vm12373_vm1, %v4160_v24  ;;  %v4163_v1 = vmax.f32 %v4131_v5, 0.0  ;;  %v4054_v62 = vadd.f32 %v3979_v28, %v10451_v26  ;;  %v8590_v29 = vpop.f32.mrb[158].mxu0  ;;  %v4559_v49 = vld [vmem:[#allocation3 + $0xb1] sm:$0xff]  ;;  %vm12377_vm2 = vmmov %vm12343_vm0 }
 0x261   : > { %v4161_v18 = vmax.f32 %v4129_v51, 0.0  ;;  %v4095_v47 = vmul.f32 %v10462_v58, %v4056_v21  ;;  %v4025_v56 = vsel %vm10161_vm13, %v8590_v29, 0.0  ;;  %v3982_v38 = vpop.f32.mrb[159].mxu0  ;;  %v4225_v61 = vld [vmem:[#allocation3 + $0xc8] sm:$0xff]  ;;  %vm12378_vm4 = vmmov %vm12343_vm0 }
 0x262   : > { %v4562_v50 = vld [vmem:[#allocation3 + $0xc9] sm:$0xff]  ;;  %4195 = vst.msk [vmem:[#allocation3 + $0xe9] sm:$0xff] %vm12375_vm5, %v4163_v1  ;;  %v4093_v7 = vmul.f32 %v10462_v58, %v4054_v62  ;;  %v4057_v14 = vadd.f32 %v4025_v56, %v10453_v6  ;;  %v4023_v26 = vsel %vm10166_vm15, %v3982_v38, 0.0  ;;  %v4223_v24 = vld [vmem:[#allocation3 + $0xb8] sm:$0xff]  ;;  %v4224_v13 = vld [vmem:[#allocation3 + $0xc0] sm:$0xff] }
 0x263   : > { %v4560_v5 = vld [vmem:[#allocation3 + $0xb9] sm:$0xff]  ;;  %4193 = vst.msk [vmem:[#allocation3 + $0xd9] sm:$0xff] %vm12377_vm2, %v4161_v18  ;;  %v4134_v51 = vadd.f32 %v10470_v22, %v4095_v47  ;;  %v4055_v21 = vadd.f32 %v4023_v26, %v10455_v55  ;;  %v10714_v28 = vpack.c.bf16 %v4223_v24, %v4222_v48  ;;  %v4561_v1 = vld [vmem:[#allocation3 + $0xc1] sm:$0xff]  ;;  %v10720_v56 = vpack.c.bf16 %v4225_v61, %v4224_v13  ;;  %vm12379_vm1 = vmmov %vm12343_vm0 }
 0x264   : > { %v10716_v29 = vpack.c.bf16 %v4560_v5, %v4559_v49  ;;  %v4132_v62 = vadd.f32 %v10470_v22, %v4093_v7  ;;  %v4096_v6 = vmul.f32 %v10462_v58, %v4057_v14  ;;  %v10722_v38 = vpack.c.bf16 %v4562_v50, %v4561_v1  ;;  %vm12380_vm5 = vmmov %vm12343_vm0 }
 0x265   : > { %v4166_v32 = vmax.f32 %v4134_v51, 0.0  ;;  %v4094_v18 = vmul.f32 %v10462_v58, %v4055_v21  ;;  %vm12381_vm2 = vmmov %vm12343_vm0 }
 0x266   : > { %8652 = vmatmul.mubr.msk.bf16.gmra.mrb[180].mxu0 %vm12378_vm4, %v10716_v29  ;;  %v4164_v55 = vmax.f32 %v4132_v62, 0.0  ;;  %v4135_v48 = vadd.f32 %v10470_v22, %v4096_v6  ;;  %8616 = vmatmul.mubr.msk.bf16.gmra.mrb[148].mxu1 %vm12343_vm0, %v10714_v28  ;;  %vm12382_vm15 = vmmov %vm12343_vm0  ;;  %v4565_v51 = vld [vmem:[#allocation3 + $0xe1] sm:$0xff]  ;;  %v4844_v6 = vld [vmem:[#allocation3 + $0xa] sm:$0xff] }
 0x267   : > { %8655 = vmatprep.mubr.msk.bf16.mxu0 %vm12379_vm1, %v10722_v38  ;;  %4198 = vst.msk [vmem:[#allocation3 + $0x101] sm:$0xff] %vm12380_vm5, %v4166_v32  ;;  %v4133_v47 = vadd.f32 %v10470_v22, %v4094_v18  ;;  %8619 = vmatprep.mubr.msk.bf16.mxu1 %vm12381_vm2, %v10720_v56  ;;  %v4226_v49 = vld [vmem:[#allocation3 + $0xd0] sm:$0xff]  ;;  %vm12383_vm4 = vmmov %vm12343_vm0  ;;  %v4843_v62 = vld [vmem:[#allocation3 + $0x2] sm:$0xff] }
 0x268   : > { %4196 = vst.msk [vmem:[#allocation3 + $0xf1] sm:$0xff] %vm12382_vm15, %v4164_v55  ;;  %v4167_v58 = vmax.f32 %v4135_v48, 0.0  ;;  %v4563_v50 = vld [vmem:[#allocation3 + $0xd1] sm:$0xff]  ;;  %vm12384_vm15 = vmmov %vm12343_vm0 }
 0x269   : > { %v4165_v61 = vmax.f32 %v4133_v47, 0.0  ;;  %v4229_v7 = vld [vmem:[#allocation3 + $0xe8] sm:$0xff]  ;;  %vm12385_vm1 = vmmov %vm12343_vm0 }
 0x26a   : > { %v4566_v14 = vld [vmem:[#allocation3 + $0xe9] sm:$0xff]  ;;  %4199 = vst.msk [vmem:[#allocation3 + $0x109] sm:$0xff] %vm12383_vm4, %v4167_v58  ;;  %v4227_v26 = vld [vmem:[#allocation3 + $0xd8] sm:$0xff]  ;;  %v4228_v5 = vld [vmem:[#allocation3 + $0xe0] sm:$0xff] }
 0x26b   : > { %v4564_v24 = vld [vmem:[#allocation3 + $0xd9] sm:$0xff]  ;;  %4197 = vst.msk [vmem:[#allocation3 + $0xf9] sm:$0xff] %vm12343_vm0, %v4165_v61  ;;  %v10739_v32 = vpack.c.bf16 %v4227_v26, %v4226_v49  ;;  %v10743_v13 = vpack.c.bf16 %v4229_v7, %v4228_v5  ;;  %v10745_v21 = vpack.c.bf16 %v4566_v14, %v4565_v51  ;;  %vm12386_vm5 = vmmov %vm12343_vm0  ;;  %v4875_v49 = vpack.c.bf16 %v4844_v6, %v4843_v62  ;;  %v4848_v7 = vld [vmem:[#allocation3 + $0x2a] sm:$0xff] }
 0x26c   : > { %v10741_v22 = vpack.c.bf16 %v4564_v24, %v4563_v50  ;;  %vm12387_vm2 = vmmov %vm12343_vm0  ;;  %v4845_v61 = vld [vmem:[#allocation3 + $0x12] sm:$0xff]  ;;  %v4846_v50 = vld [vmem:[#allocation3 + $0x1a] sm:$0xff] }
 0x26d   : > { %vm12388_vm4 = vmmov %vm12343_vm0  ;;  %v10766_v14 = vpack.c.bf16 %v4846_v50, %v4845_v61  ;;  %v4847_v26 = vld [vmem:[#allocation3 + $0x22] sm:$0xff]  ;;  %v9020_v51 = vld [vmem:[%s9267_s8 + $0x58] sm:$0xff]  }
 0x26e   : > { %8656 = vmatmul.mubr.msk.bf16.gmra.mrb[184].mxu0 %vm12384_vm15, %v10741_v22  ;;  %8620 = vmatmul.mubr.msk.bf16.gmra.mrb[152].mxu1 %vm12385_vm1, %v10739_v32  ;;  %vm12389_vm15 = vmmov %vm12343_vm0  ;;  %v9018_v24 = vld [vmem:[%s9267_s8 + $0x48] sm:$0xff]   ;;  %v10771_v5 = vpack.c.bf16 %v4848_v7, %v4847_v26  ;;  %v10786_v62 = vld [vmem:[%s9267_s8 + $0x70] sm:$0xff]  }
 0x26f   : > { %8659 = vmatprep.mubr.msk.bf16.mxu0 %vm12386_vm5, %v10745_v21  ;;  %8623 = vmatprep.mubr.msk.bf16.mxu1 %vm12387_vm2, %v10743_v13  ;;  %v4230_v1 = vld [vmem:[#allocation3 + $0xf0] sm:$0xff]  ;;  %vm12390_vm1 = vmmov %vm12343_vm0  ;;  %v4855_v61 = vld [vmem:[#allocation3 + $0x62] sm:$0xff] }
 0x270   : > { %v4567_v55 = vld [vmem:[#allocation3 + $0xf1] sm:$0xff]  ;;  %vm12391_vm5 = vmmov %vm12343_vm0  ;;  %v4858_v7 = vld [vmem:[#allocation3 + $0x7a] sm:$0xff] }
 0x271   : > { %vm12392_vm2 = vmmov %vm12343_vm0  ;;  %v4852_v6 = vld [vmem:[#allocation3 + $0x4a] sm:$0xff]  ;;  %v4857_v50 = vld [vmem:[#allocation3 + $0x72] sm:$0xff] }
 0x272   : > { %v4231_v18 = vld [vmem:[#allocation3 + $0xf8] sm:$0xff]  ;;  %v4860_v26 = vld [vmem:[#allocation3 + $0x8a] sm:$0xff]  ;;  %v4871_v36 = vld [vmem:[#allocation3 + $0xe2] sm:$0xff] }
 0x273   : > { %v4568_v48 = vld [vmem:[#allocation3 + $0xf9] sm:$0xff]  ;;  %v10755_v47 = vpack.c.bf16 %v4231_v18, %v4230_v1  ;;  %vm12419_vm13 = vmmov %vm12343_vm0 }
 0x274   : > { %v10757_v58 = vpack.c.bf16 %v4568_v48, %v4567_v55  ;;  %v6810_v1 = vld [vmem:[#allocation3 + $0x3a] sm:$0xff]  ;;  %v4856_v48 = vld [vmem:[#allocation3 + $0x6a] sm:$0xff] }
 0x275   : > { %v4854_v55 = vld [vmem:[#allocation3 + $0x5a] sm:$0xff] }
 0x276   : > { %8660 = vmatmul.mubr.msk.bf16.gmra.mrb[188].mxu0 %vm12388_vm4, %v10757_v58  ;;  %8624 = vmatmul.mubr.msk.bf16.gmra.mrb[156].mxu1 %vm12343_vm0, %v10755_v47  ;;  %vm12393_vm4 = vmmov %vm12343_vm0  ;;  %v4874_v3 = vld [vmem:[#allocation3 + $0xfa] sm:$0xff] }
 0x277   : > { %8703 = vmatprep.mubr.msk.bf16.mxu0 %vm12389_vm15, %v10522_v52  ;;  %8667 = vmatprep.mubr.msk.bf16.mxu1 %vm12390_vm1, %v4875_v49  ;;  %v10783_v52 = vld [vmem:[%s9267_s8 + $0x60] sm:$0xff]   ;;  %vm12394_vm15 = vmmov %vm12343_vm0 }
 0x278   : > { %vm12395_vm1 = vmmov %vm12343_vm0 }
 0x27e   : > { %8704 = vmatmul.mubr.msk.bf16.vlgmr.msra.gmra.mrb[192].mxu0 %vm12391_vm5, %v10528_v60  ;;  %8668 = vmatmul.mubr.msk.bf16.vlgmr.msra.gmra.mrb[160].mxu1 %vm12392_vm2, %v10766_v14  ;;  %v6809_v60 = vld [vmem:[#allocation3 + $0x32] sm:$0xff]  ;;  %vm12396_vm5 = vmmov %vm12343_vm0 }
 0x27f   : > { %8707 = vmatprep.mubr.msk.bf16.mxu0 %vm12393_vm4, %v10574_v44  ;;  %8671 = vmatprep.mubr.msk.bf16.mxu1 %vm12343_vm0, %v10771_v5  ;;  %v10788_v18 = vpack.c.bf16 %v6810_v1, %v6809_v60  ;;  %v4851_v44 = vld [vmem:[#allocation3 + $0x42] sm:$0xff]  ;;  %vm12397_vm2 = vmmov %vm12343_vm0  ;;  %v4861_v1 = vld [vmem:[#allocation3 + $0x92] sm:$0xff] }
 0x280   : > { %8736 = vmatpush3.bf16.msra.mxu1 %v10552_v63  ;;  %8772 = vmatpush3.bf16.msra.mxu0 %v10558_v59  ;;  %v10793_v63 = vpack.c.bf16 %v4852_v6, %v4851_v44  ;;  %v4853_v59 = vld [vmem:[#allocation3 + $0x52] sm:$0xff]  ;;  %vm12398_vm4 = vmmov %vm12343_vm0  ;;  %v4862_v6 = vld [vmem:[#allocation3 + $0x9a] sm:$0xff] }
 0x281   : > { %8737 = vmatprep.subr.bf16.mxu1 %v9018_v24  ;;  %8773 = vmatprep.subr.bf16.mxu0 %v9020_v51  ;;  %v10802_v49 = vpack.c.bf16 %v4854_v55, %v4853_v59  ;;  %v4864_v44 = vld [vmem:[#allocation3 + $0xaa] sm:$0xff]  ;;  %v10826_v59 = vpack.c.bf16 %v4862_v6, %v4861_v1  ;;  %v4863_v55 = vld [vmem:[#allocation3 + $0xa2] sm:$0xff]  ;;  %v4869_v6 = vld [vmem:[#allocation3 + $0xd2] sm:$0xff] }
 0x284   : > { %8738 = vmatpush3.bf16.msra.mxu1 %v9018_v24  ;;  %8774 = vmatpush3.bf16.msra.mxu0 %v9020_v51  ;;  %v10814_v24 = vpack.c.bf16 %v4858_v7, %v4857_v50  ;;  %v4859_v51 = vld [vmem:[#allocation3 + $0x82] sm:$0xff]  ;;  %v4866_v50 = vld [vmem:[#allocation3 + $0xba] sm:$0xff]  ;;  %v4868_v7 = vld [vmem:[#allocation3 + $0xca] sm:$0xff] }
 0x285   : > { %8807 = vmatprep.subr.bf16.mxu1 %v10783_v52  ;;  %8843 = vmatprep.subr.bf16.mxu0 %v10786_v62  ;;  %v10818_v60 = vpack.c.bf16 %v4860_v26, %v4859_v51  ;;  %v4867_v51 = vld [vmem:[#allocation3 + $0xc2] sm:$0xff] }
 0x286   : > { %8708 = vmatmul.mubr.msk.bf16.gmra.mrb[196].mxu0 %vm12394_vm15, %v10576_v19  ;;  %8672 = vmatmul.mubr.msk.bf16.gmra.mrb[164].mxu1 %vm12395_vm1, %v10788_v18  ;;  %v10806_v19 = vpack.c.bf16 %v4856_v48, %v4855_v61  ;;  %vm12399_vm15 = vmmov %vm12343_vm0  ;;  %v10830_v48 = vpack.c.bf16 %v4864_v44, %v4863_v55  ;;  %v4865_v61 = vld [vmem:[#allocation3 + $0xb2] sm:$0xff]  ;;  %v4887_v1 = vpack.c.bf16 %v4868_v7, %v4867_v51  ;;  %v4870_v44 = vld [vmem:[#allocation3 + $0xda] sm:$0xff] }
 0x287   : > { %8711 = vmatprep.mubr.msk.bf16.mxu0 %vm12396_vm5, %v10606_v30  ;;  %8675 = vmatprep.mubr.msk.bf16.mxu1 %vm12397_vm2, %v10793_v63  ;;  %vm12400_vm1 = vmmov %vm12343_vm0  ;;  %v4886_v26 = vpack.c.bf16 %v4866_v50, %v4865_v61  ;;  %v4872_v55 = vld [vmem:[#allocation3 + $0xea] sm:$0xff]  ;;  %v4888_v45 = vpack.c.bf16 %v4870_v44, %v4869_v6  ;;  %v5211_v50 = vld [vmem:[#allocation3 + $0x100] sm:$0xff] }
 0x288   : > { %vm12401_vm5 = vmmov %vm12343_vm0  ;;  %v4889_v61 = vpack.c.bf16 %v4872_v55, %v4871_v36  ;;  %v5212_v7 = vld [vmem:[#allocation3 + $0x108] sm:$0xff]  ;;  %v4873_v51 = vld [vmem:[#allocation3 + $0xf2] sm:$0xff] }
 0x289   : > { %vm12402_vm2 = vmmov %vm12343_vm0  ;;  %v10850_v6 = vpack.c.bf16 %v5212_v7, %v5211_v50  ;;  %v4890_v44 = vpack.c.bf16 %v4874_v3, %v4873_v51  ;;  %v9022_v36 = vld [vmem:[%s9267_s8 + $0x68] sm:$0xff]   ;;  %v9024_v55 = vld [vmem:[%s9267_s8 + $0x78] sm:$0xff]  }
 0x28a   : > { %v9025_v3 = vld [vmem:[%s9267_s8 + $0x80] sm:$0xff]  }
 0x28b   : > { %v6166_v51 = vld [vmem:[#allocation3 + $0x38] sm:$0xff] }
 0x28e   : > { %8712 = vmatmul.mubr.msk.bf16.gmra.mrb[200].mxu0 %vm12398_vm4, %v10612_v16  ;;  %8676 = vmatmul.mubr.msk.bf16.gmra.mrb[168].mxu1 %vm12343_vm0, %v10802_v49  ;;  %vm12403_vm4 = vmmov %vm12343_vm0 }
 0x28f   : > { %8715 = vmatprep.mubr.msk.bf16.mxu0 %vm12399_vm15, %v10642_v35  ;;  %8679 = vmatprep.mubr.msk.bf16.mxu1 %vm12400_vm1, %v10806_v19  ;;  %vm12404_vm15 = vmmov %vm12343_vm0 }
 0x290   : > { %vm12405_vm1 = vmmov %vm12343_vm0 }
 0x296   : > { %8716 = vmatmul.mubr.msk.bf16.gmra.mrb[204].mxu0 %vm12401_vm5, %v10648_v23  ;;  %8680 = vmatmul.mubr.msk.bf16.gmra.mrb[172].mxu1 %vm12402_vm2, %v10814_v24  ;;  %vm12406_vm5 = vmmov %vm12343_vm0 }
 0x297   : > { %8719 = vmatprep.mubr.msk.bf16.mxu0 %vm12403_vm4, %v10678_v40  ;;  %8683 = vmatprep.mubr.msk.bf16.mxu1 %vm12343_vm0, %v10818_v60  ;;  %vm12407_vm2 = vmmov %vm12343_vm0 }
 0x298   : > { %vm12408_vm4 = vmmov %vm12343_vm0 }
 0x29e   : > { %8720 = vmatmul.mubr.msk.bf16.gmra.mrb[208].mxu0 %vm12404_vm15, %v10684_v43  ;;  %8684 = vmatmul.mubr.msk.bf16.gmra.mrb[176].mxu1 %vm12405_vm1, %v10826_v59  ;;  %vm12409_vm15 = vmmov %vm12343_vm0 }
 0x29f   : > { %8723 = vmatprep.mubr.msk.bf16.mxu0 %vm12406_vm5, %v10714_v28  ;;  %8687 = vmatprep.mubr.msk.bf16.mxu1 %vm12407_vm2, %v10830_v48  ;;  %vm12410_vm1 = vmmov %vm12343_vm0 }
 0x2a0   : > { %vm12411_vm5 = vmmov %vm12343_vm0 }
 0x2a1   : > { %vm12412_vm2 = vmmov %vm12343_vm0 }
 0x2a6   : > { %8724 = vmatmul.mubr.msk.bf16.gmra.mrb[212].mxu0 %vm12408_vm4, %v10720_v56  ;;  %8688 = vmatmul.mubr.msk.bf16.gmra.mrb[180].mxu1 %vm12343_vm0, %v4886_v26  ;;  %vm12413_vm4 = vmmov %vm12343_vm0 }
 0x2a7   : > { %8727 = vmatprep.mubr.msk.bf16.mxu0 %vm12409_vm15, %v10739_v32  ;;  %8691 = vmatprep.mubr.msk.bf16.mxu1 %vm12410_vm1, %v4887_v1  ;;  %vm12414_vm15 = vmmov %vm12343_vm0 }
 0x2a8   : > { %vm12415_vm1 = vmmov %vm12343_vm0 }
 0x2ae   : > { %8728 = vmatmul.mubr.msk.bf16.gmra.mrb[216].mxu0 %vm12411_vm5, %v10743_v13  ;;  %8692 = vmatmul.mubr.msk.bf16.gmra.mrb[184].mxu1 %vm12412_vm2, %v4888_v45  ;;  %vm12416_vm5 = vmmov %vm12343_vm0 }
 0x2af   : > { %8731 = vmatprep.mubr.msk.bf16.mxu0 %vm12413_vm4, %v10755_v47  ;;  %8695 = vmatprep.mubr.msk.bf16.mxu1 %vm12343_vm0, %v4889_v61  ;;  %vm12417_vm2 = vmmov %vm12343_vm0 }
 0x2b0   : > { %vm12418_vm4 = vmmov %vm12343_vm0 }
 0x2b6   : > { %8732 = vmatmul.mubr.msk.bf16.gmra.mrb[220].mxu0 %vm12414_vm15, %v10850_v6  ;;  %8696 = vmatmul.mubr.msk.bf16.gmra.mrb[188].mxu1 %vm12415_vm1, %v4890_v44  ;;  %vm12420_vm15 = vmmov %vm12343_vm0 }
 0x2b7   : > { %8775 = vmatprep.mubr.msk.bf16.mxu0 %vm12416_vm5, %v10766_v14  ;;  %8739 = vmatprep.mubr.msk.bf16.mxu1 %vm12417_vm2, %v10524_v39  ;;  %vm12421_vm1 = vmmov %vm12343_vm0  ;;  %v5855_v39 = vld [vmem:[#allocation3 + $0x102] sm:$0xff] }
 0x2b8   : > { %vm12422_vm5 = vmmov %vm12343_vm0  ;;  %v6502_v14 = vld [vmem:[#allocation3 + $0x29] sm:$0xff] }
 0x2b9   : > { %vm12424_vm2 = vmmov %vm12343_vm0 }
 0x2be   : > { %8776 = vmatmul.mubr.msk.bf16.vlgmr.msra.gmra.mrb[224].mxu0 %vm12418_vm4, %v10771_v5  ;;  %8740 = vmatmul.mubr.msk.bf16.vlgmr.msra.gmra.mrb[192].mxu1 %vm12343_vm0, %v10530_v8  ;;  %vm12425_vm4 = vmmov %vm12343_vm0  ;;  %v5856_v8 = vld [vmem:[#allocation3 + $0x10a] sm:$0xff] }
 0x2bf   : > { %8779 = vmatprep.mubr.msk.bf16.mxu0 %vm12419_vm13, %v10788_v18  ;;  %8743 = vmatprep.mubr.msk.bf16.mxu1 %vm12420_vm15, %v10565_v10  ;;  %vm12423_vm13 = vmmov %vm12343_vm0 }
 0x2c0   : > { %8808 = vmatpush3.bf16.msra.mxu1 %v10783_v52  ;;  %8844 = vmatpush3.bf16.msra.mxu0 %v10786_v62  ;;  %vm12426_vm15 = vmmov %vm12343_vm0  ;;  %v6163_v52 = vld [vmem:[#allocation3 + $0x20] sm:$0xff]  ;;  %v6164_v62 = vld [vmem:[#allocation3 + $0x28] sm:$0xff] }
 0x2c1   : > { %8809 = vmatprep.subr.bf16.mxu1 %v9022_v36  ;;  %8845 = vmatprep.subr.bf16.mxu0 %v9024_v55  ;;  %v6195_v7 = vpack.c.bf16 %v6164_v62, %v6163_v52 }
 0x2c4   : > { %8810 = vmatpush3.bf16.msra.mxu1 %v9022_v36  ;;  %8846 = vmatpush3.bf16.msra.mxu0 %v9024_v55  ;;  %v6167_v36 = vld [vmem:[#allocation3 + $0x40] sm:$0xff]  ;;  %v6168_v55 = vld [vmem:[#allocation3 + $0x48] sm:$0xff] }
 0x2c5   : > { %8879 = vmatprep.subr.bf16.mxu1 %v9025_v3  ;;  %v6197_v52 = vpack.c.bf16 %v6168_v55, %v6167_v36 }
 0x2c6   : > { %8780 = vmatmul.mubr.msk.bf16.gmra.mrb[228].mxu0 %vm12421_vm1, %v10793_v63  ;;  %8744 = vmatmul.mubr.msk.bf16.gmra.mrb[196].mxu1 %vm12422_vm5, %v10570_v46  ;;  %vm12427_vm1 = vmmov %vm12343_vm0  ;;  %v5550_v46 = vld [vmem:[#allocation3 + $0x109] sm:$0xff] }
 0x2c7   : > { %8783 = vmatprep.mubr.msk.bf16.mxu0 %vm12423_vm13, %v10802_v49  ;;  %8747 = vmatprep.mubr.msk.bf16.mxu1 %vm12424_vm2, %v10608_v9  ;;  %vm12428_vm5 = vmmov %vm12343_vm0 }
 0x2c8   : > { %vm12429_vm13 = vmmov %vm12343_vm0 }
 0x2c9   : > { %vm12430_vm2 = vmmov %vm12343_vm0 }
 0x2ce   : > { %8784 = vmatmul.mubr.msk.bf16.gmra.mrb[232].mxu0 %vm12425_vm4, %v10806_v19  ;;  %8748 = vmatmul.mubr.msk.bf16.gmra.mrb[200].mxu1 %vm12343_vm0, %v10614_v53  ;;  %vm12431_vm4 = vmmov %vm12343_vm0 }
 0x2cf   : > { %8787 = vmatprep.mubr.msk.bf16.mxu0 %vm12426_vm15, %v10814_v24  ;;  %8751 = vmatprep.mubr.msk.bf16.mxu1 %vm12427_vm1, %v10644_v0  ;;  %vm12432_vm15 = vmmov %vm12343_vm0 }
 0x2d0   : > { %vm12434_vm1 = vmmov %vm12343_vm0 }
 0x2d6   : > { %8788 = vmatmul.mubr.msk.bf16.gmra.mrb[236].mxu0 %vm12428_vm5, %v10818_v60  ;;  %8752 = vmatmul.mubr.msk.bf16.gmra.mrb[204].mxu1 %vm12429_vm13, %v10650_v25  ;;  %vm12435_vm5 = vmmov %vm12343_vm0 }
 0x2d7   : > { %8791 = vmatprep.mubr.msk.bf16.mxu0 %vm12430_vm2, %v10826_v59  ;;  %8755 = vmatprep.mubr.msk.bf16.mxu1 %vm12431_vm4, %v10680_v2  ;;  %vm12436_vm13 = vmmov %vm12343_vm0 }
 0x2d8   : > { %vm12437_vm2 = vmmov %vm12343_vm0 }
 0x2d9   : > { %vm12438_vm4 = vmmov %vm12343_vm0 }
 0x2de   : > { %8792 = vmatmul.mubr.msk.bf16.gmra.mrb[240].mxu0 %vm12343_vm0, %v10830_v48  ;;  %8756 = vmatmul.mubr.msk.bf16.gmra.mrb[208].mxu1 %vm12432_vm15, %v10686_v4  ;;  %vm12440_vm15 = vmmov %vm12343_vm0 }
 0x2df   : > { %8795 = vmatprep.mubr.msk.bf16.mxu0 %vm12433_vm11, %v4886_v26  ;;  %8759 = vmatprep.mubr.msk.bf16.mxu1 %vm12434_vm1, %v10716_v29  ;;  %vm12441_vm11 = vmmov %vm12343_vm0  ;;  %v10915_v26 = vpack.c.bf16 %v5856_v8, %v5855_v39  ;;  %v6165_v39 = vld [vmem:[#allocation3 + $0x30] sm:$0xff]  ;;  %v6505_v8 = vld [vmem:[#allocation3 + $0x41] sm:$0xff] }
 0x2e0   : > { %vm12444_vm1 = vmmov %vm12343_vm0 }
 0x2e1   : > { %12442 = vst [vmem:[#allocation34_spill] sm:$0xff] %v10915_v26 }
 0x2e6   : > { %8796 = vmatmul.mubr.msk.bf16.gmra.mrb[244].mxu0 %vm12435_vm5, %v4887_v1  ;;  %8760 = vmatmul.mubr.msk.bf16.gmra.mrb[212].mxu1 %vm12436_vm13, %v10722_v38  ;;  %v6501_v1 = vld [vmem:[#allocation3 + $0x21] sm:$0xff]  ;;  %vm12445_vm5 = vmmov %vm12343_vm0 }
 0x2e7   : > { %8799 = vmatprep.mubr.msk.bf16.mxu0 %vm12437_vm2, %v4888_v45  ;;  %8763 = vmatprep.mubr.msk.bf16.mxu1 %vm12438_vm4, %v10741_v22  ;;  %v5549_v45 = vld [vmem:[#allocation3 + $0x101] sm:$0xff]  ;;  %v6533_v50 = vpack.c.bf16 %v6502_v14, %v6501_v1  ;;  %vm12446_vm13 = vmmov %vm12343_vm0  ;;  %v12459_v1 = vld [vmem:[#allocation17_spill] sm:$0xff] }
 0x2e8   : > { %v9026_v14 = vld [vmem:[%s9267_s8 + $0x88] sm:$0xff]   ;;  %vm12447_vm2 = vmmov %vm12343_vm0 }
 0x2e9   : > { %vm12448_vm4 = vmmov %vm12343_vm0 }
 0x2ee   : > { %8800 = vmatmul.mubr.msk.bf16.gmra.mrb[248].mxu0 %vm12439_vm12, %v4889_v61  ;;  %8764 = vmatmul.mubr.msk.bf16.gmra.mrb[216].mxu1 %vm12343_vm0, %v10745_v21  ;;  %v10917_v61 = vpack.c.bf16 %v5550_v46, %v5549_v45  ;;  %vm12443_vm12 = vmmov %vm12343_vm0  ;;  %v6196_v46 = vpack.c.bf16 %v6166_v51, %v6165_v39 }
 0x2ef   : > { %8803 = vmatprep.mubr.msk.bf16.mxu0 %vm12440_vm15, %v4890_v44  ;;  %8767 = vmatprep.mubr.msk.bf16.mxu1 %vm12441_vm11, %v10757_v58  ;;  %v6506_v44 = vld [vmem:[#allocation3 + $0x49] sm:$0xff]  ;;  %vm12449_vm15 = vmmov %vm12343_vm0 }
 0x2f0   : > { %v6535_v45 = vpack.c.bf16 %v6506_v44, %v6505_v8  ;;  %vm12450_vm11 = vmmov %vm12343_vm0  ;;  %v12465_v8 = vld [vmem:[#allocation18_spill] sm:$0xff] }
 0x2f6   : > { %8804 = vmatmul.mubr.msk.bf16.gmra.mrb[252].mxu0 %vm12443_vm12, %v10915_v26  ;;  %8768 = vmatmul.mubr.msk.bf16.gmra.mrb[220].mxu1 %vm12444_vm1, %v10917_v61  ;;  %vm12451_vm12 = vmmov %vm12343_vm0 }
 0x2f7   : > { %8847 = vmatprep.mubr.msk.bf16.mxu0 %vm12445_vm5, %v6533_v50  ;;  %8811 = vmatprep.mubr.msk.bf16.mxu1 %vm12446_vm13, %v6195_v7  ;;  %vm12452_vm1 = vmmov %vm12343_vm0 }
 0x2f8   : > { %vm12453_vm5 = vmmov %vm12343_vm0 }
 0x2f9   : > { %vm12454_vm13 = vmmov %vm12343_vm0 }
 0x2fe   : > { %8848 = vmatmul.mubr.msk.bf16.vlgmr.msra.gmra.mrb[0].mxu0 %vm12447_vm2, %v10565_v10  ;;  %8812 = vmatmul.mubr.msk.bf16.vlgmr.msra.gmra.mrb[224].mxu1 %vm12448_vm4, %v6196_v46  ;;  %vm12455_vm2 = vmmov %vm12343_vm0 }
 0x2ff   : > { %8851 = vmatprep.mubr.msk.bf16.mxu0 %vm12343_vm0, %v6535_v45  ;;  %8815 = vmatprep.mubr.msk.bf16.mxu1 %vm12449_vm15, %v6197_v52  ;;  %vm12456_vm4 = vmmov %vm12343_vm0 }
 0x300   : > { %8880 = vmatpush3.bf16.msra.mxu1 %v9025_v3 }
 0x301   : > { %8881 = vmatprep.subr.bf16.mxu1 %v9026_v14 }
 0x304   : > { %8882 = vmatpush3.bf16.msra.mxu1 %v9026_v14 }
 0x306   : > { %8852 = vmatmul.mubr.msk.bf16.gmra.mrb[4].mxu0 %vm12450_vm11, %v10608_v9  ;;  %8816 = vmatmul.mubr.msk.bf16.gmra.mrb[228].mxu1 %vm12451_vm12, %v10606_v30  ;;  %v12457_v9 = vld [vmem:[#allocation16_spill] sm:$0xff]  ;;  %vm12460_vm11 = vnez %v12459_v1  ;;  %vm12461_vm12 = vmmov %vm12343_vm0 }
 0x307   : > { %8855 = vmatprep.mubr.msk.bf16.mxu0 %vm12452_vm1, %v10614_v53  ;;  %8819 = vmatprep.mubr.msk.bf16.mxu1 %vm12453_vm5, %v10612_v16  ;;  %vm12458_vm15 = vnez %v12457_v9  ;;  %vm12462_vm1 = vmmov %vm12343_vm0 }
 0x308   : > { %vm12463_vm5 = vmmov %vm12343_vm0 }
 0x30e   : > { %8856 = vmatmul.mubr.msk.bf16.gmra.mrb[8].mxu0 %vm12454_vm13, %v10644_v0  ;;  %8820 = vmatmul.mubr.msk.bf16.gmra.mrb[232].mxu1 %vm12455_vm2, %v10642_v35  ;;  %vm12464_vm13 = vmmov %vm12343_vm0  ;;  %vm12466_vm2 = vnez %v12465_v8  ;;  %v6827_v8 = vld [vmem:[#allocation3 + $0xc2] sm:$0xff] }
 0x30f   : > { %8859 = vmatprep.mubr.msk.bf16.mxu0 %vm12456_vm4, %v10650_v25  ;;  %8823 = vmatprep.mubr.msk.bf16.mxu1 %vm12343_vm0, %v10648_v23 }
 0x310   : > { %v8597_v10 = vpop.f32.mrb[128].mxu1 }
 0x311   : > { %v8633_v30 = vpop.f32.mrb[160].mxu0  ;;  %v4475_v53 = vsel %vm12458_vm15, %v8597_v10, 0.0  ;;  %v4346_v3 = vpop.f32.mrb[129].mxu1 }
 0x312   : > { %v4684_v62 = vpop.f32.mrb[161].mxu0  ;;  %v10949_v16 = vadd.f32 %v8633_v30, %v4475_v53  ;;  %v4473_v0 = vsel %vm12460_vm11, %v4346_v3, 0.0  ;;  %v8598_v50 = vpop.f32.mrb[130].mxu1 }
 0x313   : > { %v8634_v35 = vpop.f32.mrb[162].mxu0  ;;  %v10953_v7 = vadd.f32 %v4684_v62, %v4473_v0  ;;  %v4349_v51 = vpop.f32.mrb[131].mxu1 }
 0x314   : > { %v10955_v25 = vadd.f32 %v8634_v35, %v8598_v50  ;;  %v4687_v23 = vpop.f32.mrb[163].mxu0  ;;  %v12472_v35 = vld [vmem:[#allocation20_spill] sm:$0xff] }
 0x315   : > { %v10957_v44 = vadd.f32 %v4687_v23, %v4349_v51 }
 0x316   : > { %8860 = vmatmul.mubr.msk.bf16.gmra.mrb[12].mxu0 %vm12461_vm12, %v10680_v2  ;;  %8824 = vmatmul.mubr.msk.bf16.gmra.mrb[236].mxu1 %vm12462_vm1, %v10678_v40  ;;  %v12467_v2 = vld [vmem:[#allocation19_spill] sm:$0xff]  ;;  %vm12469_vm12 = vmmov %vm12343_vm0 }
 0x317   : > { %8863 = vmatprep.mubr.msk.bf16.mxu0 %vm12463_vm5, %v10686_v4  ;;  %8827 = vmatprep.mubr.msk.bf16.mxu1 %vm12464_vm13, %v10684_v43  ;;  %vm12468_vm4 = vnez %v12467_v2  ;;  %vm12470_vm1 = vmmov %vm12343_vm0  ;;  %vm12473_vm13 = vnez %v12472_v35 }
 0x318   : > { %vm12471_vm5 = vmmov %vm12343_vm0 }
 0x319   : > { %v8637_v36 = vpop.f32.mrb[164].mxu0  ;;  %v8601_v55 = vpop.f32.mrb[132].mxu1  ;;  %vm12478_vm9 = vmmov %vm12470_vm1 }
 0x31a   : > { %v4700_v39 = vpop.f32.mrb[165].mxu0  ;;  %v4479_v46 = vsel %vm12466_vm2, %v8601_v55, 0.0  ;;  %v4362_v45 = vpop.f32.mrb[133].mxu1  ;;  %vm12486_vm7 = vmmov %vm12470_vm1 }
 0x31b   : > { %v8638_v14 = vpop.f32.mrb[166].mxu0  ;;  %v10969_v52 = vadd.f32 %v8637_v36, %v4479_v46  ;;  %v4477_v10 = vsel %vm12468_vm4, %v4362_v45, 0.0  ;;  %v8602_v40 = vpop.f32.mrb[134].mxu1 }
 0x31c   : > { %v4703_v30 = vpop.f32.mrb[167].mxu0  ;;  %v10973_v53 = vadd.f32 %v4700_v39, %v4477_v10  ;;  %v10975_v4 = vadd.f32 %v8638_v14, %v8602_v40  ;;  %v4365_v43 = vpop.f32.mrb[135].mxu1 }
 0x31d   : > { %v10977_v3 = vadd.f32 %v4703_v30, %v4365_v43  ;;  %v12479_v43 = vld [vmem:[#allocation22_spill] sm:$0xff] }
 0x31e   : > { %8864 = vmatmul.mubr.msk.bf16.gmra.mrb[16].mxu0 %vm12343_vm0, %v10716_v29  ;;  %8828 = vmatmul.mubr.msk.bf16.gmra.mrb[240].mxu1 %vm12469_vm12, %v10714_v28  ;;  %v12474_v29 = vld [vmem:[#allocation21_spill] sm:$0xff]  ;;  %vm12476_vm12 = vmmov %vm12470_vm1  ;;  %vm12480_vm10 = vnez %v12479_v43 }
 0x31f   : > { %8867 = vmatprep.mubr.msk.bf16.mxu0 %vm12470_vm1, %v10722_v38  ;;  %8831 = vmatprep.mubr.msk.bf16.mxu1 %vm12471_vm5, %v10720_v56  ;;  %vm12475_vm0 = vnez %v12474_v29  ;;  %vm12477_vm5 = vmmov %vm12470_vm1 }
 0x321   : > { %v8641_v62 = vpop.f32.mrb[168].mxu0  ;;  %v8605_v0 = vpop.f32.mrb[136].mxu1 }
 0x322   : > { %v4716_v50 = vpop.f32.mrb[169].mxu0  ;;  %v4483_v51 = vsel %vm12473_vm13, %v8605_v0, 0.0  ;;  %v4378_v23 = vpop.f32.mrb[137].mxu1 }
 0x323   : > { %v8642_v36 = vpop.f32.mrb[170].mxu0  ;;  %v10989_v55 = vadd.f32 %v8641_v62, %v4483_v51  ;;  %v4481_v39 = vsel %vm12475_vm0, %v4378_v23, 0.0  ;;  %v8606_v28 = vpop.f32.mrb[138].mxu1 }
 0x324   : > { %v4719_v46 = vpop.f32.mrb[171].mxu0  ;;  %v10993_v45 = vadd.f32 %v4716_v50, %v4481_v39  ;;  %v10995_v38 = vadd.f32 %v8642_v36, %v8606_v28  ;;  %v4381_v56 = vpop.f32.mrb[139].mxu1 }
 0x325   : > { %v10997_v14 = vadd.f32 %v4719_v46, %v4381_v56  ;;  %v6531_v46 = vld [vmem:[#allocation3 + $0x111] sm:$0xff]  ;;  %v6532_v56 = vld [vmem:[#allocation3 + $0x119] sm:$0xff] }
 0x326   : > { %8868 = vmatmul.mubr.msk.bf16.gmra.mrb[20].mxu0 %vm12476_vm12, %v10741_v22  ;;  %8832 = vmatmul.mubr.msk.bf16.gmra.mrb[244].mxu1 %vm12470_vm1, %v10739_v32  ;;  %v12481_v22 = vld [vmem:[#allocation23_spill] sm:$0xff] }
 0x327   : > { %8871 = vmatprep.mubr.msk.bf16.mxu0 %vm12477_vm5, %v10745_v21  ;;  %8835 = vmatprep.mubr.msk.bf16.mxu1 %vm12478_vm9, %v10743_v13  ;;  %vm12482_vm12 = vnez %v12481_v22  ;;  %vm12484_vm9 = vmmov %vm12470_vm1 }
 0x328   : > { %vm12485_vm5 = vmmov %vm12470_vm1 }
 0x329   : > { %v8645_v10 = vpop.f32.mrb[172].mxu0  ;;  %v8609_v40 = vpop.f32.mrb[140].mxu1 }
 0x32a   : > { %v4732_v30 = vpop.f32.mrb[173].mxu0  ;;  %v4487_v62 = vsel %vm12480_vm10, %v8609_v40, 0.0  ;;  %v4394_v0 = vpop.f32.mrb[141].mxu1 }
 0x32b   : > { %v8646_v50 = vpop.f32.mrb[174].mxu0  ;;  %v11009_v51 = vadd.f32 %v8645_v10, %v4487_v62  ;;  %v4485_v23 = vsel %vm12482_vm12, %v4394_v0, 0.0  ;;  %v8610_v32 = vpop.f32.mrb[142].mxu1  ;;  %v6193_v62 = vld [vmem:[#allocation3 + $0x110] sm:$0xff]  ;;  %v6194_v0 = vld [vmem:[#allocation3 + $0x118] sm:$0xff] }
 0x32c   : > { %v4735_v36 = vpop.f32.mrb[175].mxu0  ;;  %v11013_v39 = vadd.f32 %v4732_v30, %v4485_v23  ;;  %v11015_v21 = vadd.f32 %v8646_v50, %v8610_v32  ;;  %v4397_v13 = vpop.f32.mrb[143].mxu1  ;;  %v6548_v50 = vpack.c.bf16 %v6532_v56, %v6531_v46  ;;  %v12487_v23 = vld [vmem:[#allocation24_spill] sm:$0xff]  ;;  %v6210_v26 = vpack.c.bf16 %v6194_v0, %v6193_v62  ;;  %v12495_v62 = vld [vmem:[#allocation27_spill] sm:$0xff] }
 0x32d   : > { %v11017_v28 = vadd.f32 %v4735_v36, %v4397_v13  ;;  %vm12488_vm8 = vnez %v12487_v23  ;;  %v12489_v13 = vld [vmem:[#allocation25_spill] sm:$0xff] }
 0x32e   : > { %8872 = vmatmul.mubr.msk.bf16.gmra.mrb[24].mxu0 %vm12484_vm9, %v10757_v58  ;;  %8836 = vmatmul.mubr.msk.bf16.gmra.mrb[248].mxu1 %vm12470_vm1, %v10755_v47  ;;  %vm12490_vm9 = vnez %v12489_v13 }
 0x32f   : > { %12483 = vst [vmem:[#allocation35_spill] sm:$0xff] %v11017_v28  ;;  %8875 = vmatprep.mubr.msk.bf16.mxu0 %vm12485_vm5, %v10917_v61  ;;  %8839 = vmatprep.mubr.msk.bf16.mxu1 %vm12486_vm7, %v10850_v6  ;;  %vm12491_vm7 = vmmov %vm12470_vm1 }
 0x330   : > { %vm12492_vm5 = vmmov %vm12470_vm1 }
 0x331   : > { %v8649_v10 = vpop.f32.mrb[176].mxu0  ;;  %v8613_v40 = vpop.f32.mrb[144].mxu1 }
 0x332   : > { %v4748_v30 = vpop.f32.mrb[177].mxu0  ;;  %v4491_v58 = vsel %vm12488_vm8, %v8613_v40, 0.0  ;;  %v4410_v32 = vpop.f32.mrb[145].mxu1  ;;  %v12493_v40 = vld [vmem:[#allocation26_spill] sm:$0xff]  ;;  %vm12496_vm8 = vnez %v12495_v62 }
 0x333   : > { %v8650_v36 = vpop.f32.mrb[178].mxu0  ;;  %v11029_v47 = vadd.f32 %v8649_v10, %v4491_v58  ;;  %v4489_v61 = vsel %vm12490_vm9, %v4410_v32, 0.0  ;;  %v8614_v17 = vpop.f32.mrb[146].mxu1  ;;  %vm12494_vm9 = vnez %v12493_v40 }
 0x334   : > { %v4751_v20 = vpop.f32.mrb[179].mxu0  ;;  %v11033_v54 = vadd.f32 %v4748_v30, %v4489_v61  ;;  %v11035_v6 = vadd.f32 %v8650_v36, %v8614_v17  ;;  %v4413_v11 = vpop.f32.mrb[147].mxu1 }
 0x335   : > { %v11037_v28 = vadd.f32 %v4751_v20, %v4413_v11 }
 0x336   : > { %8876 = vmatmul.mubr.msk.bf16.gmra.mrb[28].mxu0 %vm12491_vm7, %v6548_v50  ;;  %8840 = vmatmul.mubr.msk.bf16.gmra.mrb[252].mxu1 %vm12470_vm1, %v6210_v26  ;;  %vm12499_vm7 = vmmov %vm12470_vm1 }
 0x337   : > { %8883 = vmatprep.mubr.msk.bf16.mxu1 %vm12492_vm5, %v10771_v5  ;;  %vm12503_vm5 = vmmov %vm12470_vm1 }
 0x339   : > { %v8653_v46 = vpop.f32.mrb[180].mxu0  ;;  %v8617_v56 = vpop.f32.mrb[148].mxu1 }
 0x33a   : > { %v4764_v10 = vpop.f32.mrb[181].mxu0  ;;  %v4495_v30 = vsel %vm12494_vm9, %v8617_v56, 0.0  ;;  %v4426_v58 = vpop.f32.mrb[149].mxu1 }
 0x33b   : > { %v8654_v17 = vpop.f32.mrb[182].mxu0  ;;  %v11045_v32 = vadd.f32 %v8653_v46, %v4495_v30  ;;  %v4493_v20 = vsel %vm12496_vm8, %v4426_v58, 0.0  ;;  %v8618_v11 = vpop.f32.mrb[150].mxu1 }
 0x33c   : > { %v4767_v0 = vpop.f32.mrb[183].mxu0  ;;  %v11049_v50 = vadd.f32 %v4764_v10, %v4493_v20  ;;  %v11051_v26 = vadd.f32 %v8654_v17, %v8618_v11  ;;  %v4429_v5 = vpop.f32.mrb[151].mxu1 }
 0x33d   : > { %v11053_v36 = vadd.f32 %v4767_v0, %v4429_v5 }
 0x33e   : > { %12497 = vst [vmem:[#allocation36_spill] sm:$0xff] %v11051_v26  ;;  %8884 = vmatmul.mubr.msk.bf16.vlgmr.msra.gmra.mrb[0].mxu1 %vm12499_vm7, %v10788_v18  ;;  %vm12504_vm7 = vmmov %vm12470_vm1 }
 0x33f   : > { %12498 = vst [vmem:[#allocation43_spill] sm:$0xff] %v11053_v36  ;;  %8887 = vmatprep.mubr.msk.bf16.mxu1 %vm12470_vm1, %v10793_v63  ;;  %vm12505_vm1 = vnez %v12332_v31 }
 0x341   : > { %v8657_v61 = vpop.f32.mrb[184].mxu0  ;;  %v8621_v46 = vpop.f32.mrb[152].mxu1 }
 0x342   : > { %v4780_v56 = vpop.f32.mrb[185].mxu0  ;;  %v4499_v58 = vsel %vm12328_vm6, %v8621_v46, 0.0  ;;  %v4442_v62 = vpop.f32.mrb[153].mxu1 }
 0x343   : > { %v8658_v10 = vpop.f32.mrb[186].mxu0  ;;  %v11061_v20 = vadd.f32 %v8657_v61, %v4499_v58  ;;  %v4497_v11 = vsel %vm12330_vm3, %v4442_v62, 0.0  ;;  %v8622_v0 = vpop.f32.mrb[154].mxu1 }
 0x344   : > { %v4783_v5 = vpop.f32.mrb[187].mxu0  ;;  %v11065_v36 = vadd.f32 %v4780_v56, %v4497_v11  ;;  %v11067_v18 = vadd.f32 %v8658_v10, %v8622_v0  ;;  %v4445_v63 = vpop.f32.mrb[155].mxu1 }
 0x345   : > { %v11069_v26 = vadd.f32 %v4783_v5, %v4445_v63 }
 0x346   : > { %8888 = vmatmul.mubr.msk.bf16.gmra.mrb[4].mxu1 %vm12503_vm5, %v10802_v49 }
 0x347   : > { %12502 = vst [vmem:[#allocation44_spill] sm:$0xff] %v11069_v26  ;;  %8891 = vmatprep.mubr.msk.bf16.mxu1 %vm12504_vm7, %v10806_v19  ;;  %vm12508_vm7 = vmmov %vm12503_vm5 }
 0x349   : > { %v8661_v61 = vpop.f32.mrb[188].mxu0  ;;  %v8625_v46 = vpop.f32.mrb[156].mxu1 }
 0x34a   : > { %v4796_v58 = vpop.f32.mrb[189].mxu0  ;;  %v4503_v62 = vsel %vm12293_vm14, %v8625_v46, 0.0  ;;  %v4458_v17 = vpop.f32.mrb[157].mxu1 }
 0x34b   : > { %v8662_v56 = vpop.f32.mrb[190].mxu0  ;;  %v11077_v11 = vadd.f32 %v8661_v61, %v4503_v62  ;;  %v4501_v10 = vsel %vm12505_vm1, %v4458_v17, 0.0  ;;  %v8626_v0 = vpop.f32.mrb[158].mxu1 }
 0x34c   : > { %v4799_v5 = vpop.f32.mrb[191].mxu0  ;;  %v11081_v63 = vadd.f32 %v4796_v58, %v4501_v10  ;;  %v11083_v49 = vadd.f32 %v8662_v56, %v8626_v0  ;;  %v4461_v19 = vpop.f32.mrb[159].mxu1 }
 0x34d   : > { %v11085_v26 = vadd.f32 %v4799_v5, %v4461_v19 }
 0x34e   : > { %12506 = vst [vmem:[#allocation45_spill] sm:$0xff] %v11083_v49  ;;  %8892 = vmatmul.mubr.msk.bf16.gmra.mrb[8].mxu1 %vm12503_vm5, %v10814_v24  ;;  %vm12509_vm5 = vnez %v12249_v15  ;;  %v12546_v22 = vld [vmem:[#allocation44_spill] sm:$0xff] }
 0x34f   : > { %12507 = vst [vmem:[#allocation46_spill] sm:$0xff] %v11085_v26  ;;  %8895 = vmatprep.mubr.msk.bf16.mxu1 %vm12508_vm7, %v10818_v60  ;;  %vm12510_vm7 = vnez %v12251_v12  ;;  %v7146_v12 = vld [vmem:[#allocation2 + $0x19] sm:$0xff] }
 0x351   : > { %v8705_v61 = vpop.f32.mrb[192].mxu0  ;;  %v8669_v46 = vpop.f32.mrb[160].mxu1 }
 0x352   : > { %v5457_v17 = vsel %vm12458_vm15, %v8705_v61, 0.0  ;;  %v5328_v62 = vpop.f32.mrb[193].mxu0  ;;  %v5151_v58 = vadd.f32 %v8669_v46, %v10949_v16  ;;  %v4990_v10 = vpop.f32.mrb[161].mxu1 }
 0x353   : > { %v5455_v56 = vsel %vm12460_vm11, %v5328_v62, 0.0  ;;  %v8706_v0 = vpop.f32.mrb[194].mxu0  ;;  %v5149_v5 = vadd.f32 %v4990_v10, %v10953_v7  ;;  %v8670_v19 = vpop.f32.mrb[162].mxu1  ;;  %vm12511_vm11 = vcmask 261120  }
 0x354   : > { %v5331_v24 = vpop.f32.mrb[195].mxu0  ;;  %v11097_v26 = vadd.f32 %v5457_v17, %v5151_v58  ;;  %v5120_v60 = vsel %vm12509_vm5, %v8670_v19, 0.0  ;;  %v4993_v49 = vpop.f32.mrb[163].mxu1  ;;  %vm12512_vm15 = vmmov %vm12511_vm11  ;;  %v6828_v19 = vld [vmem:[#allocation3 + $0xca] sm:$0xff] }
 0x355   : > { %v11101_v9 = vadd.f32 %v5455_v56, %v5149_v5  ;;  %v5152_v61 = vadd.f32 %v5120_v60, %v10955_v25  ;;  %v5118_v16 = vsel %vm12510_vm7, %v4993_v49, 0.0  ;;  %v6825_v56 = vld [vmem:[#allocation3 + $0xb2] sm:$0xff]  ;;  %v6826_v49 = vld [vmem:[#allocation3 + $0xba] sm:$0xff] }
 0x356   : > { %v5150_v46 = vadd.f32 %v5118_v16, %v10957_v44  ;;  %8896 = vmatmul.mubr.msk.bf16.gmra.mrb[12].mxu1 %vm12511_vm11, %v10826_v59  ;;  %vm12514_vm11 = vnez %v12255_v41  ;;  %v12552_v31 = vld [vmem:[#allocation46_spill] sm:$0xff] }
 0x357   : > { %v11109_v7 = vadd.f32 %v8706_v0, %v5152_v61  ;;  %8899 = vmatprep.mubr.msk.bf16.mxu1 %vm12512_vm15, %v10830_v48  ;;  %vm12513_vm15 = vnez %v12253_v42 }
 0x358   : > { %v11113_v17 = vadd.f32 %v5331_v24, %v5150_v46 }
 0x359   : > { %v8709_v62 = vpop.f32.mrb[196].mxu0  ;;  %v8673_v58 = vpop.f32.mrb[164].mxu1 }
 0x35a   : > { %v5461_v25 = vsel %vm12466_vm2, %v8709_v62, 0.0  ;;  %v5344_v10 = vpop.f32.mrb[197].mxu0  ;;  %v5155_v44 = vadd.f32 %v8673_v58, %v10969_v52  ;;  %v5006_v5 = vpop.f32.mrb[165].mxu1  ;;  %v6848_v62 = vpack.c.bf16 %v6826_v49, %v6825_v56 }
 0x35b   : > { %v5459_v59 = vsel %vm12468_vm4, %v5344_v10, 0.0  ;;  %v8710_v0 = vpop.f32.mrb[198].mxu0  ;;  %v5153_v48 = vadd.f32 %v5006_v5, %v10973_v53  ;;  %v8674_v24 = vpop.f32.mrb[166].mxu1  ;;  %v6849_v10 = vpack.c.bf16 %v6828_v19, %v6827_v8  ;;  %vm12515_vm4 = vcmask 261120  }
 0x35c   : > { %v5347_v60 = vpop.f32.mrb[199].mxu0  ;;  %v11121_v61 = vadd.f32 %v5461_v25, %v5155_v44  ;;  %v5124_v16 = vsel %vm12513_vm15, %v8674_v24, 0.0  ;;  %v5009_v46 = vpop.f32.mrb[167].mxu1  ;;  %vm12516_vm2 = vmmov %vm12515_vm4  ;;  %v6832_v24 = vld [vmem:[#allocation3 + $0xea] sm:$0xff] }
 0x35d   : > { %v11125_v1 = vadd.f32 %v5459_v59, %v5153_v48  ;;  %v5156_v52 = vadd.f32 %v5124_v16, %v10975_v4  ;;  %v5122_v58 = vsel %vm12514_vm11, %v5009_v46, 0.0  ;;  %v6829_v59 = vld [vmem:[#allocation3 + $0xd2] sm:$0xff]  ;;  %v6830_v48 = vld [vmem:[#allocation3 + $0xda] sm:$0xff] }
 0x35e   : > { %v5154_v53 = vadd.f32 %v5122_v58, %v10977_v3  ;;  %8900 = vmatmul.mubr.msk.bf16.gmra.mrb[16].mxu1 %vm12515_vm4, %v6848_v62  ;;  %vm12518_vm4 = vnez %v12259_v37 }
 0x35f   : > { %v11132_v25 = vadd.f32 %v8710_v0, %v5156_v52  ;;  %8903 = vmatprep.mubr.msk.bf16.mxu1 %vm12516_vm2, %v6849_v10  ;;  %vm12517_vm2 = vnez %v12257_v27  ;;  %v6850_v10 = vpack.c.bf16 %v6830_v48, %v6829_v59 }
 0x360   : > { %v11135_v44 = vadd.f32 %v5347_v60, %v5154_v53  ;;  %v6831_v53 = vld [vmem:[#allocation3 + $0xe2] sm:$0xff] }
 0x361   : > { %v8713_v56 = vpop.f32.mrb[200].mxu0  ;;  %v8677_v49 = vpop.f32.mrb[168].mxu1 }
 0x362   : > { %v5465_v5 = vsel %vm12473_vm13, %v8713_v56, 0.0  ;;  %v5360_v4 = vpop.f32.mrb[201].mxu0  ;;  %v5159_v8 = vadd.f32 %v8677_v49, %v10989_v55  ;;  %v5022_v19 = vpop.f32.mrb[169].mxu1 }
 0x363   : > { %v5463_v3 = vsel %vm12475_vm0, %v5360_v4, 0.0  ;;  %v8714_v0 = vpop.f32.mrb[202].mxu0  ;;  %v5157_v16 = vadd.f32 %v5022_v19, %v10993_v45  ;;  %v8678_v60 = vpop.f32.mrb[170].mxu1  ;;  %v6851_v4 = vpack.c.bf16 %v6832_v24, %v6831_v53  ;;  %vm12519_vm0 = vcmask 261120  }
 0x364   : > { %v5363_v46 = vpop.f32.mrb[203].mxu0  ;;  %v11143_v62 = vadd.f32 %v5465_v5, %v5159_v8  ;;  %v5128_v52 = vsel %vm12517_vm2, %v8678_v60, 0.0  ;;  %v5025_v58 = vpop.f32.mrb[171].mxu1  ;;  %vm12520_vm13 = vmmov %vm12519_vm0 }
 0x365   : > { %v11147_v56 = vadd.f32 %v5463_v3, %v5157_v16  ;;  %v5160_v55 = vadd.f32 %v5128_v52, %v10995_v38  ;;  %v5126_v49 = vsel %vm12518_vm4, %v5025_v58, 0.0  ;;  %v6833_v3 = vld [vmem:[#allocation3 + $0xf2] sm:$0xff]  ;;  %v6834_v16 = vld [vmem:[#allocation3 + $0xfa] sm:$0xff] }
 0x366   : > { %v5158_v45 = vadd.f32 %v5126_v49, %v10997_v14  ;;  %8904 = vmatmul.mubr.msk.bf16.gmra.mrb[20].mxu1 %vm12519_vm0, %v6850_v10  ;;  %v6852_v49 = vpack.c.bf16 %v6834_v16, %v6833_v3  ;;  %vm12522_vm0 = vnez %v12263_v34 }
 0x367   : > { %v11154_v5 = vadd.f32 %v8714_v0, %v5160_v55  ;;  %8907 = vmatprep.mubr.msk.bf16.mxu1 %vm12520_vm13, %v6851_v4  ;;  %vm12521_vm13 = vnez %v12261_v33 }
 0x368   : > { %v11157_v8 = vadd.f32 %v5363_v46, %v5158_v45 }
 0x369   : > { %v8717_v59 = vpop.f32.mrb[204].mxu0  ;;  %v8681_v48 = vpop.f32.mrb[172].mxu1 }
 0x36a   : > { %v5469_v19 = vsel %vm12480_vm10, %v8717_v59, 0.0  ;;  %v5376_v38 = vpop.f32.mrb[205].mxu0  ;;  %v5163_v24 = vadd.f32 %v8681_v48, %v11009_v51  ;;  %v5038_v60 = vpop.f32.mrb[173].mxu1  ;;  %v12523_v59 = vld [vmem:[#allocation35_spill] sm:$0xff] }
 0x36b   : > { %v5467_v14 = vsel %vm12482_vm12, %v5376_v38, 0.0  ;;  %v8718_v0 = vpop.f32.mrb[206].mxu0  ;;  %v5161_v52 = vadd.f32 %v5038_v60, %v11013_v39  ;;  %v8682_v58 = vpop.f32.mrb[174].mxu1  ;;  %vm12524_vm12 = vcmask 261120   ;;  %v6837_v38 = vld [vmem:[#allocation3 + $0x112] sm:$0xff] }
 0x36c   : > { %v5379_v46 = vpop.f32.mrb[207].mxu0  ;;  %v11165_v10 = vadd.f32 %v5469_v19, %v5163_v24  ;;  %v5132_v53 = vsel %vm12521_vm13, %v8682_v58, 0.0  ;;  %v5041_v55 = vpop.f32.mrb[175].mxu1  ;;  %v12525_v19 = vld [vmem:[#allocation34_spill] sm:$0xff]  ;;  %vm12526_vm10 = vmmov %vm12524_vm12  ;;  %vm12527_vm13 = vnez %v12487_v23 }
 0x36d   : > { %v11169_v4 = vadd.f32 %v5467_v14, %v5161_v52  ;;  %v5164_v51 = vadd.f32 %v5132_v53, %v11015_v21  ;;  %v5130_v45 = vsel %vm12522_vm0, %v5041_v55, 0.0  ;;  %v6838_v24 = vld [vmem:[#allocation3 + $0x11a] sm:$0xff] }
 0x36e   : > { %v5162_v48 = vadd.f32 %v5130_v45, %v12523_v59  ;;  %8908 = vmatmul.mubr.msk.bf16.gmra.mrb[24].mxu1 %vm12524_vm12, %v6852_v49  ;;  %vm12528_vm12 = vnez %v12489_v13  ;;  %v6854_v55 = vpack.c.bf16 %v6838_v24, %v6837_v38  ;;  %v12529_v59 = vld [vmem:[#allocation37_spill] sm:$0xff] }
 0x36f   : > { %v11176_v39 = vadd.f32 %v8718_v0, %v5164_v51  ;;  %8911 = vmatprep.mubr.msk.bf16.mxu1 %vm12526_vm10, %v12525_v19  ;;  %vm12530_vm10 = vnez %v12529_v59 }
 0x370   : > { %v11180_v60 = vadd.f32 %v5379_v46, %v5162_v48 }
 0x371   : > { %v8721_v3 = vpop.f32.mrb[208].mxu0  ;;  %v8685_v16 = vpop.f32.mrb[176].mxu1 }
 0x372   : > { %v5473_v21 = vsel %vm12527_vm13, %v8721_v3, 0.0  ;;  %v5392_v14 = vpop.f32.mrb[209].mxu0  ;;  %v5167_v52 = vadd.f32 %v8685_v16, %v11029_v47  ;;  %v5054_v58 = vpop.f32.mrb[177].mxu1  ;;  %v12531_v16 = vld [vmem:[#allocation38_spill] sm:$0xff] }
 0x373   : > { %v5471_v0 = vsel %vm12528_vm12, %v5392_v14, 0.0  ;;  %v8722_v53 = vpop.f32.mrb[210].mxu0  ;;  %v5165_v49 = vadd.f32 %v5054_v58, %v11033_v54  ;;  %v8686_v51 = vpop.f32.mrb[178].mxu1  ;;  %vm12532_vm13 = vnez %v12531_v16  ;;  %vm12533_vm12 = vcmask 261120  }
 0x374   : > { %v5395_v45 = vpop.f32.mrb[211].mxu0  ;;  %v11188_v46 = vadd.f32 %v5473_v21, %v5167_v52  ;;  %v5136_v48 = vsel %vm12530_vm10, %v8686_v51, 0.0  ;;  %v5057_v19 = vpop.f32.mrb[179].mxu1 }
 0x375   : > { %v11192_v3 = vadd.f32 %v5471_v0, %v5165_v49  ;;  %v5168_v47 = vadd.f32 %v5136_v48, %v11035_v6  ;;  %v5134_v13 = vsel %vm12532_vm13, %v5057_v19, 0.0  ;;  %v12540_v49 = vld [vmem:[#allocation43_spill] sm:$0xff] }
 0x376   : > { %v5166_v14 = vadd.f32 %v5134_v13, %v11037_v28  ;;  %8912 = vmatmul.mubr.msk.bf16.gmra.mrb[28].mxu1 %vm12533_vm12, %v6854_v55 }
 0x377   : > { %v11199_v54 = vadd.f32 %v8722_v53, %v5168_v47 }
 0x378   : > { %v11201_v38 = vadd.f32 %v5395_v45, %v5166_v14  ;;  %v12535_v45 = vld [vmem:[#allocation39_spill] sm:$0xff] }
 0x379   : > { %v8725_v24 = vpop.f32.mrb[212].mxu0  ;;  %v8689_v21 = vpop.f32.mrb[180].mxu1  ;;  %vm12536_vm12 = vnez %v12535_v45 }
 0x37a   : > { %v5477_v52 = vsel %vm12494_vm9, %v8725_v24, 0.0  ;;  %v5408_v58 = vpop.f32.mrb[213].mxu0  ;;  %v5171_v0 = vadd.f32 %v8689_v21, %v11045_v32  ;;  %v5070_v6 = vpop.f32.mrb[181].mxu1  ;;  %v12537_v24 = vld [vmem:[#allocation36_spill] sm:$0xff] }
 0x37b   : > { %v5475_v51 = vsel %vm12496_vm8, %v5408_v58, 0.0  ;;  %v8726_v48 = vpop.f32.mrb[214].mxu0  ;;  %v5169_v28 = vadd.f32 %v5070_v6, %v11049_v50  ;;  %v8690_v13 = vpop.f32.mrb[182].mxu1  ;;  %v12538_v32 = vld [vmem:[#allocation40_spill] sm:$0xff] }
 0x37c   : > { %v5411_v53 = vpop.f32.mrb[215].mxu0  ;;  %v11209_v55 = vadd.f32 %v5477_v52, %v5171_v0  ;;  %v5140_v19 = vsel %vm12536_vm12, %v8690_v13, 0.0  ;;  %v5073_v47 = vpop.f32.mrb[183].mxu1  ;;  %vm12539_vm9 = vnez %v12538_v32 }
 0x37d   : > { %v11213_v14 = vadd.f32 %v5475_v51, %v5169_v28  ;;  %v5172_v40 = vadd.f32 %v5140_v19, %v12537_v24  ;;  %v5138_v21 = vsel %vm12539_vm9, %v5073_v47, 0.0 }
 0x37e   : > { %v5170_v58 = vadd.f32 %v5138_v21, %v12540_v49 }
 0x37f   : > { %v11219_v23 = vadd.f32 %v8726_v48, %v5172_v40 }
 0x380   : > { %v11221_v50 = vadd.f32 %v5411_v53, %v5170_v58  ;;  %v12542_v53 = vld [vmem:[#allocation41_spill] sm:$0xff] }
 0x381   : > { %v8729_v6 = vpop.f32.mrb[216].mxu0  ;;  %v8693_v52 = vpop.f32.mrb[184].mxu1  ;;  %vm12543_vm8 = vnez %v12542_v53 }
 0x382   : > { %v5481_v0 = vsel %vm12328_vm6, %v8729_v6, 0.0  ;;  %v5424_v13 = vpop.f32.mrb[217].mxu0  ;;  %v5175_v51 = vadd.f32 %v8693_v52, %v11061_v20  ;;  %v5086_v28 = vpop.f32.mrb[185].mxu1  ;;  %v12544_v20 = vld [vmem:[#allocation42_spill] sm:$0xff] }
 0x383   : > { %v5479_v19 = vsel %vm12330_vm3, %v5424_v13, 0.0  ;;  %v8730_v24 = vpop.f32.mrb[218].mxu0  ;;  %v5173_v47 = vadd.f32 %v5086_v28, %v11065_v36  ;;  %v8694_v49 = vpop.f32.mrb[186].mxu1  ;;  %vm12545_vm6 = vnez %v12544_v20 }
 0x384   : > { %v5427_v40 = vpop.f32.mrb[219].mxu0  ;;  %v11229_v48 = vadd.f32 %v5481_v0, %v5175_v51  ;;  %v5144_v21 = vsel %vm12543_vm8, %v8694_v49, 0.0  ;;  %v5089_v58 = vpop.f32.mrb[187].mxu1 }
 0x385   : > { %v11233_v30 = vadd.f32 %v5479_v19, %v5173_v47  ;;  %v5176_v6 = vadd.f32 %v5144_v21, %v11067_v18  ;;  %v5142_v52 = vsel %vm12545_vm6, %v5089_v58, 0.0 }
 0x386   : > { %v5174_v13 = vadd.f32 %v5142_v52, %v12546_v22 }
 0x387   : > { %v11239_v43 = vadd.f32 %v8730_v24, %v5176_v6 }
 0x388   : > { %v11241_v36 = vadd.f32 %v5427_v40, %v5174_v13  ;;  %v12547_v40 = vld [vmem:[#allocation30_spill] sm:$0xff] }
 0x389   : > { %v8733_v28 = vpop.f32.mrb[220].mxu0  ;;  %v8697_v0 = vpop.f32.mrb[188].mxu1  ;;  %vm12548_vm3 = vnez %v12547_v40 }
 0x38a   : > { %v5485_v51 = vsel %vm12293_vm14, %v8733_v28, 0.0  ;;  %v5440_v49 = vpop.f32.mrb[221].mxu0  ;;  %v5179_v19 = vadd.f32 %v8697_v0, %v11077_v11  ;;  %v5102_v47 = vpop.f32.mrb[189].mxu1  ;;  %v12549_v28 = vld [vmem:[#allocation45_spill] sm:$0xff] }
 0x38b   : > { %v5483_v18 = vsel %vm12505_vm1, %v5440_v49, 0.0  ;;  %v8734_v21 = vpop.f32.mrb[222].mxu0  ;;  %v5177_v58 = vadd.f32 %v5102_v47, %v11081_v63  ;;  %v8698_v22 = vpop.f32.mrb[190].mxu1  ;;  %v12550_v11 = vld [vmem:[#allocation33_spill] sm:$0xff] }
 0x38c   : > { %v5443_v24 = vpop.f32.mrb[223].mxu0  ;;  %v11249_v6 = vadd.f32 %v5485_v51, %v5179_v19  ;;  %v5148_v52 = vsel %vm12548_vm3, %v8698_v22, 0.0  ;;  %v5105_v13 = vpop.f32.mrb[191].mxu1  ;;  %vm12551_vm14 = vnez %v12550_v11  ;;  %v12557_v11 = vld [vmem:[#allocation17_spill] sm:$0xff] }
 0x38d   : > { %v11253_v57 = vadd.f32 %v5483_v18, %v5177_v58  ;;  %v5180_v29 = vadd.f32 %v5148_v52, %v12549_v28  ;;  %v5146_v0 = vsel %vm12551_vm14, %v5105_v13, 0.0 }
 0x38e   : > { %v5178_v49 = vadd.f32 %v5146_v0, %v12552_v31 }
 0x38f   : > { %v11259_v35 = vadd.f32 %v8734_v21, %v5180_v29 }
 0x390   : > { %v11261_v63 = vadd.f32 %v5443_v24, %v5178_v49 }
 0x391   : > { %v8777_v47 = vpop.f32.mrb[224].mxu0  ;;  %v8741_v51 = vpop.f32.mrb[192].mxu1 }
 0x392   : > { %v5972_v19 = vpop.f32.mrb[225].mxu0  ;;  %v5795_v2 = vadd.f32 %v8741_v51, %v11097_v26  ;;  %v5666_v22 = vpop.f32.mrb[193].mxu1 }
 0x393   : > { %v8778_v40 = vpop.f32.mrb[226].mxu0  ;;  %v5793_v18 = vadd.f32 %v5666_v22, %v11101_v9  ;;  %v8742_v58 = vpop.f32.mrb[194].mxu1 }
 0x394   : > { %v6102_v52 = vsel %vm12509_vm5, %v8778_v40, 0.0  ;;  %v5975_v13 = vpop.f32.mrb[227].mxu0  ;;  %v11267_v28 = vadd.f32 %v8777_v47, %v5795_v2  ;;  %v5796_v31 = vadd.f32 %v8742_v58, %v11109_v7  ;;  %v5669_v29 = vpop.f32.mrb[195].mxu1 }
 0x395   : > { %v6100_v21 = vsel %vm12510_vm7, %v5975_v13, 0.0  ;;  %v11272_v24 = vadd.f32 %v5972_v19, %v5793_v18  ;;  %v5794_v26 = vadd.f32 %v5669_v29, %v11113_v17 }
 0x396   : > { %v11275_v0 = vadd.f32 %v6102_v52, %v5796_v31 }
 0x397   : > { %v11277_v9 = vadd.f32 %v6100_v21, %v5794_v26 }
 0x399   : > { %v8781_v49 = vpop.f32.mrb[228].mxu0  ;;  %v8745_v51 = vpop.f32.mrb[196].mxu1 }
 0x39a   : > { %v5988_v40 = vpop.f32.mrb[229].mxu0  ;;  %v5799_v2 = vadd.f32 %v8745_v51, %v11121_v61  ;;  %v5682_v47 = vpop.f32.mrb[197].mxu1 }
 0x39b   : > { %v8782_v22 = vpop.f32.mrb[230].mxu0  ;;  %v5797_v7 = vadd.f32 %v5682_v47, %v11125_v1  ;;  %v8746_v58 = vpop.f32.mrb[198].mxu1 }
 0x39c   : > { %v6106_v19 = vsel %vm12513_vm15, %v8782_v22, 0.0  ;;  %v5991_v18 = vpop.f32.mrb[231].mxu0  ;;  %v11283_v13 = vadd.f32 %v8781_v49, %v5799_v2  ;;  %v5800_v17 = vadd.f32 %v8746_v58, %v11132_v25  ;;  %v5685_v52 = vpop.f32.mrb[199].mxu1 }
 0x39d   : > { %v6104_v31 = vsel %vm12514_vm11, %v5991_v18, 0.0  ;;  %v11288_v29 = vadd.f32 %v5988_v40, %v5797_v7  ;;  %v5798_v61 = vadd.f32 %v5685_v52, %v11135_v44 }
 0x39e   : > { %v11291_v21 = vadd.f32 %v6106_v19, %v5800_v17 }
 0x39f   : > { %v11293_v1 = vadd.f32 %v6104_v31, %v5798_v61 }
 0x3a1   : > { %v8785_v26 = vpop.f32.mrb[232].mxu0  ;;  %v8749_v51 = vpop.f32.mrb[200].mxu1 }
 0x3a2   : > { %v6004_v47 = vpop.f32.mrb[233].mxu0  ;;  %v5803_v49 = vadd.f32 %v8749_v51, %v11143_v62  ;;  %v5698_v2 = vpop.f32.mrb[201].mxu1 }
 0x3a3   : > { %v8786_v22 = vpop.f32.mrb[234].mxu0  ;;  %v5801_v25 = vadd.f32 %v5698_v2, %v11147_v56  ;;  %v8750_v58 = vpop.f32.mrb[202].mxu1 }
 0x3a4   : > { %v6110_v40 = vsel %vm12517_vm2, %v8786_v22, 0.0  ;;  %v6007_v7 = vpop.f32.mrb[235].mxu0  ;;  %v11299_v18 = vadd.f32 %v8785_v26, %v5803_v49  ;;  %v5804_v44 = vadd.f32 %v8750_v58, %v11154_v5  ;;  %v5701_v19 = vpop.f32.mrb[203].mxu1 }
 0x3a5   : > { %v6108_v17 = vsel %vm12518_vm4, %v6007_v7, 0.0  ;;  %v11304_v52 = vadd.f32 %v6004_v47, %v5801_v25  ;;  %v5802_v62 = vadd.f32 %v5701_v19, %v11157_v8  ;;  %vm12553_vm4 = vnez %v12261_v33 }
 0x3a6   : > { %v11307_v31 = vadd.f32 %v6110_v40, %v5804_v44 }
 0x3a7   : > { %v11309_v56 = vadd.f32 %v6108_v17, %v5802_v62 }
 0x3a9   : > { %v8789_v61 = vpop.f32.mrb[236].mxu0  ;;  %v8753_v51 = vpop.f32.mrb[204].mxu1 }
 0x3aa   : > { %v6020_v2 = vpop.f32.mrb[237].mxu0  ;;  %v5807_v26 = vadd.f32 %v8753_v51, %v11165_v10  ;;  %v5714_v49 = vpop.f32.mrb[205].mxu1 }
 0x3ab   : > { %v8790_v22 = vpop.f32.mrb[238].mxu0  ;;  %v5805_v5 = vadd.f32 %v5714_v49, %v11169_v4  ;;  %v8754_v58 = vpop.f32.mrb[206].mxu1 }
 0x3ac   : > { %v6114_v47 = vsel %vm12553_vm4, %v8790_v22, 0.0  ;;  %v6023_v25 = vpop.f32.mrb[239].mxu0  ;;  %v11315_v7 = vadd.f32 %v8789_v61, %v5807_v26  ;;  %v5808_v8 = vadd.f32 %v8754_v58, %v11176_v39  ;;  %v5717_v40 = vpop.f32.mrb[207].mxu1 }
 0x3ad   : > { %v6112_v44 = vsel %vm12522_vm0, %v6023_v25, 0.0  ;;  %v11320_v19 = vadd.f32 %v6020_v2, %v5805_v5  ;;  %v5806_v10 = vadd.f32 %v5717_v40, %v11180_v60 }
 0x3ae   : > { %v11323_v17 = vadd.f32 %v6114_v47, %v5808_v8 }
 0x3af   : > { %v11325_v4 = vadd.f32 %v6112_v44, %v5806_v10 }
 0x3b1   : > { %v8793_v62 = vpop.f32.mrb[240].mxu0  ;;  %v8757_v51 = vpop.f32.mrb[208].mxu1 }
 0x3b2   : > { %v6036_v49 = vpop.f32.mrb[241].mxu0  ;;  %v5811_v61 = vadd.f32 %v8757_v51, %v11188_v46  ;;  %v5730_v26 = vpop.f32.mrb[209].mxu1 }
 0x3b3   : > { %v8794_v22 = vpop.f32.mrb[242].mxu0  ;;  %v5809_v39 = vadd.f32 %v5730_v26, %v11192_v3  ;;  %v8758_v58 = vpop.f32.mrb[210].mxu1 }
 0x3b4   : > { %v6118_v2 = vsel %vm12530_vm10, %v8794_v22, 0.0  ;;  %v6039_v5 = vpop.f32.mrb[243].mxu0  ;;  %v11331_v25 = vadd.f32 %v8793_v62, %v5811_v61  ;;  %v5812_v60 = vadd.f32 %v8758_v58, %v11199_v54  ;;  %v5733_v47 = vpop.f32.mrb[211].mxu1 }
 0x3b5   : > { %v6116_v8 = vsel %vm12532_vm13, %v6039_v5, 0.0  ;;  %v11336_v40 = vadd.f32 %v6036_v49, %v5809_v39  ;;  %v5810_v46 = vadd.f32 %v5733_v47, %v11201_v38 }
 0x3b6   : > { %v11339_v44 = vadd.f32 %v6118_v2, %v5812_v60 }
 0x3b7   : > { %v11341_v3 = vadd.f32 %v6116_v8, %v5810_v46 }
 0x3b9   : > { %v8797_v10 = vpop.f32.mrb[244].mxu0  ;;  %v8761_v51 = vpop.f32.mrb[212].mxu1 }
 0x3ba   : > { %v6052_v26 = vpop.f32.mrb[245].mxu0  ;;  %v5815_v62 = vadd.f32 %v8761_v51, %v11209_v55  ;;  %v5746_v61 = vpop.f32.mrb[213].mxu1 }
 0x3bb   : > { %v8798_v22 = vpop.f32.mrb[246].mxu0  ;;  %v5813_v54 = vadd.f32 %v5746_v61, %v11213_v14  ;;  %v8762_v58 = vpop.f32.mrb[214].mxu1 }
 0x3bc   : > { %v6122_v49 = vsel %vm12536_vm12, %v8798_v22, 0.0  ;;  %v6055_v39 = vpop.f32.mrb[247].mxu0  ;;  %v11347_v5 = vadd.f32 %v8797_v10, %v5815_v62  ;;  %v5816_v38 = vadd.f32 %v8762_v58, %v11219_v23  ;;  %v5749_v2 = vpop.f32.mrb[215].mxu1 }
 0x3bd   : > { %v6120_v60 = vsel %vm12539_vm9, %v6055_v39, 0.0  ;;  %v11352_v47 = vadd.f32 %v6052_v26, %v5813_v54  ;;  %v5814_v55 = vadd.f32 %v5749_v2, %v11221_v50 }
 0x3be   : > { %v11355_v8 = vadd.f32 %v6122_v49, %v5816_v38 }
 0x3bf   : > { %v11357_v14 = vadd.f32 %v6120_v60, %v5814_v55 }
 0x3c1   : > { %v8801_v46 = vpop.f32.mrb[248].mxu0  ;;  %v8765_v51 = vpop.f32.mrb[216].mxu1 }
 0x3c2   : > { %v6068_v61 = vpop.f32.mrb[249].mxu0  ;;  %v5819_v10 = vadd.f32 %v8765_v51, %v11229_v48  ;;  %v5762_v62 = vpop.f32.mrb[217].mxu1 }
 0x3c3   : > { %v8802_v22 = vpop.f32.mrb[250].mxu0  ;;  %v5817_v23 = vadd.f32 %v5762_v62, %v11233_v30  ;;  %v8766_v58 = vpop.f32.mrb[218].mxu1 }
 0x3c4   : > { %v6126_v26 = vsel %vm12543_vm8, %v8802_v22, 0.0  ;;  %v6071_v54 = vpop.f32.mrb[251].mxu0  ;;  %v11363_v39 = vadd.f32 %v8801_v46, %v5819_v10  ;;  %v5820_v50 = vadd.f32 %v8766_v58, %v11239_v43  ;;  %v5765_v49 = vpop.f32.mrb[219].mxu1 }
 0x3c5   : > { %v6124_v38 = vsel %vm12545_vm6, %v6071_v54, 0.0  ;;  %v11368_v2 = vadd.f32 %v6068_v61, %v5817_v23  ;;  %v5818_v48 = vadd.f32 %v5765_v49, %v11241_v36 }
 0x3c6   : > { %v11371_v60 = vadd.f32 %v6126_v26, %v5820_v50 }
 0x3c7   : > { %v11373_v30 = vadd.f32 %v6124_v38, %v5818_v48 }
 0x3c9   : > { %v8805_v55 = vpop.f32.mrb[252].mxu0  ;;  %v8769_v51 = vpop.f32.mrb[220].mxu1 }
 0x3ca   : > { %v6084_v62 = vpop.f32.mrb[253].mxu0  ;;  %v5823_v46 = vadd.f32 %v8769_v51, %v11249_v6  ;;  %v5778_v10 = vpop.f32.mrb[221].mxu1 }
 0x3cb   : > { %v8806_v22 = vpop.f32.mrb[254].mxu0  ;;  %v5821_v43 = vadd.f32 %v5778_v10, %v11253_v57  ;;  %v8770_v58 = vpop.f32.mrb[222].mxu1 }
 0x3cc   : > { %v6130_v61 = vsel %vm12548_vm3, %v8806_v22, 0.0  ;;  %v6087_v23 = vpop.f32.mrb[255].mxu0  ;;  %v11379_v54 = vadd.f32 %v8805_v55, %v5823_v46  ;;  %v5824_v36 = vadd.f32 %v8770_v58, %v11259_v35  ;;  %v5781_v26 = vpop.f32.mrb[223].mxu1  ;;  %v12555_v22 = vld [vmem:[#allocation16_spill] sm:$0xff] }
 0x3cd   : > { %v6128_v50 = vsel %vm12551_vm14, %v6087_v23, 0.0  ;;  %v11384_v49 = vadd.f32 %v6084_v62, %v5821_v43  ;;  %v5822_v6 = vadd.f32 %v5781_v26, %v11261_v63  ;;  %vm12556_vm3 = vnez %v12555_v22 }
 0x3ce   : > { %v11387_v38 = vadd.f32 %v6130_v61, %v5824_v36  ;;  %vm12558_vm14 = vnez %v12557_v11 }
 0x3cf   : > { %v11389_v57 = vadd.f32 %v6128_v50, %v5822_v6 }
 0x3d1   : > { %v8849_v48 = vpop.f32.mrb[0].mxu0  ;;  %v8813_v51 = vpop.f32.mrb[224].mxu1 }
 0x3d2   : > { %v6648_v10 = vpop.f32.mrb[1].mxu0  ;;  %v6439_v55 = vsel %vm12556_vm3, %v8813_v51, 0.0  ;;  %v6310_v46 = vpop.f32.mrb[225].mxu1 }
 0x3d3   : > { %v8850_v35 = vpop.f32.mrb[2].mxu0  ;;  %v6471_v58 = vadd.f32 %v6439_v55, %v11267_v28  ;;  %v6437_v62 = vsel %vm12558_vm14, %v6310_v46, 0.0  ;;  %v8814_v43 = vpop.f32.mrb[226].mxu1  ;;  %v12559_v46 = vld [vmem:[#allocation18_spill] sm:$0xff] }
 0x3d4   : > { %v6651_v23 = vpop.f32.mrb[3].mxu0  ;;  %v6469_v63 = vadd.f32 %v6437_v62, %v11272_v24  ;;  %v6472_v61 = vadd.f32 %v8814_v43, %v11275_v0  ;;  %v6313_v36 = vpop.f32.mrb[227].mxu1  ;;  %vm12560_vm14 = vnez %v12559_v46 }
 0x3d5   : > { %v11398_v26 = vadd.f32 %v8849_v48, %v6471_v58  ;;  %v6470_v50 = vadd.f32 %v6313_v36, %v11277_v9  ;;  %v12561_v48 = vld [vmem:[#allocation19_spill] sm:$0xff] }
 0x3d6   : > { %v11401_v6 = vadd.f32 %v6648_v10, %v6469_v63  ;;  %v11403_v51 = vadd.f32 %v8850_v35, %v6472_v61  ;;  %vm12562_vm3 = vnez %v12561_v48 }
 0x3d7   : > { %v11405_v22 = vadd.f32 %v6651_v23, %v6470_v50 }
 0x3d9   : > { %v8853_v28 = vpop.f32.mrb[4].mxu0  ;;  %v8817_v11 = vpop.f32.mrb[228].mxu1 }
 0x3da   : > { %v6664_v55 = vpop.f32.mrb[5].mxu0  ;;  %v6443_v20 = vsel %vm12560_vm14, %v8817_v11, 0.0  ;;  %v6326_v24 = vpop.f32.mrb[229].mxu1 }
 0x3db   : > { %v8854_v62 = vpop.f32.mrb[6].mxu0  ;;  %v6475_v0 = vadd.f32 %v6443_v20, %v11283_v13  ;;  %v6441_v58 = vsel %vm12562_vm3, %v6326_v24, 0.0  ;;  %v8818_v9 = vpop.f32.mrb[230].mxu1  ;;  %v12563_v24 = vld [vmem:[#allocation20_spill] sm:$0xff] }
 0x3dc   : > { %v6667_v10 = vpop.f32.mrb[7].mxu0  ;;  %v6473_v35 = vadd.f32 %v6441_v58, %v11288_v29  ;;  %v6476_v43 = vadd.f32 %v8818_v9, %v11291_v21  ;;  %v6329_v23 = vpop.f32.mrb[231].mxu1  ;;  %vm12564_vm14 = vnez %v12563_v24 }
 0x3dd   : > { %v11414_v63 = vadd.f32 %v8853_v28, %v6475_v0  ;;  %v6474_v61 = vadd.f32 %v6329_v23, %v11293_v1  ;;  %v12565_v28 = vld [vmem:[#allocation21_spill] sm:$0xff] }
 0x3de   : > { %v11417_v36 = vadd.f32 %v6664_v55, %v6473_v35  ;;  %v11419_v50 = vadd.f32 %v8854_v62, %v6476_v43  ;;  %vm12566_vm3 = vnez %v12565_v28 }
 0x3df   : > { %v11421_v11 = vadd.f32 %v6667_v10, %v6474_v61 }
 0x3e1   : > { %v8857_v20 = vpop.f32.mrb[8].mxu0  ;;  %v8821_v13 = vpop.f32.mrb[232].mxu1 }
 0x3e2   : > { %v6680_v46 = vpop.f32.mrb[9].mxu0  ;;  %v6447_v48 = vsel %vm12564_vm14, %v8821_v13, 0.0  ;;  %v6342_v29 = vpop.f32.mrb[233].mxu1 }
 0x3e3   : > { %v8858_v58 = vpop.f32.mrb[10].mxu0  ;;  %v6479_v21 = vadd.f32 %v6447_v48, %v11299_v18  ;;  %v6445_v0 = vsel %vm12566_vm3, %v6342_v29, 0.0  ;;  %v8822_v1 = vpop.f32.mrb[234].mxu1  ;;  %v12567_v29 = vld [vmem:[#allocation22_spill] sm:$0xff] }
 0x3e4   : > { %v6683_v55 = vpop.f32.mrb[11].mxu0  ;;  %v6477_v62 = vadd.f32 %v6445_v0, %v11304_v52  ;;  %v6480_v9 = vadd.f32 %v8822_v1, %v11307_v31  ;;  %v6345_v10 = vpop.f32.mrb[235].mxu1  ;;  %vm12568_vm14 = vnez %v12567_v29 }
 0x3e5   : > { %v11430_v35 = vadd.f32 %v8857_v20, %v6479_v21  ;;  %v6478_v43 = vadd.f32 %v6345_v10, %v11309_v56  ;;  %v12569_v20 = vld [vmem:[#allocation23_spill] sm:$0xff] }
 0x3e6   : > { %v11433_v23 = vadd.f32 %v6680_v46, %v6477_v62  ;;  %v11435_v61 = vadd.f32 %v8858_v58, %v6480_v9  ;;  %vm12570_vm3 = vnez %v12569_v20 }
 0x3e7   : > { %v11437_v13 = vadd.f32 %v6683_v55, %v6478_v43 }
 0x3e9   : > { %v8861_v18 = vpop.f32.mrb[12].mxu0  ;;  %v8825_v24 = vpop.f32.mrb[236].mxu1 }
 0x3ea   : > { %v6696_v48 = vpop.f32.mrb[13].mxu0  ;;  %v6451_v28 = vsel %vm12568_vm14, %v8825_v24, 0.0  ;;  %v6358_v52 = vpop.f32.mrb[237].mxu1 }
 0x3eb   : > { %v8862_v0 = vpop.f32.mrb[14].mxu0  ;;  %v6483_v31 = vadd.f32 %v6451_v28, %v11315_v7  ;;  %v6449_v21 = vsel %vm12570_vm3, %v6358_v52, 0.0  ;;  %v8826_v56 = vpop.f32.mrb[238].mxu1  ;;  %v12571_v52 = vld [vmem:[#allocation24_spill] sm:$0xff] }
 0x3ec   : > { %v6699_v46 = vpop.f32.mrb[15].mxu0  ;;  %v6481_v58 = vadd.f32 %v6449_v21, %v11320_v19  ;;  %v6484_v1 = vadd.f32 %v8826_v56, %v11323_v17  ;;  %v6361_v55 = vpop.f32.mrb[239].mxu1  ;;  %vm12572_vm14 = vnez %v12571_v52 }
 0x3ed   : > { %v11446_v62 = vadd.f32 %v8861_v18, %v6483_v31  ;;  %v6482_v9 = vadd.f32 %v6361_v55, %v11325_v4  ;;  %v12573_v18 = vld [vmem:[#allocation25_spill] sm:$0xff] }
 0x3ee   : > { %v11449_v10 = vadd.f32 %v6696_v48, %v6481_v58  ;;  %v11451_v43 = vadd.f32 %v8862_v0, %v6484_v1  ;;  %vm12574_vm3 = vnez %v12573_v18 }
 0x3ef   : > { %v11453_v24 = vadd.f32 %v6699_v46, %v6482_v9 }
 0x3f1   : > { %v8865_v7 = vpop.f32.mrb[16].mxu0  ;;  %v8829_v29 = vpop.f32.mrb[240].mxu1 }
 0x3f2   : > { %v6712_v28 = vpop.f32.mrb[17].mxu0  ;;  %v6455_v20 = vsel %vm12572_vm14, %v8829_v29, 0.0  ;;  %v6374_v19 = vpop.f32.mrb[241].mxu1 }
 0x3f3   : > { %v8866_v21 = vpop.f32.mrb[18].mxu0  ;;  %v6487_v17 = vadd.f32 %v6455_v20, %v11331_v25  ;;  %v6453_v31 = vsel %vm12574_vm3, %v6374_v19, 0.0  ;;  %v8830_v4 = vpop.f32.mrb[242].mxu1  ;;  %v12575_v19 = vld [vmem:[#allocation26_spill] sm:$0xff] }
 0x3f4   : > { %v6715_v48 = vpop.f32.mrb[19].mxu0  ;;  %v6485_v0 = vadd.f32 %v6453_v31, %v11336_v40  ;;  %v6488_v56 = vadd.f32 %v8830_v4, %v11339_v44  ;;  %v6377_v46 = vpop.f32.mrb[243].mxu1  ;;  %vm12576_vm14 = vnez %v12575_v19 }
 0x3f5   : > { %v11462_v58 = vadd.f32 %v8865_v7, %v6487_v17  ;;  %v6486_v1 = vadd.f32 %v6377_v46, %v11341_v3  ;;  %v12577_v7 = vld [vmem:[#allocation27_spill] sm:$0xff] }
 0x3f6   : > { %v11465_v55 = vadd.f32 %v6712_v28, %v6485_v0  ;;  %v11467_v9 = vadd.f32 %v8866_v21, %v6488_v56  ;;  %vm12578_vm3 = vnez %v12577_v7 }
 0x3f7   : > { %v11469_v29 = vadd.f32 %v6715_v48, %v6486_v1 }
 0x3f9   : > { %v8869_v25 = vpop.f32.mrb[20].mxu0  ;;  %v8833_v52 = vpop.f32.mrb[244].mxu1 }
 0x3fa   : > { %v6728_v20 = vpop.f32.mrb[21].mxu0  ;;  %v6459_v18 = vsel %vm12576_vm14, %v8833_v52, 0.0  ;;  %v6390_v40 = vpop.f32.mrb[245].mxu1 }
 0x3fb   : > { %v8870_v31 = vpop.f32.mrb[22].mxu0  ;;  %v6491_v44 = vadd.f32 %v6459_v18, %v11347_v5  ;;  %v6457_v17 = vsel %vm12578_vm3, %v6390_v40, 0.0  ;;  %v8834_v3 = vpop.f32.mrb[246].mxu1  ;;  %v12579_v40 = vld [vmem:[#allocation28_spill] sm:$0xff] }
 0x3fc   : > { %v6731_v28 = vpop.f32.mrb[23].mxu0  ;;  %v6489_v21 = vadd.f32 %v6457_v17, %v11352_v47  ;;  %v6492_v4 = vadd.f32 %v8834_v3, %v11355_v8  ;;  %v6393_v48 = vpop.f32.mrb[247].mxu1  ;;  %vm12580_vm14 = vnez %v12579_v40 }
 0x3fd   : > { %v11478_v0 = vadd.f32 %v8869_v25, %v6491_v44  ;;  %v6490_v56 = vadd.f32 %v6393_v48, %v11357_v14  ;;  %v12581_v25 = vld [vmem:[#allocation29_spill] sm:$0xff] }
 0x3fe   : > { %v11481_v46 = vadd.f32 %v6728_v20, %v6489_v21  ;;  %v11483_v1 = vadd.f32 %v8870_v31, %v6492_v4  ;;  %vm12582_vm3 = vnez %v12581_v25 }
 0x3ff   : > { %v11485_v52 = vadd.f32 %v6731_v28, %v6490_v56 }
 0x401   : > { %v8873_v5 = vpop.f32.mrb[24].mxu0  ;;  %v8837_v19 = vpop.f32.mrb[248].mxu1 }
 0x402   : > { %v6744_v18 = vpop.f32.mrb[25].mxu0  ;;  %v6463_v7 = vsel %vm12580_vm14, %v8837_v19, 0.0  ;;  %v6406_v47 = vpop.f32.mrb[249].mxu1 }
 0x403   : > { %v8874_v17 = vpop.f32.mrb[26].mxu0  ;;  %v6495_v8 = vadd.f32 %v6463_v7, %v11363_v39  ;;  %v6461_v44 = vsel %vm12582_vm3, %v6406_v47, 0.0  ;;  %v8838_v14 = vpop.f32.mrb[250].mxu1  ;;  %v12583_v47 = vld [vmem:[#allocation31_spill] sm:$0xff] }
 0x404   : > { %v6747_v20 = vpop.f32.mrb[27].mxu0  ;;  %v6493_v31 = vadd.f32 %v6461_v44, %v11368_v2  ;;  %v6496_v3 = vadd.f32 %v8838_v14, %v11371_v60  ;;  %v6409_v28 = vpop.f32.mrb[251].mxu1  ;;  %vm12584_vm14 = vnez %v12583_v47  ;;  %v11524_v47 = vld [vmem:[%s381_s12] ss:$0 sm:$0xff] }
 0x405   : > { %v11494_v21 = vadd.f32 %v8873_v5, %v6495_v8  ;;  %v6494_v4 = vadd.f32 %v6409_v28, %v11373_v30 }
 0x406   : > { %v11497_v48 = vadd.f32 %v6744_v18, %v6493_v31  ;;  %v11499_v56 = vadd.f32 %v8874_v17, %v6496_v3 }
 0x407   : > { %v11501_v19 = vadd.f32 %v6747_v20, %v6494_v4 }
 0x409   : > { %v8877_v39 = vpop.f32.mrb[28].mxu0  ;;  %v8841_v40 = vpop.f32.mrb[252].mxu1 }
 0x40a   : > { %v6760_v7 = vpop.f32.mrb[29].mxu0  ;;  %v6467_v25 = vsel %vm12584_vm14, %v8841_v40, 0.0  ;;  %v6422_v2 = vpop.f32.mrb[253].mxu1  ;;  %vm12592_vm14 = vnez %v12259_v37 }
 0x40b   : > { %v8878_v60 = vpop.f32.mrb[30].mxu0  ;;  %v6499_v5 = vadd.f32 %v6467_v25, %v11379_v54  ;;  %v6465_v30 = vsel %vm12505_vm1, %v6422_v2, 0.0  ;;  %v8842_v18 = vpop.f32.mrb[254].mxu1  ;;  %vm12586_vm1 = vcmask 261120  }
 0x40c   : > { %v6763_v17 = vpop.f32.mrb[31].mxu0  ;;  %v6497_v44 = vadd.f32 %v6465_v30, %v11384_v49  ;;  %v6500_v14 = vadd.f32 %v8842_v18, %v11387_v38  ;;  %v6425_v20 = vpop.f32.mrb[255].mxu1  ;;  %vm12591_vm3 = vmmov %vm12586_vm1 }
 0x40d   : > { %v11510_v31 = vadd.f32 %v8877_v39, %v6499_v5  ;;  %v6498_v3 = vadd.f32 %v6425_v20, %v11389_v57  ;;  %v11532_v57 = vld [vmem:[%s384_s15] ss:$0 sm:$0xff]  ;;  %v7147_v5 = vld [vmem:[#allocation2 + $0x21] sm:$0xff]  ;;  %v7148_v20 = vld [vmem:[#allocation2 + $0x29] sm:$0xff] }
 0x40e   : > { %v11513_v28 = vadd.f32 %v6760_v7, %v6497_v44  ;;  %v11515_v4 = vadd.f32 %v8878_v60, %v6500_v14 }
 0x40f   : > { %v11517_v54 = vadd.f32 %v6763_v17, %v6498_v3  ;;  %v7145_v17 = vld [vmem:[#allocation2 + $0x11] sm:$0xff] }
 0x411   : > { %v8885_v40 = vpop.f32.mrb[0].mxu1 }
 0x412   : > { %v7115_v49 = vadd.f32 %v8885_v40, %v11398_v26  ;;  %v6954_v38 = vpop.f32.mrb[1].mxu1 }
 0x413   : > { %v7113_v39 = vadd.f32 %v6954_v38, %v11401_v6  ;;  %v8886_v7 = vpop.f32.mrb[2].mxu1 }
 0x414   : > { %v7186_v25 = vmul.f32 %v11524_v47, %v7115_v49  ;;  %v7084_v2 = vsel %vm12509_vm5, %v8886_v7, 0.0  ;;  %v6957_v60 = vpop.f32.mrb[3].mxu1  ;;  %vm12587_vm5 = vmmov %vm12586_vm1 }
 0x415   : > { %v7184_v8 = vmul.f32 %v11524_v47, %v7113_v39  ;;  %v7116_v26 = vadd.f32 %v7084_v2, %v11403_v51  ;;  %v7082_v30 = vsel %vm12510_vm7, %v6957_v60, 0.0  ;;  %vm12588_vm7 = vmmov %vm12586_vm1 }
 0x416   : > { %v7225_v18 = vadd.f32 %v11532_v57, %v7186_v25  ;;  %v7114_v6 = vadd.f32 %v7082_v30, %v11405_v22 }
 0x417   : > { %v7223_v44 = vadd.f32 %v11532_v57, %v7184_v8  ;;  %v7187_v14 = vmul.f32 %v11524_v47, %v7116_v26 }
 0x418   : > { %v11546_v15 = vadd.f32 %v7225_v18, %v7147_v5  ;;  %v7185_v3 = vmul.f32 %v11524_v47, %v7114_v6 }
 0x419   : > { %v11549_v40 = vadd.f32 %v7223_v44, %v7145_v17  ;;  %v7226_v51 = vadd.f32 %v11532_v57, %v7187_v14  ;;  %v8889_v49 = vpop.f32.mrb[4].mxu1 }
 0x41a   : > { %v7289_v38 = vmax.f32 %v11546_v15, 0.0  ;;  %v7224_v39 = vadd.f32 %v11532_v57, %v7185_v3  ;;  %v7119_v22 = vadd.f32 %v8889_v49, %v11414_v63  ;;  %v6970_v7 = vpop.f32.mrb[5].mxu1 }
 0x41b   : > { %v7287_v25 = vmax.f32 %v11549_v40, 0.0  ;;  %v11556_v2 = vadd.f32 %v7226_v51, %v7148_v20  ;;  %v7117_v60 = vadd.f32 %v6970_v7, %v11417_v36  ;;  %v8890_v5 = vpop.f32.mrb[6].mxu1  ;;  %v7151_v36 = vld [vmem:[#allocation2 + $0x41] sm:$0xff]  ;;  %v7149_v20 = vld [vmem:[#allocation2 + $0x31] sm:$0xff] }
 0x41c   : > { %7321 = vst.msk [vmem:[#allocation2 + $0x21] sm:$0xff] %vm12586_vm1, %v7289_v38  ;;  %v11562_v8 = vadd.f32 %v7224_v39, %v7146_v12  ;;  %v7190_v26 = vmul.f32 %v11524_v47, %v7119_v22  ;;  %v7088_v30 = vsel %vm12513_vm15, %v8890_v5, 0.0  ;;  %v6973_v63 = vpop.f32.mrb[7].mxu1  ;;  %vm12589_vm15 = vmmov %vm12586_vm1  ;;  %v7150_v22 = vld [vmem:[#allocation2 + $0x39] sm:$0xff] }
 0x41d   : > { %7319 = vst.msk [vmem:[#allocation2 + $0x11] sm:$0xff] %vm12587_vm5, %v7287_v25  ;;  %v7290_v18 = vmax.f32 %v11556_v2, 0.0  ;;  %v7188_v17 = vmul.f32 %v11524_v47, %v7117_v60  ;;  %v7120_v6 = vadd.f32 %v7088_v30, %v11419_v50  ;;  %v7086_v44 = vsel %vm12514_vm11, %v6973_v63, 0.0  ;;  %v7152_v50 = vld [vmem:[#allocation2 + $0x49] sm:$0xff]  ;;  %vm12590_vm11 = vmmov %vm12586_vm1 }
 0x41e   : > { %v7288_v14 = vmax.f32 %v11562_v8, 0.0  ;;  %v7229_v42 = vadd.f32 %v11532_v57, %v7190_v26  ;;  %v7118_v3 = vadd.f32 %v7086_v44, %v11421_v11  ;;  %vm12594_vm5 = vmmov %vm12586_vm1 }
 0x41f   : > { %7322 = vst.msk [vmem:[#allocation2 + $0x29] sm:$0xff] %vm12588_vm7, %v7290_v18  ;;  %v7227_v51 = vadd.f32 %v11532_v57, %v7188_v17  ;;  %v7191_v12 = vmul.f32 %v11524_v47, %v7120_v6  ;;  %vm12595_vm7 = vmmov %vm12586_vm1 }
 0x420   : > { %7320 = vst.msk [vmem:[#allocation2 + $0x19] sm:$0xff] %vm12589_vm15, %v7288_v14  ;;  %v11586_v41 = vadd.f32 %v7229_v42, %v7151_v36  ;;  %v7189_v49 = vmul.f32 %v11524_v47, %v7118_v3  ;;  %vm12597_vm15 = vmmov %vm12586_vm1 }
 0x421   : > { %v11589_v39 = vadd.f32 %v7227_v51, %v7149_v20  ;;  %v7230_v11 = vadd.f32 %v11532_v57, %v7191_v12  ;;  %v8893_v7 = vpop.f32.mrb[8].mxu1 }
 0x422   : > { %v7293_v60 = vmax.f32 %v11586_v41, 0.0  ;;  %v7228_v5 = vadd.f32 %v11532_v57, %v7189_v49  ;;  %v7123_v26 = vadd.f32 %v8893_v7, %v11430_v35  ;;  %v6986_v30 = vpop.f32.mrb[9].mxu1 }
 0x423   : > { %v7291_v63 = vmax.f32 %v11589_v39, 0.0  ;;  %v11596_v36 = vadd.f32 %v7230_v11, %v7152_v50  ;;  %v7121_v17 = vadd.f32 %v6986_v30, %v11433_v23  ;;  %v8894_v6 = vpop.f32.mrb[10].mxu1  ;;  %v7155_v23 = vld [vmem:[#allocation2 + $0x61] sm:$0xff]  ;;  %v7153_v11 = vld [vmem:[#allocation2 + $0x51] sm:$0xff] }
 0x424   : > { %7325 = vst.msk [vmem:[#allocation2 + $0x41] sm:$0xff] %vm12590_vm11, %v7293_v60  ;;  %v11602_v44 = vadd.f32 %v7228_v5, %v7150_v22  ;;  %v7194_v42 = vmul.f32 %v11524_v47, %v7123_v26  ;;  %v7092_v20 = vsel %vm12517_vm2, %v8894_v6, 0.0  ;;  %v6989_v35 = vpop.f32.mrb[11].mxu1  ;;  %vm12593_vm2 = vmmov %vm12586_vm1 }
 0x425   : > { %7323 = vst.msk [vmem:[#allocation2 + $0x31] sm:$0xff] %vm12591_vm3, %v7291_v63  ;;  %v7294_v3 = vmax.f32 %v11596_v36, 0.0  ;;  %v7192_v51 = vmul.f32 %v11524_v47, %v7121_v17  ;;  %v7124_v12 = vadd.f32 %v7092_v20, %v11435_v61  ;;  %v7090_v50 = vsel %vm12592_vm14, %v6989_v35, 0.0  ;;  %v7156_v61 = vld [vmem:[#allocation2 + $0x69] sm:$0xff]  ;;  %v7154_v17 = vld [vmem:[#allocation2 + $0x59] sm:$0xff] }
 0x426   : > { %v7292_v49 = vmax.f32 %v11602_v44, 0.0  ;;  %v7233_v27 = vadd.f32 %v11532_v57, %v7194_v42  ;;  %v7122_v22 = vadd.f32 %v7090_v50, %v11437_v13 }
 0x427   : > { %7326 = vst.msk [vmem:[#allocation2 + $0x49] sm:$0xff] %vm12593_vm2, %v7294_v3  ;;  %v7231_v7 = vadd.f32 %v11532_v57, %v7192_v51  ;;  %v7195_v5 = vmul.f32 %v11524_v47, %v7124_v12 }
 0x428   : > { %7324 = vst.msk [vmem:[#allocation2 + $0x39] sm:$0xff] %vm12586_vm1, %v7292_v49  ;;  %v11626_v37 = vadd.f32 %v7233_v27, %v7155_v23  ;;  %v7193_v26 = vmul.f32 %v11524_v47, %v7122_v22 }
 0x429   : > { %v11629_v30 = vadd.f32 %v7231_v7, %v7153_v11  ;;  %v7234_v13 = vadd.f32 %v11532_v57, %v7195_v5  ;;  %v8897_v6 = vpop.f32.mrb[12].mxu1 }
 0x42a   : > { %v7297_v42 = vmax.f32 %v11626_v37, 0.0  ;;  %v7232_v20 = vadd.f32 %v11532_v57, %v7193_v26  ;;  %v7127_v35 = vadd.f32 %v8897_v6, %v11446_v62  ;;  %v7002_v51 = vpop.f32.mrb[13].mxu1  ;;  %v7157_v6 = vld [vmem:[#allocation2 + $0x71] sm:$0xff] }
 0x42b   : > { %v7295_v12 = vmax.f32 %v11629_v30, 0.0  ;;  %v11636_v23 = vadd.f32 %v7234_v13, %v7156_v61  ;;  %v7125_v50 = vadd.f32 %v7002_v51, %v11449_v10  ;;  %v8898_v27 = vpop.f32.mrb[14].mxu1  ;;  %v7159_v10 = vld [vmem:[#allocation2 + $0x81] sm:$0xff] }
 0x42c   : > { %7329 = vst.msk [vmem:[#allocation2 + $0x61] sm:$0xff] %vm12594_vm5, %v7297_v42  ;;  %v11642_v11 = vadd.f32 %v7232_v20, %v7154_v17  ;;  %v7198_v22 = vmul.f32 %v11524_v47, %v7127_v35  ;;  %v7096_v7 = vsel %vm12553_vm4, %v8898_v27, 0.0  ;;  %v7005_v62 = vpop.f32.mrb[15].mxu1  ;;  %vm12596_vm4 = vmmov %vm12586_vm1 }
 0x42d   : > { %7327 = vst.msk [vmem:[#allocation2 + $0x51] sm:$0xff] %vm12595_vm7, %v7295_v12  ;;  %v12173_v5 = vmax.f32 %v11636_v23, 0.0  ;;  %v7196_v61 = vmul.f32 %v11524_v47, %v7125_v50  ;;  %v7128_v26 = vadd.f32 %v7096_v7, %v11451_v43  ;;  %v7094_v13 = vsel %vm12522_vm0, %v7005_v62, 0.0  ;;  %v7160_v43 = vld [vmem:[#allocation2 + $0x89] sm:$0xff]  ;;  %vm12598_vm0 = vmmov %vm12586_vm1 }
 0x42e   : > { %v7296_v17 = vmax.f32 %v11642_v11, 0.0  ;;  %v7237_v33 = vadd.f32 %v11532_v57, %v7198_v22  ;;  %v7126_v20 = vadd.f32 %v7094_v13, %v11453_v24  ;;  %v7158_v22 = vld [vmem:[#allocation2 + $0x79] sm:$0xff]  ;;  %vm12599_vm11 = vmmov %vm12598_vm0 }
 0x42f   : > { %7330 = vst.msk [vmem:[#allocation2 + $0x69] sm:$0xff] %vm12596_vm4, %v12173_v5  ;;  %v7235_v35 = vadd.f32 %v11532_v57, %v7196_v61  ;;  %v7199_v51 = vmul.f32 %v11524_v47, %v7128_v26  ;;  %vm12601_vm3 = vmmov %vm12598_vm0 }
 0x430   : > { %7328 = vst.msk [vmem:[#allocation2 + $0x59] sm:$0xff] %vm12597_vm15, %v7296_v17  ;;  %v11666_v34 = vadd.f32 %v7237_v33, %v7159_v10  ;;  %v7197_v50 = vmul.f32 %v11524_v47, %v7126_v20  ;;  %vm12603_vm14 = vmmov %vm12598_vm0 }
 0x431   : > { %v11669_v27 = vadd.f32 %v7235_v35, %v7157_v6  ;;  %v7238_v24 = vadd.f32 %v11532_v57, %v7199_v51  ;;  %v8901_v7 = vpop.f32.mrb[16].mxu1  ;;  %vm12605_vm2 = vmmov %vm12598_vm0 }
 0x432   : > { %v12175_v62 = vmax.f32 %v11666_v34, 0.0  ;;  %v7236_v61 = vadd.f32 %v11532_v57, %v7197_v50  ;;  %v7131_v26 = vadd.f32 %v8901_v7, %v11462_v58  ;;  %v7018_v13 = vpop.f32.mrb[17].mxu1  ;;  %vm12607_vm1 = vmmov %vm12598_vm0 }
 0x433   : > { %v7299_v5 = vmax.f32 %v11669_v27, 0.0  ;;  %v11676_v10 = vadd.f32 %v7238_v24, %v7160_v43  ;;  %v7129_v33 = vadd.f32 %v7018_v13, %v11465_v55  ;;  %v8902_v20 = vpop.f32.mrb[18].mxu1  ;;  %v7163_v55 = vld [vmem:[#allocation2 + $0xa1] sm:$0xff]  ;;  %vm12610_vm5 = vmmov %vm12598_vm0 }
 0x434   : > { %7333 = vst.msk [vmem:[#allocation2 + $0x81] sm:$0xff] %vm12598_vm0, %v12175_v62  ;;  %v11682_v6 = vadd.f32 %v7236_v61, %v7158_v22  ;;  %v7202_v35 = vmul.f32 %v11524_v47, %v7131_v26  ;;  %v7100_v51 = vsel %vm12530_vm10, %v8902_v20, 0.0  ;;  %v7021_v58 = vpop.f32.mrb[19].mxu1  ;;  %v7161_v61 = vld [vmem:[#allocation2 + $0x91] sm:$0xff]  ;;  %vm12600_vm10 = vmmov %vm12598_vm0 }
 0x435   : > { %7331 = vst.msk [vmem:[#allocation2 + $0x71] sm:$0xff] %vm12599_vm11, %v7299_v5  ;;  %v12174_v43 = vmax.f32 %v11676_v10, 0.0  ;;  %v7200_v50 = vmul.f32 %v11524_v47, %v7129_v33  ;;  %v7132_v24 = vadd.f32 %v7100_v51, %v11467_v9  ;;  %v7098_v22 = vsel %vm12532_vm13, %v7021_v58, 0.0  ;;  %v7164_v9 = vld [vmem:[#allocation2 + $0xa9] sm:$0xff]  ;;  %v7162_v51 = vld [vmem:[#allocation2 + $0x99] sm:$0xff]  ;;  %vm12602_vm13 = vmmov %vm12598_vm0 }
 0x436   : > { %v7300_v7 = vmax.f32 %v11682_v6, 0.0  ;;  %v7241_v59 = vadd.f32 %v11532_v57, %v7202_v35  ;;  %v7130_v26 = vadd.f32 %v7098_v22, %v11469_v29  ;;  %vm12614_vm4 = vmmov %vm12598_vm0  ;;  %v12639_v15 = vmax.f32 (!%p7936_p1), %v11676_v10, 0.0 }
 0x437   : > { %7334 = vst.msk [vmem:[#allocation2 + $0x89] sm:$0xff] %vm12600_vm10, %v12174_v43  ;;  %v7239_v13 = vadd.f32 %v11532_v57, %v7200_v50  ;;  %v7203_v33 = vmul.f32 %v11524_v47, %v7132_v24  ;;  %vm12617_vm11 = vmmov %vm12598_vm0 }
 0x438   : > { %7332 = vst.msk [vmem:[#allocation2 + $0x79] sm:$0xff] %vm12601_vm3, %v7300_v7  ;;  %v11706_v16 = vadd.f32 %v7241_v59, %v7163_v55  ;;  %v7201_v20 = vmul.f32 %v11524_v47, %v7130_v26  ;;  %vm12618_vm10 = vmmov %vm12598_vm0 }
 0x439   : > { %v11709_v35 = vadd.f32 %v7239_v13, %v7161_v61  ;;  %v7242_v29 = vadd.f32 %v11532_v57, %v7203_v33  ;;  %v8905_v58 = vpop.f32.mrb[20].mxu1  ;;  %vm12619_vm3 = vmmov %vm12598_vm0 }
 0x43a   : > { %v12177_v22 = vmax.f32 %v11706_v16, 0.0  ;;  %v7240_v50 = vadd.f32 %v11532_v57, %v7201_v20  ;;  %v7135_v24 = vadd.f32 %v8905_v58, %v11478_v0  ;;  %v7034_v43 = vpop.f32.mrb[21].mxu1  ;;  %v7165_v58 = vld [vmem:[#allocation2 + $0xb1] sm:$0xff]  ;;  %v12643_v40 = vmax.f32 (!%p7936_p1), %v11706_v16, 0.0 }
 0x43b   : > { %v7303_v62 = vmax.f32 %v11709_v35, 0.0  ;;  %v11716_v55 = vadd.f32 %v7242_v29, %v7164_v9  ;;  %v7133_v59 = vadd.f32 %v7034_v43, %v11481_v46  ;;  %v8906_v26 = vpop.f32.mrb[22].mxu1  ;;  %v7167_v46 = vld [vmem:[#allocation2 + $0xc1] sm:$0xff] }
 0x43c   : > { %7337 = vst.msk [vmem:[#allocation2 + $0xa1] sm:$0xff] %vm12602_vm13, %v12177_v22  ;;  %v11722_v61 = vadd.f32 %v7240_v50, %v7162_v51  ;;  %v7206_v13 = vmul.f32 %v11524_v47, %v7135_v24  ;;  %v7104_v33 = vsel %vm12536_vm12, %v8906_v26, 0.0  ;;  %v7037_v0 = vpop.f32.mrb[23].mxu1  ;;  %vm12604_vm12 = vmmov %vm12598_vm0 }
 0x43d   : > { %7335 = vst.msk [vmem:[#allocation2 + $0x91] sm:$0xff] %vm12603_vm14, %v7303_v62  ;;  %v12176_v9 = vmax.f32 %v11716_v55, 0.0  ;;  %v7204_v43 = vmul.f32 %v11524_v47, %v7133_v59  ;;  %v7136_v20 = vadd.f32 %v7104_v33, %v11483_v1  ;;  %v7102_v29 = vsel %vm12539_vm9, %v7037_v0, 0.0  ;;  %v7168_v1 = vld [vmem:[#allocation2 + $0xc9] sm:$0xff]  ;;  %v7166_v33 = vld [vmem:[#allocation2 + $0xb9] sm:$0xff]  ;;  %vm12606_vm9 = vmmov %vm12598_vm0 }
 0x43e   : > { %v7304_v51 = vmax.f32 %v11722_v61, 0.0  ;;  %v7245_v45 = vadd.f32 %v11532_v57, %v7206_v13  ;;  %v7134_v50 = vadd.f32 %v7102_v29, %v11485_v52  ;;  %vm12620_vm13 = vmmov %vm12598_vm0 }
 0x43f   : > { %7338 = vst.msk [vmem:[#allocation2 + $0xa9] sm:$0xff] %vm12604_vm12, %v12176_v9  ;;  %v7243_v24 = vadd.f32 %v11532_v57, %v7204_v43  ;;  %v7207_v59 = vmul.f32 %v11524_v47, %v7136_v20  ;;  %vm12621_vm14 = vmmov %vm12598_vm0  ;;  %vm12622_vm12 = vcmask (!%p7936_p1), 261120  }
 0x440   : > { %7336 = vst.msk [vmem:[#allocation2 + $0x99] sm:$0xff] %vm12605_vm2, %v7304_v51  ;;  %v11746_v32 = vadd.f32 %v7245_v45, %v7167_v46  ;;  %v7205_v26 = vmul.f32 %v11524_v47, %v7134_v50  ;;  %vm12623_vm2 = vmmov (!%p7936_p1), %vm12622_vm12 }
 0x441   : > { %v11749_v13 = vadd.f32 %v7243_v24, %v7165_v58  ;;  %v7246_v52 = vadd.f32 %v11532_v57, %v7207_v59  ;;  %v8909_v0 = vpop.f32.mrb[24].mxu1  ;;  %7355 = vst.msk [vmem:[%s9277_s30] sm:$0xff] (!%p7936_p1), %vm12622_vm12, %v7287_v25 }
 0x442   : > { %v12179_v29 = vmax.f32 %v11746_v32, 0.0  ;;  %v7244_v43 = vadd.f32 %v11532_v57, %v7205_v26  ;;  %v7139_v20 = vadd.f32 %v8909_v0, %v11494_v21  ;;  %v7050_v9 = vpop.f32.mrb[25].mxu1  ;;  %7356 = vst.msk [vmem:[%s9277_s30 + $0x8] sm:$0xff] (!%p7936_p1), %vm12623_vm2, %v7288_v14  ;;  %v12651_v8 = vmax.f32 (!%p7936_p1), %v11746_v32, 0.0 }
 0x443   : > { %v12183_v22 = vmax.f32 %v11749_v13, 0.0  ;;  %v11756_v46 = vadd.f32 %v7246_v52, %v7168_v1  ;;  %v7137_v45 = vadd.f32 %v7050_v9, %v11497_v48  ;;  %v8910_v50 = vpop.f32.mrb[26].mxu1  ;;  %v7171_v48 = vld [vmem:[#allocation2 + $0xe1] sm:$0xff]  ;;  %v7170_v52 = vld [vmem:[#allocation2 + $0xd9] sm:$0xff]  ;;  %v12647_v25 = vmax.f32 (!%p7936_p1), %v11749_v13, 0.0 }
 0x444   : > { %7341 = vst.msk [vmem:[#allocation2 + $0xc1] sm:$0xff] %vm12606_vm9, %v12179_v29  ;;  %v11762_v58 = vadd.f32 %v7244_v43, %v7166_v33  ;;  %v7210_v24 = vmul.f32 %v11524_v47, %v7139_v20  ;;  %v7108_v59 = vsel %vm12543_vm8, %v8910_v50, 0.0  ;;  %v7053_v21 = vpop.f32.mrb[27].mxu1  ;;  %v7169_v43 = vld [vmem:[#allocation2 + $0xd1] sm:$0xff]  ;;  %vm12609_vm8 = vmmov %vm12598_vm0 }
 0x445   : > { %7339 = vst.msk [vmem:[#allocation2 + $0xb1] sm:$0xff] %vm12607_vm1, %v12183_v22  ;;  %v12178_v1 = vmax.f32 %v11756_v46, 0.0  ;;  %v7208_v9 = vmul.f32 %v11524_v47, %v7137_v45  ;;  %v7140_v26 = vadd.f32 %v7108_v59, %v11499_v56  ;;  %v7106_v33 = vsel %vm12545_vm6, %v7053_v21, 0.0  ;;  %v7172_v59 = vld [vmem:[#allocation2 + $0xe9] sm:$0xff]  ;;  %vm12611_vm6 = vmmov %vm12598_vm0 }
 0x446   : > { %v12180_v0 = vmax.f32 %v11762_v58, 0.0  ;;  %v7249_v53 = vadd.f32 %v11532_v57, %v7210_v24  ;;  %v7138_v20 = vadd.f32 %v7106_v33, %v11501_v19  ;;  %vm12624_vm9 = vmmov (!%p7936_p1), %vm12623_vm2  ;;  %v12649_v2 = vmax.f32 (!%p7936_p1), %v11762_v58, 0.0 }
 0x447   : > { %7342 = vst.msk [vmem:[#allocation2 + $0xc9] sm:$0xff] %vm12609_vm8, %v12178_v1  ;;  %v7247_v50 = vadd.f32 %v11532_v57, %v7208_v9  ;;  %v7211_v45 = vmul.f32 %v11524_v47, %v7140_v26  ;;  %vm12625_vm1 = vmmov (!%p7936_p1), %vm12623_vm2 }
 0x448   : > { %7340 = vst.msk [vmem:[#allocation2 + $0xb9] sm:$0xff] %vm12610_vm5, %v12180_v0  ;;  %v11786_v56 = vadd.f32 %v7249_v53, %v7171_v48  ;;  %v7209_v24 = vmul.f32 %v11524_v47, %v7138_v20  ;;  %vm12626_vm8 = vmmov (!%p7936_p1), %vm12625_vm1 }
 0x449   : > { %v11789_v21 = vadd.f32 %v7247_v50, %v7169_v43  ;;  %v7250_v19 = vadd.f32 %v11532_v57, %v7211_v45  ;;  %v8913_v33 = vpop.f32.mrb[28].mxu1  ;;  %v12612_v45 = vld [vmem:[#allocation30_spill] sm:$0xff]  ;;  %7357 = vst.msk [vmem:[%s9277_s30 + $0x10] sm:$0xff] (!%p7936_p1), %vm12624_vm9, %v7289_v38  ;;  %vm12627_vm5 = vmmov (!%p7936_p1), %vm12625_vm1  ;;  %v12645_v38 = vmax.f32 (!%p7936_p1), %v11716_v55, 0.0 }
 0x44a   : > { %v12181_v1 = vmax.f32 %v11786_v56, 0.0  ;;  %v7248_v9 = vadd.f32 %v11532_v57, %v7209_v24  ;;  %v7143_v26 = vadd.f32 %v8913_v33, %v11510_v31  ;;  %v7066_v29 = vpop.f32.mrb[29].mxu1  ;;  %vm12613_vm7 = vnez %v12612_v45  ;;  %v12615_v33 = vld [vmem:[#allocation33_spill] sm:$0xff]  ;;  %7358 = vst.msk [vmem:[%s9277_s30 + $0x18] sm:$0xff] (!%p7936_p1), %vm12625_vm1, %v7290_v18 }
 0x44b   : > { %v12182_v0 = vmax.f32 %v11789_v21, 0.0  ;;  %v11796_v48 = vadd.f32 %v7250_v19, %v7172_v59  ;;  %v7141_v53 = vadd.f32 %v7066_v29, %v11513_v28  ;;  %v8914_v20 = vpop.f32.mrb[30].mxu1  ;;  %v7175_v28 = vld [vmem:[#allocation2 + $0x101] sm:$0xff]  ;;  %vm12616_vm15 = vnez %v12615_v33  ;;  %v7174_v33 = vld [vmem:[#allocation2 + $0xf9] sm:$0xff]  ;;  %7359 = vst.msk [vmem:[%s9277_s30 + $0x20] sm:$0xff] (!%p7936_p1), %vm12626_vm8, %v7291_v63 }
 0x44c   : > { %7345 = vst.msk [vmem:[#allocation2 + $0xe1] sm:$0xff] %vm12611_vm6, %v12181_v1  ;;  %v11802_v43 = vadd.f32 %v7248_v9, %v7170_v52  ;;  %v7214_v50 = vmul.f32 %v11524_v47, %v7143_v26  ;;  %v7112_v24 = vsel %vm12613_vm7, %v8914_v20, 0.0  ;;  %v7069_v31 = vpop.f32.mrb[31].mxu1  ;;  %v7173_v20 = vld [vmem:[#allocation2 + $0xf1] sm:$0xff]  ;;  %vm12628_vm6 = vmmov (!%p7936_p1), %vm12625_vm1  ;;  %v12653_v18 = vmax.f32 (!%p7936_p1), %v11756_v46, 0.0 }
 0x44d   : > { %7343 = vst.msk [vmem:[#allocation2 + $0xd1] sm:$0xff] %vm12614_vm4, %v12182_v0  ;;  %v7314_v59 = vmax.f32 %v11796_v48, 0.0  ;;  %v7212_v29 = vmul.f32 %v11524_v47, %v7141_v53  ;;  %v7144_v19 = vadd.f32 %v7112_v24, %v11515_v4  ;;  %v7110_v52 = vsel %vm12616_vm15, %v7069_v31, 0.0  ;;  %v7176_v4 = vld [vmem:[#allocation2 + $0x109] sm:$0xff]  ;;  %vm12629_vm7 = vmmov (!%p7936_p1), %vm12625_vm1 }
 0x44e   : > { %v7312_v9 = vmax.f32 %v11802_v43, 0.0  ;;  %v7253_v26 = vadd.f32 %v11532_v57, %v7214_v50  ;;  %v7142_v45 = vadd.f32 %v7110_v52, %v11517_v54  ;;  %7360 = vst.msk [vmem:[%s9277_s30 + $0x28] sm:$0xff] (!%p7936_p1), %vm12627_vm5, %v7292_v49  ;;  %vm12630_vm4 = vmmov (!%p7936_p1), %vm12625_vm1  ;;  %v12655_v14 = vmax.f32 (!%p7936_p1), %v11789_v21, 0.0 }
 0x44f   : > { %7346 = vst.msk [vmem:[#allocation2 + $0xe9] sm:$0xff] %vm12598_vm0, %v7314_v59  ;;  %v7251_v1 = vadd.f32 %v11532_v57, %v7212_v29  ;;  %v7215_v48 = vmul.f32 %v11524_v47, %v7144_v19  ;;  %vm12631_vm15 = vmmov (!%p7936_p1), %vm12625_vm1  ;;  %v12658_v41 = vmax.f32 (!%p7936_p1), %v11786_v56, 0.0 }
 0x450   : > { %7344 = vst.msk [vmem:[#allocation2 + $0xd9] sm:$0xff] %vm12617_vm11, %v7312_v9  ;;  %v7285_v53 = vadd.f32 %v7253_v26, %v7175_v28  ;;  %v7213_v24 = vmul.f32 %v11524_v47, %v7142_v45  ;;  %vm12632_vm0 = vmmov (!%p7936_p1), %vm12625_vm1  ;;  %v12633_v47 = vmax.f32 (!%p7936_p1), %v11636_v23, 0.0 }
 0x451   : > { %v7283_v31 = vadd.f32 %v7251_v1, %v7173_v20  ;;  %v7254_v43 = vadd.f32 %v11532_v57, %v7215_v48  ;;  %7361 = vst.msk [vmem:[%s9277_s30 + $0x30] sm:$0xff] (!%p7936_p1), %vm12628_vm6, %v7293_v60  ;;  %vm12634_vm11 = vmmov (!%p7936_p1), %vm12632_vm0 }
 0x452   : > { %v7317_v50 = vmax.f32 %v7285_v53, 0.0  ;;  %v7252_v0 = vadd.f32 %v11532_v57, %v7213_v24  ;;  %7354 = sbr.rel (%p7936_p1) target bundleno = 1135 (0x46f), region = 56  ;;  %7362 = vst.msk [vmem:[%s9277_s30 + $0x38] sm:$0xff] (!%p7936_p1), %vm12629_vm7, %v7294_v3  ;;  %v12637_v57 = vmax.f32 (!%p7936_p1), %v11666_v34, 0.0  ;;  %vm12641_vm12 = vmmov (!%p7936_p1), %vm12632_vm0 }
 0x453   : > { %v7315_v54 = vmax.f32 %v7283_v31, 0.0  ;;  %v7286_v52 = vadd.f32 %v7254_v43, %v7176_v4  ;;  %7363 = vst.msk [vmem:[%s9277_s30 + $0x40] sm:$0xff] (!%p7936_p1), %vm12630_vm4, %v7295_v12  ;;  %vm12642_vm2 = vmmov (!%p7936_p1), %vm12632_vm0 }
 0x454   : > { %7349 = vst.msk [vmem:[#allocation2 + $0x101] sm:$0xff] %vm12618_vm10, %v7317_v50  ;;  %v7284_v29 = vadd.f32 %v7252_v0, %v7174_v33  ;;  %vm12635_vm10 = vmmov (!%p7936_p1), %vm12632_vm0 }
 0x455   : > { %7347 = vst.msk [vmem:[#allocation2 + $0xf1] sm:$0xff] %vm12619_vm3, %v7315_v54  ;;  %v7318_v19 = vmax.f32 %v7286_v52, 0.0  ;;  %vm12636_vm3 = vmmov (!%p7936_p1), %vm12632_vm0 }
 0x456   : > { %v7316_v22 = vmax.f32 %v7284_v29, 0.0  ;;  %7364 = vst.msk [vmem:[%s9277_s30 + $0x48] sm:$0xff] (!%p7936_p1), %vm12631_vm15, %v7296_v17  ;;  %vm12644_vm9 = vmmov (!%p7936_p1), %vm12632_vm0 }
 0x457   : > { %7350 = vst.msk [vmem:[#allocation2 + $0x109] sm:$0xff] %vm12620_vm13, %v7318_v19  ;;  %vm12638_vm13 = vmmov (!%p7936_p1), %vm12632_vm0 }
 0x458   : > { %7348 = vst.msk [vmem:[#allocation2 + $0xf9] sm:$0xff] %vm12621_vm14, %v7316_v22  ;;  %vm12640_vm14 = vmmov (!%p7936_p1), %vm12632_vm0 }
 0x459   : > { %7365 = vst.msk [vmem:[%s9277_s30 + $0x50] sm:$0xff] %vm12632_vm0, %v7297_v42  ;;  %vm12646_vm1 = vmmov %vm12632_vm0 }
 0x45a   : > { %7366 = vst.msk [vmem:[%s9277_s30 + $0x58] sm:$0xff] %vm12634_vm11, %v12633_v47  ;;  %vm12648_vm8 = vmmov %vm12632_vm0 }
 0x45b   : > { %7367 = vst.msk [vmem:[%s9277_s30 + $0x60] sm:$0xff] %vm12635_vm10, %v7299_v5  ;;  %vm12650_vm5 = vmmov %vm12632_vm0 }
 0x45c   : > { %7368 = vst.msk [vmem:[%s9277_s30 + $0x68] sm:$0xff] %vm12636_vm3, %v7300_v7  ;;  %vm12652_vm6 = vmmov %vm12632_vm0 }
 0x45d   : > { %7369 = vst.msk [vmem:[%s9277_s30 + $0x70] sm:$0xff] %vm12638_vm13, %v12637_v57  ;;  %vm12654_vm7 = vmmov %vm12632_vm0 }
 0x45e   : > { %7370 = vst.msk [vmem:[%s9277_s30 + $0x78] sm:$0xff] %vm12640_vm14, %v12639_v15  ;;  %vm12656_vm4 = vmmov %vm12632_vm0 }
 0x45f   : > { %7371 = vst.msk [vmem:[%s9277_s30 + $0x80] sm:$0xff] %vm12641_vm12, %v7303_v62  ;;  %vm12657_vm15 = vmmov %vm12632_vm0 }
 0x460   : > { %7372 = vst.msk [vmem:[%s9277_s30 + $0x88] sm:$0xff] %vm12642_vm2, %v7304_v51  ;;  %vm12659_vm11 = vmmov %vm12632_vm0 }
 0x461   : > { %7373 = vst.msk [vmem:[%s9277_s30 + $0x90] sm:$0xff] %vm12644_vm9, %v12643_v40  ;;  %vm12660_vm10 = vmmov %vm12632_vm0 }
 0x462   : > { %7374 = vst.msk [vmem:[%s9277_s30 + $0x98] sm:$0xff] %vm12646_vm1, %v12645_v38  ;;  %vm12661_vm3 = vmmov %vm12632_vm0 }
 0x463   : > { %7375 = vst.msk [vmem:[%s9277_s30 + $0xa0] sm:$0xff] %vm12648_vm8, %v12647_v25  ;;  %vm12662_vm13 = vmmov %vm12632_vm0 }
 0x464   : > { %7376 = vst.msk [vmem:[%s9277_s30 + $0xa8] sm:$0xff] %vm12650_vm5, %v12649_v2  ;;  %vm12663_vm14 = vmmov %vm12632_vm0 }
 0x465   : > { %7377 = vst.msk [vmem:[%s9277_s30 + $0xb0] sm:$0xff] %vm12652_vm6, %v12651_v8 }
 0x466   : > { %7378 = vst.msk [vmem:[%s9277_s30 + $0xb8] sm:$0xff] %vm12654_vm7, %v12653_v18 }
 0x467   : > { %7379 = vst.msk [vmem:[%s9277_s30 + $0xc0] sm:$0xff] %vm12656_vm4, %v12655_v14 }
 0x468   : > { %7380 = vst.msk [vmem:[%s9277_s30 + $0xc8] sm:$0xff] %vm12657_vm15, %v7312_v9 }
 0x469   : > { %7381 = vst.msk [vmem:[%s9277_s30 + $0xd0] sm:$0xff] %vm12632_vm0, %v12658_v41 }
 0x46a   : > { %7382 = vst.msk [vmem:[%s9277_s30 + $0xd8] sm:$0xff] %vm12659_vm11, %v7314_v59 }
 0x46b   : > { %7383 = vst.msk [vmem:[%s9277_s30 + $0xe0] sm:$0xff] %vm12660_vm10, %v7315_v54 }
 0x46c   : > { %7384 = vst.msk [vmem:[%s9277_s30 + $0xe8] sm:$0xff] %vm12661_vm3, %v7316_v22 }
 0x46d   : > { %7385 = vst.msk [vmem:[%s9277_s30 + $0xf0] sm:$0xff] %vm12662_vm13, %v7317_v50 }
 0x46e   : > { %7386 = vst.msk [vmem:[%s9277_s30 + $0xf8] sm:$0xff] %vm12663_vm14, %v7318_v19 }
 0x46f PF: > { %s7942_s27 = sshll.u32 %s9109_s28, 12  ;;  %s7401_s20 = sshll.u32 %s9277_s30, 4  ;;  %s11953_s20 = int_to_ptr.vmem [resolvable:$true] %s7401_s20 }
 0x470   : > { %s11950_s15 = scalar_lea.hbm %s12016_s7, %s7942_s27  ;;  %s12664_s9 = sand.u32 1, %s9097_s25  }
 0x471   : > { %s11957_s10 = scalar_lea.sflag [#allocation5], %s12664_s9  ;;  %s9027_s12 = scalar_lea.vmem %s11953_s20, 4096 }
 0x472   : > { %p9028_p2 = scmp.ne.s32.totalorder %s11953_s20, %s9027_s12  ;;  %s9124_s28 = smov [#allocation4]  }
 0x473   : > { %s9031_s22 = sshll.u32 %s9124_s28, 4  ;;  %s9032_s22 = int_to_ptr.vmem [resolvable:$false] %s9031_s22 }
 0x474   : > { %p9029_p4 = pnand %p9028_p2, %p9216_p3  ;;  %s9033_s16 = scalar_lea.vmem %s9032_s22, 8192 }
 0x475   : > { %p9034_p6 = scmp.lt.s32.totalorder %s11953_s20, %s9032_s22  ;;  %p9035_p7 = scmp.lt.s32.totalorder %s9033_s16, %s9027_s12 }
 0x476   : > { %p9030_p5 = pneg %p9029_p4 }
 0x477   : > { %p9036_p8 = por %p9035_p7, %p9034_p6 }
 0x479   : > { %p9037_p10 = pnand %p9036_p8, %p9030_p5 }
 0x47b   : > { %9040 = shalt.err (!%p9037_p10)
}
 0x47c   : > { %s9041_s30 = scalar_lea.hbm %s11950_s15, 4096  ;;  %s9045_s11 = scalar_lea.hbm %s12016_s7, 8192 }
 0x47d   : > { %p9042_p11 = scmp.ne.s32.totalorder %s11950_s15, %s9041_s30  ;;  %p9046_p0 = scmp.lt.u32.totalorder %s11950_s15, %s12016_s7 }
 0x47e   : > { %p9047_p1 = scmp.lt.u32.totalorder %s9045_s11, %s9041_s30  ;;  %p9049_p4 = scmp.lt.u32.totalorder %s9041_s30, %s11950_s15 }
 0x47f   : > { %p9043_p12 = pnand %p9042_p11, %p9216_p3 }
 0x480   : > { %p9048_p2 = por %p9047_p1, %p9046_p0 }
 0x481   : > { %p9044_p13 = pneg %p9043_p12 }
 0x482   : > { %p9050_p5 = por %p9049_p4, %p9048_p2 }
 0x484   : > { %p9051_p6 = pnand %p9050_p5, %p9044_p13 }
 0x486   : > { %9054 = shalt.err (!%p9051_p6)
}
 0x487   : > { %s9125_s29 = smov 128   ;;  %s9126_s8 = smov 8  }
 0x488   : > { %8917 = dma.vmem_to_hbm [thread:$0]  (%p9216_p3), %s11953_s20, 4096, %s11950_s15, %s11957_s10, %s9125_s29, %s9125_s29, %s9126_s8  }
 0x489 PF: > { %s12665_s18 = sld [smem:[#allocation11_spill]]  ;;  %s12666_s19 = sld [smem:[#allocation7_spill]] }
 0x48f   : > { %p8923_p7 = scmp.ge.s32.totalorder %s12665_s18, 2  ;;  %s7416_s21 = sand.u32 1, %s12666_s19  }
 0x490   : > { %s7417_s23 = scalar_lea.sflag [#allocation5], %s7416_s21 }
 0x491   : > { %p8920_p8 = pnand %p8923_p7, %p9226_p9 }
 0x493   : > { %9088 = dma.done.wait (!%p8920_p8), %s7417_s23, 4096  }
 0x494   : > { %9090 = vsyncadd (!%p8920_p8), %s7417_s23, 4294963200  ;;  %s20_s8 = sadd.s32 1, %s12665_s18   ;;  %s12668_s9 = sld [smem:[#allocation8_spill]] }
 0x495   : > { %p17_p10 = scmp.ge.s32.totalorder %s20_s8, 6   ;;  %s12669_s26 = sld [smem:[#allocation15_spill]] }
 0x496   : > { %s12670_s27 = sld [smem:[#allocation9_spill]]  ;;  %s12671_s28 = sld [smem:[#allocation10_spill]] }
 0x497   : > { %s12672_s29 = sld [smem:[#allocation12_spill]]  ;;  %s12673_s30 = sld [smem:[#allocation13_spill]] }
 0x498   : > { %s12674_s24 = smov %s9097_s25  ;;  %19 = sbr.rel (!%p17_p10) target bundleno = 5 (0x5), region = 125 }
 0x49a   : > { %s12675_s25 = smov %s12668_s9 }
 0x49f   :  { %7422 = vsyncpa [#allocation5], 1 }
 0x4a0   :  { %7424 = vsyncpa [#allocation5 + $0x1], 1 }

</bundles_post_ra>
